<compile_context>
chip_gen: v7x
topology: tpu7x:2x2x1
jax: 0.10.0
libtpu: 0.0.40
codegen_flags: <defaults>
</compile_context>

<pallas_src>
import functools
import math

import jax
import jax.numpy as jnp
from jax import lax
from jax.experimental import pallas as pl
from jax.experimental.pallas import tpu as pltpu

_SQRT_HALF = 1.0 / math.sqrt(2.0)
_GELU_C = math.sqrt(2.0 / math.pi)


# ----------------------------------------------------------------------------
# In-kernel helpers.
# ----------------------------------------------------------------------------
def _gelu_tanh(x):
    # tanh-form GELU: tanh runs on the (otherwise idle) EUP slot.  Max abs
    # error vs the exact erf GELU used by torch F.gelu is ~1e-3.
    return 0.5 * x * (1.0 + jnp.tanh(_GELU_C * (x + 0.044715 * x * x * x)))


def _shift_lanes(h, d, keep):
    # out[:, t] = h[:, t - d] (XLU lane roll).  `keep` is a hoisted float 0/1
    # (1, L) mask that zeroes wrap-around / cross-sequence / pad columns so
    # the implicit zero padding of the 'same' conv is preserved even with
    # several sequences folded onto the lane axis.
    L = h.shape[-1]
    return pltpu.roll(h, shift=d % L, axis=1) * keep


def _dilated_conv(h, w_ref, b_ref, d, m_prev, m_next, cdt):
    # 'same' k=3 dilated conv as three accumulating MXU matmuls (no sublane
    # concatenate, no (3*Cin, L) temporary; on v7x the MRB accumulates
    # in place).  w_ref: (3, Cout, Cin) taps [t-d, t, t+d]; b_ref: (Cout, 1).
    acc = jnp.dot(w_ref[1], h.astype(cdt), preferred_element_type=jnp.float32)
    acc = acc + jnp.dot(w_ref[0], _shift_lanes(h, d, m_prev).astype(cdt),
                        preferred_element_type=jnp.float32)
    acc = acc + jnp.dot(w_ref[2], _shift_lanes(h, -d, m_next).astype(cdt),
                        preferred_element_type=jnp.float32)
    return acc + b_ref[...]


# ----------------------------------------------------------------------------
# Fused encoder kernel: nan-mask + input Linear + all ConvBlocks.  One grid
# step processes `bb` sequences folded onto the lane axis, activation kept in
# VMEM in (C, lanes) layout the whole way.
# ----------------------------------------------------------------------------
def _ts_encoder_kernel(*refs, block_meta, seq_len, seq_len_pad, cdt):
    x_ref, fc_w_ref, fc_b_ref = refs[0], refs[1], refs[2]
    out_ref = refs[-1]
    wrefs = refs[3:-1]

    L = x_ref.shape[-1]

    # Hoisted per-(dilation, sign) shift masks -- built ONCE (JAX does not CSE
    # iota/broadcast, so _shift_lanes must not rebuild them).  Uses the
    # within-(padded)-sequence index; the "next" tap is bounded by the TRUE
    # sequence length so pad-column garbage never leaks into valid columns.
    # If a dilation >= seq_len the masks zero every valid column -- this
    # matches the all-zero-padding conv output and is intentional.
    t_in_seq = lax.broadcasted_iota(jnp.int32, (1, L), 1) % seq_len_pad
    masks = {}
    for d in sorted({d for d, _ in block_meta}):
        masks[d] = ((t_in_seq >= d).astype(jnp.float32),
                    (t_in_seq < (seq_len - d)).astype(jnp.float32))

    # NaN column mask + input Linear, directly in conv layout (C, lanes).
    # (Semantically jnp.any(jnp.isnan(x), axis=0); written as an f32
    #  max-reduce which is guaranteed to lower.)
    x = x_ref[...]                                                 # (Din, L)
    nan_col = jnp.max(jnp.isnan(x).astype(jnp.float32),
                      axis=0, keepdims=True) > 0.0                 # (1, L)
    x = jnp.where(nan_col, 0.0, x)
    h = jnp.dot(fc_w_ref[...], x.astype(cdt),
                preferred_element_type=jnp.float32) + fc_b_ref[...]
    # eval mode: mask = 'all_true' & nan_mask == nan_mask  ->  x[~mask] = 0
    h = jnp.where(nan_col, 0.0, h)                                 # (H, L)

    # Dilated ConvBlock stack (statically unrolled -- fine at this depth).
    # TODO(synk): for realistic depth (10+), move the block loop onto an
    # "arbitrary" grid axis with per-block weight slabs + a VMEM carry to
    # bound liveness / compile time and fit v7x's 64 MiB VMEM.
    idx = 0
    for dilation, has_proj in block_meta:
        m_prev, m_next = masks[dilation]
        w1, b1, w2, b2 = wrefs[idx], wrefs[idx + 1], wrefs[idx + 2], wrefs[idx + 3]
        idx += 4
        if has_proj:
            pw, pb = wrefs[idx], wrefs[idx + 1]
            idx += 2
            residual = jnp.dot(pw[...], h.astype(cdt),
                               preferred_element_type=jnp.float32) + pb[...]
        else:
            residual = h
        y = _dilated_conv(_gelu_tanh(h), w1, b1, dilation, m_prev, m_next, cdt)
        y = _dilated_conv(_gelu_tanh(y), w2, b2, dilation, m_prev, m_next, cdt)
        h = y + residual

    out_ref[...] = h                                   # (Dout, L), lane-dense


# ----------------------------------------------------------------------------
# Batch-fold / pad planning.
# ----------------------------------------------------------------------------
def _fold_plan(batch, seq_len, target_lanes=256, max_lanes=2048):
    """How many sequences to fold onto the lane axis per grid step.

    Keeps >= 2 grid steps when batch >= 2 (both v7x TensorCores busy) and pads
    the per-sequence length so each lane block is a multiple of 128 (full
    vregs, unmasked vst)."""
    bb = 1
    for cand in range(1, batch + 1):
        if batch % cand:
            continue
        if batch >= 2 and batch // cand < 2:
            continue
        if cand * seq_len > max_lanes:
            continue
        bb = cand
        if cand * seq_len >= target_lanes:
            break
    step = 128 // math.gcd(bb, 128)
    seq_len_pad = ((seq_len + step - 1) // step) * step
    return bb, seq_len_pad


# ----------------------------------------------------------------------------
# Wrapper.
# ----------------------------------------------------------------------------
def ts_encoder_forward(params, x, *, use_bf16=False):
    """Eval-mode TSEncoder forward.  x: (B, T, Din) f32 -> (B, T, Dout) f32.

    use_bf16=True casts weights / matmul activations to bf16 (f32 accumulate)
    for the 2x MXU rate on v6e/v7x."""
    B, T, Din = x.shape
    fc_w = params["fc_w"]                       # (H, Din), pre-transposed
    H = fc_w.shape[0]
    blocks = params["blocks"]
    Dout = blocks[-1]["w2"].shape[1]

    bb, t_pad = _fold_plan(B, T)
    L_blk = bb * t_pad
    grid = (B // bb,)

    # (B, T, Din) -> (Din, B, T_pad) -> (Din, B*T_pad): lane axis = time, so
    # the in/out DMAs and every in-kernel op are lane-dense.
    xt = jnp.transpose(x, (2, 0, 1))
    if t_pad != T:
        xt = jnp.pad(xt, ((0, 0), (0, 0), (0, t_pad - T)))
    xt = xt.reshape(Din, B * t_pad)

    wdt = jnp.bfloat16 if use_bf16 else jnp.float32
    cdt = wdt

    def const(shape):
        return pl.BlockSpec(shape, lambda i, _n=len(shape): (0,) * _n)

    args = [xt, fc_w.astype(wdt), params["fc_b"]]
    in_specs = [pl.BlockSpec((Din, L_blk), lambda i: (0, i)),
                const(fc_w.shape), const(params["fc_b"].shape)]

    block_meta = []
    for blk in blocks:
        has_proj = blk["pw"] is not None
        block_meta.append((blk["dilation"], has_proj))
        new_args = [blk["w1"].astype(wdt), blk["b1"],
                    blk["w2"].astype(wdt), blk["b2"]]
        if has_proj:
            new_args += [blk["pw"].astype(wdt), blk["pb"]]
        args += new_args
        in_specs += [const(a.shape) for a in new_args]

    kernel = functools.partial(
        _ts_encoder_kernel, block_meta=tuple(block_meta),
        seq_len=T, seq_len_pad=t_pad, cdt=cdt)

    # Explicit VMEM budget: double-buffered in/out blocks + weights + a
    # handful of live (Cmax, L) activations, with margin; clamped to a range
    # that is safe on v5e/v6e (128 MiB) and v7x (64 MiB).
    cmax = max(H, Dout, Din)
    est = (2 * (Din + Dout) * L_blk * 4
           + 2 * sum(int(a.size) * a.dtype.itemsize for a in args[1:])
           + 10 * cmax * L_blk * 4)
    vmem_limit = int(min(max(2 * est, 16 * 2 ** 20), 40 * 2 ** 20))

    out = pl.pallas_call(
        kernel,
        out_shape=jax.ShapeDtypeStruct((Dout, B * t_pad), jnp.float32),
        grid=grid,
        in_specs=in_specs,
        out_specs=pl.BlockSpec((Dout, L_blk), lambda i: (0, i)),
        compiler_params=pltpu.CompilerParams(
            dimension_semantics=("parallel",),
            vmem_limit_bytes=vmem_limit),
    )(*args)

    out = out.reshape(Dout, B, t_pad)[:, :, :T]
    return jnp.transpose(out, (1, 2, 0))


# ----------------------------------------------------------------------------
# Parameter init -- weights stored in kernel-ready layouts once, at init:
#   fc_w (H, Din); fc_b (H, 1); conv w (3, Cout, Cin) taps [t-d, t, t+d];
#   conv b (Cout, 1); projector pw (Cout, Cin), pb (Cout, 1).
# ----------------------------------------------------------------------------
def init_ts_encoder(key, input_dims, output_dims, hidden_dims, depth):
    channels = [hidden_dims] * depth + [output_dims]
    keys = iter(jax.random.split(key, 2 + 6 * len(channels)))

    def unif(k, shape, fan_in):
        bound = 1.0 / math.sqrt(fan_in)
        return jax.random.uniform(k, shape, jnp.float32, -bound, bound)

    params = {
        "fc_w": unif(next(keys), (hidden_dims, input_dims), input_dims),
        "fc_b": unif(next(keys), (hidden_dims, 1), input_dims),
        "blocks": [],
    }
    in_ch = hidden_dims
    for i, out_ch in enumerate(channels):
        final = i == len(channels) - 1
        has_proj = (in_ch != out_ch) or final
        blk = {
            "dilation": 2 ** i,
            "w1": unif(next(keys), (3, out_ch, in_ch), in_ch * 3),
            "b1": unif(next(keys), (out_ch, 1), in_ch * 3),
            "w2": unif(next(keys), (3, out_ch, out_ch), out_ch * 3),
            "b2": unif(next(keys), (out_ch, 1), out_ch * 3),
            "pw": unif(next(keys), (out_ch, in_ch), in_ch) if has_proj else None,
            "pb": unif(next(keys), (out_ch, 1), in_ch) if has_proj else None,
        }
        params["blocks"].append(blk)
        in_ch = out_ch
    return params


# ----------------------------------------------------------------------------
# Pure-JAX reference (exact erf GELU, XLA dilated conv).
# ----------------------------------------------------------------------------
def _ref_gelu(x):
    return 0.5 * x * (1.0 + jax.scipy.special.erf(x * _SQRT_HALF))


def _ref_conv(h, w, b, d):
    w_oih = jnp.transpose(w, (1, 2, 0))                        # (Cout, Cin, 3)
    out = lax.conv_general_dilated(
        h, w_oih, window_strides=(1,), padding=[(d, d)], rhs_dilation=(d,),
        dimension_numbers=("NCH", "OIH", "NCH"),
        precision=lax.Precision.HIGHEST)
    return out + b[None, :, :]


def ts_encoder_ref(params, x):
    nan_row = jnp.any(jnp.isnan(x), axis=-1, keepdims=True)
    x = jnp.where(nan_row, 0.0, x)
    h = jnp.einsum("btd,hd->bth", x, params["fc_w"],
                   precision=lax.Precision.HIGHEST) + params["fc_b"][:, 0]
    h = jnp.where(nan_row, 0.0, h)
    h = jnp.transpose(h, (0, 2, 1))                            # (B, H, T)
    for blk in params["blocks"]:
        if blk["pw"] is None:
            residual = h
        else:
            residual = jnp.einsum("oi,bit->bot", blk["pw"], h,
                                  precision=lax.Precision.HIGHEST) + blk["pb"][None]
        y = _ref_gelu(h)
        y = _ref_conv(y, blk["w1"], blk["b1"], blk["dilation"])
        y = _ref_gelu(y)
        y = _ref_conv(y, blk["w2"], blk["b2"], blk["dilation"])
        h = y + residual
    return jnp.transpose(h, (0, 2, 1))


if __name__ == "__main__":
    key = jax.random.PRNGKey(0)
    B, T = 8, 64
    input_dims, hidden_dims, output_dims, depth = 8, 32, 16, 3

    pkey, xkey = jax.random.split(key)
    params = init_ts_encoder(pkey, input_dims, output_dims, hidden_dims, depth)
    x = jax.random.normal(xkey, (B, T, input_dims), jnp.float32)
    # Inject NaNs to exercise the nan-masking path.
    x = x.at[0, 3, 2].set(jnp.nan)
    x = x.at[1, 10, :].set(jnp.nan)
    x = x.at[5, 63, 0].set(jnp.nan)

    # TODO(synk): repr_dropout (p=0.1) and training-mode random masks
    # ('binomial'/'continuous') are host-RNG / train-only; eval path implemented.
    out = jax.block_until_ready(ts_encoder_forward(params, x))
    assert out.shape == (B, T, output_dims), out.shape
    assert not bool(jnp.any(jnp.isnan(out)))

    ref = jax.block_until_ready(ts_encoder_ref(params, x))
    max_err = float(jnp.max(jnp.abs(out - ref)))
    # Tolerance covers the documented tanh-GELU approximation (~1e-3/value).
    assert max_err < 4e-2, f"max abs error vs reference: {max_err}"

    # bf16 MXU-operand fast path (v6e/v7x); f32 accumulation keeps it close.
    out_bf16 = jax.block_until_ready(ts_encoder_forward(params, x, use_bf16=True))
    bf16_err = float(jnp.max(jnp.abs(out_bf16 - out)))
    assert bf16_err < 0.3, f"bf16 path diverged from f32 path: {bf16_err}"

    print("KERNEL_OK")
</pallas_src>

<mosaic_0001>
module attributes {stable_mosaic.version = 11 : i64} {
  func.func @_ts_encoder_kernel(%arg0: i32, %arg1: memref<8x256xf32, #tpu.memory_space<vmem>>, %arg2: memref<32x8xf32, #tpu.memory_space<vmem>>, %arg3: memref<32x1xf32, #tpu.memory_space<vmem>>, %arg4: memref<3x32x32xf32, #tpu.memory_space<vmem>>, %arg5: memref<32x1xf32, #tpu.memory_space<vmem>>, %arg6: memref<3x32x32xf32, #tpu.memory_space<vmem>>, %arg7: memref<32x1xf32, #tpu.memory_space<vmem>>, %arg8: memref<3x32x32xf32, #tpu.memory_space<vmem>>, %arg9: memref<32x1xf32, #tpu.memory_space<vmem>>, %arg10: memref<3x32x32xf32, #tpu.memory_space<vmem>>, %arg11: memref<32x1xf32, #tpu.memory_space<vmem>>, %arg12: memref<3x32x32xf32, #tpu.memory_space<vmem>>, %arg13: memref<32x1xf32, #tpu.memory_space<vmem>>, %arg14: memref<3x32x32xf32, #tpu.memory_space<vmem>>, %arg15: memref<32x1xf32, #tpu.memory_space<vmem>>, %arg16: memref<3x16x32xf32, #tpu.memory_space<vmem>>, %arg17: memref<16x1xf32, #tpu.memory_space<vmem>>, %arg18: memref<3x16x16xf32, #tpu.memory_space<vmem>>, %arg19: memref<16x1xf32, #tpu.memory_space<vmem>>, %arg20: memref<16x32xf32, #tpu.memory_space<vmem>>, %arg21: memref<16x1xf32, #tpu.memory_space<vmem>>, %arg22: memref<16x256xf32, #tpu.memory_space<vmem>>) attributes {dimension_semantics = [#tpu.dimension_semantics<parallel>], iteration_bounds = array<i64: 2>, scalar_prefetch = 0 : i64, scratch_operands = 0 : i64, tpu.core_type = #tpu.core_type<tc>, window_params = [{transform_indices = @transform_0, window_bounds = array<i64: 8, 256>}, {pipeline_mode = #tpu.pipeline_mode<synchronous>, transform_indices = @transform_1, window_bounds = array<i64: 32, 8>}, {pipeline_mode = #tpu.pipeline_mode<synchronous>, transform_indices = @transform_2, window_bounds = array<i64: 32, 1>}, {pipeline_mode = #tpu.pipeline_mode<synchronous>, transform_indices = @transform_3, window_bounds = array<i64: 3, 32, 32>}, {pipeline_mode = #tpu.pipeline_mode<synchronous>, transform_indices = @transform_4, window_bounds = array<i64: 32, 1>}, {pipeline_mode = #tpu.pipeline_mode<synchronous>, transform_indices = @transform_5, window_bounds = array<i64: 3, 32, 32>}, {pipeline_mode = #tpu.pipeline_mode<synchronous>, transform_indices = @transform_6, window_bounds = array<i64: 32, 1>}, {pipeline_mode = #tpu.pipeline_mode<synchronous>, transform_indices = @transform_7, window_bounds = array<i64: 3, 32, 32>}, {pipeline_mode = #tpu.pipeline_mode<synchronous>, transform_indices = @transform_8, window_bounds = array<i64: 32, 1>}, {pipeline_mode = #tpu.pipeline_mode<synchronous>, transform_indices = @transform_9, window_bounds = array<i64: 3, 32, 32>}, {pipeline_mode = #tpu.pipeline_mode<synchronous>, transform_indices = @transform_10, window_bounds = array<i64: 32, 1>}, {pipeline_mode = #tpu.pipeline_mode<synchronous>, transform_indices = @transform_11, window_bounds = array<i64: 3, 32, 32>}, {pipeline_mode = #tpu.pipeline_mode<synchronous>, transform_indices = @transform_12, window_bounds = array<i64: 32, 1>}, {pipeline_mode = #tpu.pipeline_mode<synchronous>, transform_indices = @transform_13, window_bounds = array<i64: 3, 32, 32>}, {pipeline_mode = #tpu.pipeline_mode<synchronous>, transform_indices = @transform_14, window_bounds = array<i64: 32, 1>}, {pipeline_mode = #tpu.pipeline_mode<synchronous>, transform_indices = @transform_15, window_bounds = array<i64: 3, 16, 32>}, {pipeline_mode = #tpu.pipeline_mode<synchronous>, transform_indices = @transform_16, window_bounds = array<i64: 16, 1>}, {pipeline_mode = #tpu.pipeline_mode<synchronous>, transform_indices = @transform_17, window_bounds = array<i64: 3, 16, 16>}, {pipeline_mode = #tpu.pipeline_mode<synchronous>, transform_indices = @transform_18, window_bounds = array<i64: 16, 1>}, {pipeline_mode = #tpu.pipeline_mode<synchronous>, transform_indices = @transform_19, window_bounds = array<i64: 16, 32>}, {pipeline_mode = #tpu.pipeline_mode<synchronous>, transform_indices = @transform_20, window_bounds = array<i64: 16, 1>}, {transform_indices = @transform_21, window_bounds = array<i64: 16, 256>}]} {
    %0 = tpu.iota {dimensions = array<i32: 1>} : vector<1x256xi32>
    %c64_i32 = arith.constant 64 : i32
    %c0_i32 = arith.constant 0 : i32
    %1 = arith.cmpi eq, %c64_i32, %c0_i32 : i32
    %c1_i32 = arith.constant 1 : i32
    %2 = arith.select %1, %c1_i32, %c64_i32 : i32
    %3 = vector.broadcast %2 : i32 to vector<1x256xi32>
    %4 = arith.remsi %0, %3 : vector<1x256xi32>
    %c0_i32_0 = arith.constant 0 : i32
    %5 = vector.broadcast %c0_i32_0 : i32 to vector<1x256xi32>
    %6 = arith.cmpi ne, %4, %5 : vector<1x256xi32>
    %c0_i32_1 = arith.constant 0 : i32
    %7 = vector.broadcast %c0_i32_1 : i32 to vector<1x256xi32>
    %8 = arith.cmpi slt, %4, %7 : vector<1x256xi32>
    %c0_i32_2 = arith.constant 0 : i32
    %9 = arith.cmpi slt, %2, %c0_i32_2 : i32
    %10 = vector.broadcast %9 : i1 to vector<1x256xi1>
    %11 = vector.broadcast %10 : vector<1x256xi1> to vector<1x256xi1>
    %12 = arith.xori %8, %11 : vector<1x256xi1>
    %13 = arith.andi %12, %6 : vector<1x256xi1>
    %14 = vector.broadcast %2 : i32 to vector<1x256xi32>
    %15 = arith.addi %4, %14 : vector<1x256xi32>
    %16 = arith.select %13, %15, %4 : vector<1x256xi1>, vector<1x256xi32>
    %c1_i32_3 = arith.constant 1 : i32
    %17 = vector.broadcast %c1_i32_3 : i32 to vector<1x256xi32>
    %18 = arith.cmpi sge, %16, %17 : vector<1x256xi32>
    %19 = arith.extui %18 : vector<1x256xi1> to vector<1x256xi32>
    %20 = arith.sitofp %19 : vector<1x256xi32> to vector<1x256xf32>
    %c63_i32 = arith.constant 63 : i32
    %21 = vector.broadcast %c63_i32 : i32 to vector<1x256xi32>
    %22 = arith.cmpi slt, %16, %21 : vector<1x256xi32>
    %23 = arith.extui %22 : vector<1x256xi1> to vector<1x256xi32>
    %24 = arith.sitofp %23 : vector<1x256xi32> to vector<1x256xf32>
    %c2_i32 = arith.constant 2 : i32
    %25 = vector.broadcast %c2_i32 : i32 to vector<1x256xi32>
    %26 = arith.cmpi sge, %16, %25 : vector<1x256xi32>
    %27 = arith.extui %26 : vector<1x256xi1> to vector<1x256xi32>
    %28 = arith.sitofp %27 : vector<1x256xi32> to vector<1x256xf32>
    %c62_i32 = arith.constant 62 : i32
    %29 = vector.broadcast %c62_i32 : i32 to vector<1x256xi32>
    %30 = arith.cmpi slt, %16, %29 : vector<1x256xi32>
    %31 = arith.extui %30 : vector<1x256xi1> to vector<1x256xi32>
    %32 = arith.sitofp %31 : vector<1x256xi32> to vector<1x256xf32>
    %c4_i32 = arith.constant 4 : i32
    %33 = vector.broadcast %c4_i32 : i32 to vector<1x256xi32>
    %34 = arith.cmpi sge, %16, %33 : vector<1x256xi32>
    %35 = arith.extui %34 : vector<1x256xi1> to vector<1x256xi32>
    %36 = arith.sitofp %35 : vector<1x256xi32> to vector<1x256xf32>
    %c60_i32 = arith.constant 60 : i32
    %37 = vector.broadcast %c60_i32 : i32 to vector<1x256xi32>
    %38 = arith.cmpi slt, %16, %37 : vector<1x256xi32>
    %39 = arith.extui %38 : vector<1x256xi1> to vector<1x256xi32>
    %40 = arith.sitofp %39 : vector<1x256xi32> to vector<1x256xf32>
    %c8_i32 = arith.constant 8 : i32
    %41 = vector.broadcast %c8_i32 : i32 to vector<1x256xi32>
    %42 = arith.cmpi sge, %16, %41 : vector<1x256xi32>
    %43 = arith.extui %42 : vector<1x256xi1> to vector<1x256xi32>
    %44 = arith.sitofp %43 : vector<1x256xi32> to vector<1x256xf32>
    %c56_i32 = arith.constant 56 : i32
    %45 = vector.broadcast %c56_i32 : i32 to vector<1x256xi32>
    %46 = arith.cmpi slt, %16, %45 : vector<1x256xi32>
    %47 = arith.extui %46 : vector<1x256xi1> to vector<1x256xi32>
    %48 = arith.sitofp %47 : vector<1x256xi32> to vector<1x256xf32>
    %c0 = arith.constant 0 : index
    %c0_4 = arith.constant 0 : index
    %49 = vector.load %arg1[%c0, %c0_4] : memref<8x256xf32, #tpu.memory_space<vmem>>, vector<8x256xf32>
    %50 = arith.cmpf one, %49, %49 : vector<8x256xf32>
    %51 = arith.extui %50 : vector<8x256xi1> to vector<8x256xi32>
    %52 = arith.sitofp %51 : vector<8x256xi32> to vector<8x256xf32>
    %cst = arith.constant dense<0xFF800000> : vector<256xf32>
    %53 = vector.multi_reduction <maximumf>, %52, %cst [0] : vector<8x256xf32> to vector<256xf32>
    %54 = vector.shape_cast %53 : vector<256xf32> to vector<1x256xf32>
    %cst_5 = arith.constant 0.000000e+00 : f32
    %55 = vector.broadcast %cst_5 : f32 to vector<1x256xf32>
    %56 = arith.cmpf ogt, %54, %55 : vector<1x256xf32>
    %cst_6 = arith.constant 0.000000e+00 : f32
    %57 = vector.shape_cast %56 : vector<1x256xi1> to vector<1x256xi1>
    %58 = vector.broadcast %57 : vector<1x256xi1> to vector<8x256xi1>
    %59 = vector.broadcast %cst_6 : f32 to vector<8x256xf32>
    %60 = arith.select %58, %59, %49 : vector<8x256xi1>, vector<8x256xf32>
    %c0_7 = arith.constant 0 : index
    %c0_8 = arith.constant 0 : index
    %61 = vector.load %arg2[%c0_7, %c0_8] : memref<32x8xf32, #tpu.memory_space<vmem>>, vector<32x8xf32>
    %cst_9 = arith.constant dense<0.000000e+00> : vector<32x256xf32>
    %62 = tpu.matmul %61, %60, %cst_9 {dimension_numbers = #tpu.dot_dimension_numbers<[1], [0], [0], [1], [0, 0, 1, 1], [], []>} : vector<32x8xf32>, vector<8x256xf32>, vector<32x256xf32> -> vector<32x256xf32>
    %c0_10 = arith.constant 0 : index
    %c0_11 = arith.constant 0 : index
    %63 = vector.load %arg3[%c0_10, %c0_11] : memref<32x1xf32, #tpu.memory_space<vmem>>, vector<32x1xf32>
    %64 = vector.broadcast %63 : vector<32x1xf32> to vector<32x256xf32>
    %65 = arith.addf %62, %64 : vector<32x256xf32>
    %cst_12 = arith.constant 0.000000e+00 : f32
    %66 = vector.shape_cast %56 : vector<1x256xi1> to vector<1x256xi1>
    %67 = vector.broadcast %66 : vector<1x256xi1> to vector<32x256xi1>
    %68 = vector.broadcast %cst_12 : f32 to vector<32x256xf32>
    %69 = arith.select %67, %68, %65 : vector<32x256xi1>, vector<32x256xf32>
    %cst_13 = arith.constant 5.000000e-01 : f32
    %70 = vector.broadcast %cst_13 : f32 to vector<32x256xf32>
    %71 = arith.mulf %70, %69 : vector<32x256xf32>
    %cst_14 = arith.constant 4.471500e-02 : f32
    %72 = vector.broadcast %cst_14 : f32 to vector<32x256xf32>
    %73 = arith.mulf %72, %69 : vector<32x256xf32>
    %74 = arith.mulf %73, %69 : vector<32x256xf32>
    %75 = arith.mulf %74, %69 : vector<32x256xf32>
    %76 = arith.addf %69, %75 : vector<32x256xf32>
    %cst_15 = arith.constant 0.797884583 : f32
    %77 = vector.broadcast %cst_15 : f32 to vector<32x256xf32>
    %78 = arith.mulf %77, %76 : vector<32x256xf32>
    %79 = math.tanh %78 : vector<32x256xf32>
    %cst_16 = arith.constant 1.000000e+00 : f32
    %80 = vector.broadcast %cst_16 : f32 to vector<32x256xf32>
    %81 = arith.addf %80, %79 : vector<32x256xf32>
    %82 = arith.mulf %71, %81 : vector<32x256xf32>
    %c1 = arith.constant 1 : index
    %c0_17 = arith.constant 0 : index
    %c0_18 = arith.constant 0 : index
    %83 = vector.load %arg4[%c1, %c0_17, %c0_18] : memref<3x32x32xf32, #tpu.memory_space<vmem>>, vector<1x32x32xf32>
    %84 = vector.shape_cast %83 : vector<1x32x32xf32> to vector<32x32xf32>
    %cst_19 = arith.constant dense<0.000000e+00> : vector<32x256xf32>
    %85 = tpu.matmul %84, %82, %cst_19 {dimension_numbers = #tpu.dot_dimension_numbers<[1], [0], [0], [1], [0, 0, 1, 1], [], []>} : vector<32x32xf32>, vector<32x256xf32>, vector<32x256xf32> -> vector<32x256xf32>
    %c0_20 = arith.constant 0 : index
    %c0_21 = arith.constant 0 : index
    %c0_22 = arith.constant 0 : index
    %86 = vector.load %arg4[%c0_20, %c0_21, %c0_22] : memref<3x32x32xf32, #tpu.memory_space<vmem>>, vector<1x32x32xf32>
    %87 = vector.shape_cast %86 : vector<1x32x32xf32> to vector<32x32xf32>
    %c1_i32_23 = arith.constant 1 : i32
    %88 = tpu.dynamic_rotate %82 by %c1_i32_23 dim 1 : vector<32x256xf32>, i32 -> vector<32x256xf32>
    %89 = vector.broadcast %20 : vector<1x256xf32> to vector<32x256xf32>
    %90 = arith.mulf %88, %89 : vector<32x256xf32>
    %cst_24 = arith.constant dense<0.000000e+00> : vector<32x256xf32>
    %91 = tpu.matmul %87, %90, %cst_24 {dimension_numbers = #tpu.dot_dimension_numbers<[1], [0], [0], [1], [0, 0, 1, 1], [], []>} : vector<32x32xf32>, vector<32x256xf32>, vector<32x256xf32> -> vector<32x256xf32>
    %92 = arith.addf %85, %91 : vector<32x256xf32>
    %c2 = arith.constant 2 : index
    %c0_25 = arith.constant 0 : index
    %c0_26 = arith.constant 0 : index
    %93 = vector.load %arg4[%c2, %c0_25, %c0_26] : memref<3x32x32xf32, #tpu.memory_space<vmem>>, vector<1x32x32xf32>
    %94 = vector.shape_cast %93 : vector<1x32x32xf32> to vector<32x32xf32>
    %c255_i32 = arith.constant 255 : i32
    %95 = tpu.dynamic_rotate %82 by %c255_i32 dim 1 : vector<32x256xf32>, i32 -> vector<32x256xf32>
    %96 = vector.broadcast %24 : vector<1x256xf32> to vector<32x256xf32>
    %97 = arith.mulf %95, %96 : vector<32x256xf32>
    %cst_27 = arith.constant dense<0.000000e+00> : vector<32x256xf32>
    %98 = tpu.matmul %94, %97, %cst_27 {dimension_numbers = #tpu.dot_dimension_numbers<[1], [0], [0], [1], [0, 0, 1, 1], [], []>} : vector<32x32xf32>, vector<32x256xf32>, vector<32x256xf32> -> vector<32x256xf32>
    %99 = arith.addf %92, %98 : vector<32x256xf32>
    %c0_28 = arith.constant 0 : index
    %c0_29 = arith.constant 0 : index
    %100 = vector.load %arg5[%c0_28, %c0_29] : memref<32x1xf32, #tpu.memory_space<vmem>>, vector<32x1xf32>
    %101 = vector.broadcast %100 : vector<32x1xf32> to vector<32x256xf32>
    %102 = arith.addf %99, %101 : vector<32x256xf32>
    %cst_30 = arith.constant 5.000000e-01 : f32
    %103 = vector.broadcast %cst_30 : f32 to vector<32x256xf32>
    %104 = arith.mulf %103, %102 : vector<32x256xf32>
    %cst_31 = arith.constant 4.471500e-02 : f32
    %105 = vector.broadcast %cst_31 : f32 to vector<32x256xf32>
    %106 = arith.mulf %105, %102 : vector<32x256xf32>
    %107 = arith.mulf %106, %102 : vector<32x256xf32>
    %108 = arith.mulf %107, %102 : vector<32x256xf32>
    %109 = arith.addf %102, %108 : vector<32x256xf32>
    %cst_32 = arith.constant 0.797884583 : f32
    %110 = vector.broadcast %cst_32 : f32 to vector<32x256xf32>
    %111 = arith.mulf %110, %109 : vector<32x256xf32>
    %112 = math.tanh %111 : vector<32x256xf32>
    %cst_33 = arith.constant 1.000000e+00 : f32
    %113 = vector.broadcast %cst_33 : f32 to vector<32x256xf32>
    %114 = arith.addf %113, %112 : vector<32x256xf32>
    %115 = arith.mulf %104, %114 : vector<32x256xf32>
    %c1_34 = arith.constant 1 : index
    %c0_35 = arith.constant 0 : index
    %c0_36 = arith.constant 0 : index
    %116 = vector.load %arg6[%c1_34, %c0_35, %c0_36] : memref<3x32x32xf32, #tpu.memory_space<vmem>>, vector<1x32x32xf32>
    %117 = vector.shape_cast %116 : vector<1x32x32xf32> to vector<32x32xf32>
    %cst_37 = arith.constant dense<0.000000e+00> : vector<32x256xf32>
    %118 = tpu.matmul %117, %115, %cst_37 {dimension_numbers = #tpu.dot_dimension_numbers<[1], [0], [0], [1], [0, 0, 1, 1], [], []>} : vector<32x32xf32>, vector<32x256xf32>, vector<32x256xf32> -> vector<32x256xf32>
    %c0_38 = arith.constant 0 : index
    %c0_39 = arith.constant 0 : index
    %c0_40 = arith.constant 0 : index
    %119 = vector.load %arg6[%c0_38, %c0_39, %c0_40] : memref<3x32x32xf32, #tpu.memory_space<vmem>>, vector<1x32x32xf32>
    %120 = vector.shape_cast %119 : vector<1x32x32xf32> to vector<32x32xf32>
    %c1_i32_41 = arith.constant 1 : i32
    %121 = tpu.dynamic_rotate %115 by %c1_i32_41 dim 1 : vector<32x256xf32>, i32 -> vector<32x256xf32>
    %122 = vector.broadcast %20 : vector<1x256xf32> to vector<32x256xf32>
    %123 = arith.mulf %121, %122 : vector<32x256xf32>
    %cst_42 = arith.constant dense<0.000000e+00> : vector<32x256xf32>
    %124 = tpu.matmul %120, %123, %cst_42 {dimension_numbers = #tpu.dot_dimension_numbers<[1], [0], [0], [1], [0, 0, 1, 1], [], []>} : vector<32x32xf32>, vector<32x256xf32>, vector<32x256xf32> -> vector<32x256xf32>
    %125 = arith.addf %118, %124 : vector<32x256xf32>
    %c2_43 = arith.constant 2 : index
    %c0_44 = arith.constant 0 : index
    %c0_45 = arith.constant 0 : index
    %126 = vector.load %arg6[%c2_43, %c0_44, %c0_45] : memref<3x32x32xf32, #tpu.memory_space<vmem>>, vector<1x32x32xf32>
    %127 = vector.shape_cast %126 : vector<1x32x32xf32> to vector<32x32xf32>
    %c255_i32_46 = arith.constant 255 : i32
    %128 = tpu.dynamic_rotate %115 by %c255_i32_46 dim 1 : vector<32x256xf32>, i32 -> vector<32x256xf32>
    %129 = vector.broadcast %24 : vector<1x256xf32> to vector<32x256xf32>
    %130 = arith.mulf %128, %129 : vector<32x256xf32>
    %cst_47 = arith.constant dense<0.000000e+00> : vector<32x256xf32>
    %131 = tpu.matmul %127, %130, %cst_47 {dimension_numbers = #tpu.dot_dimension_numbers<[1], [0], [0], [1], [0, 0, 1, 1], [], []>} : vector<32x32xf32>, vector<32x256xf32>, vector<32x256xf32> -> vector<32x256xf32>
    %132 = arith.addf %125, %131 : vector<32x256xf32>
    %c0_48 = arith.constant 0 : index
    %c0_49 = arith.constant 0 : index
    %133 = vector.load %arg7[%c0_48, %c0_49] : memref<32x1xf32, #tpu.memory_space<vmem>>, vector<32x1xf32>
    %134 = vector.broadcast %133 : vector<32x1xf32> to vector<32x256xf32>
    %135 = arith.addf %132, %134 : vector<32x256xf32>
    %136 = arith.addf %135, %69 : vector<32x256xf32>
    %cst_50 = arith.constant 5.000000e-01 : f32
    %137 = vector.broadcast %cst_50 : f32 to vector<32x256xf32>
    %138 = arith.mulf %137, %136 : vector<32x256xf32>
    %cst_51 = arith.constant 4.471500e-02 : f32
    %139 = vector.broadcast %cst_51 : f32 to vector<32x256xf32>
    %140 = arith.mulf %139, %136 : vector<32x256xf32>
    %141 = arith.mulf %140, %136 : vector<32x256xf32>
    %142 = arith.mulf %141, %136 : vector<32x256xf32>
    %143 = arith.addf %136, %142 : vector<32x256xf32>
    %cst_52 = arith.constant 0.797884583 : f32
    %144 = vector.broadcast %cst_52 : f32 to vector<32x256xf32>
    %145 = arith.mulf %144, %143 : vector<32x256xf32>
    %146 = math.tanh %145 : vector<32x256xf32>
    %cst_53 = arith.constant 1.000000e+00 : f32
    %147 = vector.broadcast %cst_53 : f32 to vector<32x256xf32>
    %148 = arith.addf %147, %146 : vector<32x256xf32>
    %149 = arith.mulf %138, %148 : vector<32x256xf32>
    %c1_54 = arith.constant 1 : index
    %c0_55 = arith.constant 0 : index
    %c0_56 = arith.constant 0 : index
    %150 = vector.load %arg8[%c1_54, %c0_55, %c0_56] : memref<3x32x32xf32, #tpu.memory_space<vmem>>, vector<1x32x32xf32>
    %151 = vector.shape_cast %150 : vector<1x32x32xf32> to vector<32x32xf32>
    %cst_57 = arith.constant dense<0.000000e+00> : vector<32x256xf32>
    %152 = tpu.matmul %151, %149, %cst_57 {dimension_numbers = #tpu.dot_dimension_numbers<[1], [0], [0], [1], [0, 0, 1, 1], [], []>} : vector<32x32xf32>, vector<32x256xf32>, vector<32x256xf32> -> vector<32x256xf32>
    %c0_58 = arith.constant 0 : index
    %c0_59 = arith.constant 0 : index
    %c0_60 = arith.constant 0 : index
    %153 = vector.load %arg8[%c0_58, %c0_59, %c0_60] : memref<3x32x32xf32, #tpu.memory_space<vmem>>, vector<1x32x32xf32>
    %154 = vector.shape_cast %153 : vector<1x32x32xf32> to vector<32x32xf32>
    %c2_i32_61 = arith.constant 2 : i32
    %155 = tpu.dynamic_rotate %149 by %c2_i32_61 dim 1 : vector<32x256xf32>, i32 -> vector<32x256xf32>
    %156 = vector.broadcast %28 : vector<1x256xf32> to vector<32x256xf32>
    %157 = arith.mulf %155, %156 : vector<32x256xf32>
    %cst_62 = arith.constant dense<0.000000e+00> : vector<32x256xf32>
    %158 = tpu.matmul %154, %157, %cst_62 {dimension_numbers = #tpu.dot_dimension_numbers<[1], [0], [0], [1], [0, 0, 1, 1], [], []>} : vector<32x32xf32>, vector<32x256xf32>, vector<32x256xf32> -> vector<32x256xf32>
    %159 = arith.addf %152, %158 : vector<32x256xf32>
    %c2_63 = arith.constant 2 : index
    %c0_64 = arith.constant 0 : index
    %c0_65 = arith.constant 0 : index
    %160 = vector.load %arg8[%c2_63, %c0_64, %c0_65] : memref<3x32x32xf32, #tpu.memory_space<vmem>>, vector<1x32x32xf32>
    %161 = vector.shape_cast %160 : vector<1x32x32xf32> to vector<32x32xf32>
    %c254_i32 = arith.constant 254 : i32
    %162 = tpu.dynamic_rotate %149 by %c254_i32 dim 1 : vector<32x256xf32>, i32 -> vector<32x256xf32>
    %163 = vector.broadcast %32 : vector<1x256xf32> to vector<32x256xf32>
    %164 = arith.mulf %162, %163 : vector<32x256xf32>
    %cst_66 = arith.constant dense<0.000000e+00> : vector<32x256xf32>
    %165 = tpu.matmul %161, %164, %cst_66 {dimension_numbers = #tpu.dot_dimension_numbers<[1], [0], [0], [1], [0, 0, 1, 1], [], []>} : vector<32x32xf32>, vector<32x256xf32>, vector<32x256xf32> -> vector<32x256xf32>
    %166 = arith.addf %159, %165 : vector<32x256xf32>
    %c0_67 = arith.constant 0 : index
    %c0_68 = arith.constant 0 : index
    %167 = vector.load %arg9[%c0_67, %c0_68] : memref<32x1xf32, #tpu.memory_space<vmem>>, vector<32x1xf32>
    %168 = vector.broadcast %167 : vector<32x1xf32> to vector<32x256xf32>
    %169 = arith.addf %166, %168 : vector<32x256xf32>
    %cst_69 = arith.constant 5.000000e-01 : f32
    %170 = vector.broadcast %cst_69 : f32 to vector<32x256xf32>
    %171 = arith.mulf %170, %169 : vector<32x256xf32>
    %cst_70 = arith.constant 4.471500e-02 : f32
    %172 = vector.broadcast %cst_70 : f32 to vector<32x256xf32>
    %173 = arith.mulf %172, %169 : vector<32x256xf32>
    %174 = arith.mulf %173, %169 : vector<32x256xf32>
    %175 = arith.mulf %174, %169 : vector<32x256xf32>
    %176 = arith.addf %169, %175 : vector<32x256xf32>
    %cst_71 = arith.constant 0.797884583 : f32
    %177 = vector.broadcast %cst_71 : f32 to vector<32x256xf32>
    %178 = arith.mulf %177, %176 : vector<32x256xf32>
    %179 = math.tanh %178 : vector<32x256xf32>
    %cst_72 = arith.constant 1.000000e+00 : f32
    %180 = vector.broadcast %cst_72 : f32 to vector<32x256xf32>
    %181 = arith.addf %180, %179 : vector<32x256xf32>
    %182 = arith.mulf %171, %181 : vector<32x256xf32>
    %c1_73 = arith.constant 1 : index
    %c0_74 = arith.constant 0 : index
    %c0_75 = arith.constant 0 : index
    %183 = vector.load %arg10[%c1_73, %c0_74, %c0_75] : memref<3x32x32xf32, #tpu.memory_space<vmem>>, vector<1x32x32xf32>
    %184 = vector.shape_cast %183 : vector<1x32x32xf32> to vector<32x32xf32>
    %cst_76 = arith.constant dense<0.000000e+00> : vector<32x256xf32>
    %185 = tpu.matmul %184, %182, %cst_76 {dimension_numbers = #tpu.dot_dimension_numbers<[1], [0], [0], [1], [0, 0, 1, 1], [], []>} : vector<32x32xf32>, vector<32x256xf32>, vector<32x256xf32> -> vector<32x256xf32>
    %c0_77 = arith.constant 0 : index
    %c0_78 = arith.constant 0 : index
    %c0_79 = arith.constant 0 : index
    %186 = vector.load %arg10[%c0_77, %c0_78, %c0_79] : memref<3x32x32xf32, #tpu.memory_space<vmem>>, vector<1x32x32xf32>
    %187 = vector.shape_cast %186 : vector<1x32x32xf32> to vector<32x32xf32>
    %c2_i32_80 = arith.constant 2 : i32
    %188 = tpu.dynamic_rotate %182 by %c2_i32_80 dim 1 : vector<32x256xf32>, i32 -> vector<32x256xf32>
    %189 = vector.broadcast %28 : vector<1x256xf32> to vector<32x256xf32>
    %190 = arith.mulf %188, %189 : vector<32x256xf32>
    %cst_81 = arith.constant dense<0.000000e+00> : vector<32x256xf32>
    %191 = tpu.matmul %187, %190, %cst_81 {dimension_numbers = #tpu.dot_dimension_numbers<[1], [0], [0], [1], [0, 0, 1, 1], [], []>} : vector<32x32xf32>, vector<32x256xf32>, vector<32x256xf32> -> vector<32x256xf32>
    %192 = arith.addf %185, %191 : vector<32x256xf32>
    %c2_82 = arith.constant 2 : index
    %c0_83 = arith.constant 0 : index
    %c0_84 = arith.constant 0 : index
    %193 = vector.load %arg10[%c2_82, %c0_83, %c0_84] : memref<3x32x32xf32, #tpu.memory_space<vmem>>, vector<1x32x32xf32>
    %194 = vector.shape_cast %193 : vector<1x32x32xf32> to vector<32x32xf32>
    %c254_i32_85 = arith.constant 254 : i32
    %195 = tpu.dynamic_rotate %182 by %c254_i32_85 dim 1 : vector<32x256xf32>, i32 -> vector<32x256xf32>
    %196 = vector.broadcast %32 : vector<1x256xf32> to vector<32x256xf32>
    %197 = arith.mulf %195, %196 : vector<32x256xf32>
    %cst_86 = arith.constant dense<0.000000e+00> : vector<32x256xf32>
    %198 = tpu.matmul %194, %197, %cst_86 {dimension_numbers = #tpu.dot_dimension_numbers<[1], [0], [0], [1], [0, 0, 1, 1], [], []>} : vector<32x32xf32>, vector<32x256xf32>, vector<32x256xf32> -> vector<32x256xf32>
    %199 = arith.addf %192, %198 : vector<32x256xf32>
    %c0_87 = arith.constant 0 : index
    %c0_88 = arith.constant 0 : index
    %200 = vector.load %arg11[%c0_87, %c0_88] : memref<32x1xf32, #tpu.memory_space<vmem>>, vector<32x1xf32>
    %201 = vector.broadcast %200 : vector<32x1xf32> to vector<32x256xf32>
    %202 = arith.addf %199, %201 : vector<32x256xf32>
    %203 = arith.addf %202, %136 : vector<32x256xf32>
    %cst_89 = arith.constant 5.000000e-01 : f32
    %204 = vector.broadcast %cst_89 : f32 to vector<32x256xf32>
    %205 = arith.mulf %204, %203 : vector<32x256xf32>
    %cst_90 = arith.constant 4.471500e-02 : f32
    %206 = vector.broadcast %cst_90 : f32 to vector<32x256xf32>
    %207 = arith.mulf %206, %203 : vector<32x256xf32>
    %208 = arith.mulf %207, %203 : vector<32x256xf32>
    %209 = arith.mulf %208, %203 : vector<32x256xf32>
    %210 = arith.addf %203, %209 : vector<32x256xf32>
    %cst_91 = arith.constant 0.797884583 : f32
    %211 = vector.broadcast %cst_91 : f32 to vector<32x256xf32>
    %212 = arith.mulf %211, %210 : vector<32x256xf32>
    %213 = math.tanh %212 : vector<32x256xf32>
    %cst_92 = arith.constant 1.000000e+00 : f32
    %214 = vector.broadcast %cst_92 : f32 to vector<32x256xf32>
    %215 = arith.addf %214, %213 : vector<32x256xf32>
    %216 = arith.mulf %205, %215 : vector<32x256xf32>
    %c1_93 = arith.constant 1 : index
    %c0_94 = arith.constant 0 : index
    %c0_95 = arith.constant 0 : index
    %217 = vector.load %arg12[%c1_93, %c0_94, %c0_95] : memref<3x32x32xf32, #tpu.memory_space<vmem>>, vector<1x32x32xf32>
    %218 = vector.shape_cast %217 : vector<1x32x32xf32> to vector<32x32xf32>
    %cst_96 = arith.constant dense<0.000000e+00> : vector<32x256xf32>
    %219 = tpu.matmul %218, %216, %cst_96 {dimension_numbers = #tpu.dot_dimension_numbers<[1], [0], [0], [1], [0, 0, 1, 1], [], []>} : vector<32x32xf32>, vector<32x256xf32>, vector<32x256xf32> -> vector<32x256xf32>
    %c0_97 = arith.constant 0 : index
    %c0_98 = arith.constant 0 : index
    %c0_99 = arith.constant 0 : index
    %220 = vector.load %arg12[%c0_97, %c0_98, %c0_99] : memref<3x32x32xf32, #tpu.memory_space<vmem>>, vector<1x32x32xf32>
    %221 = vector.shape_cast %220 : vector<1x32x32xf32> to vector<32x32xf32>
    %c4_i32_100 = arith.constant 4 : i32
    %222 = tpu.dynamic_rotate %216 by %c4_i32_100 dim 1 : vector<32x256xf32>, i32 -> vector<32x256xf32>
    %223 = vector.broadcast %36 : vector<1x256xf32> to vector<32x256xf32>
    %224 = arith.mulf %222, %223 : vector<32x256xf32>
    %cst_101 = arith.constant dense<0.000000e+00> : vector<32x256xf32>
    %225 = tpu.matmul %221, %224, %cst_101 {dimension_numbers = #tpu.dot_dimension_numbers<[1], [0], [0], [1], [0, 0, 1, 1], [], []>} : vector<32x32xf32>, vector<32x256xf32>, vector<32x256xf32> -> vector<32x256xf32>
    %226 = arith.addf %219, %225 : vector<32x256xf32>
    %c2_102 = arith.constant 2 : index
    %c0_103 = arith.constant 0 : index
    %c0_104 = arith.constant 0 : index
    %227 = vector.load %arg12[%c2_102, %c0_103, %c0_104] : memref<3x32x32xf32, #tpu.memory_space<vmem>>, vector<1x32x32xf32>
    %228 = vector.shape_cast %227 : vector<1x32x32xf32> to vector<32x32xf32>
    %c252_i32 = arith.constant 252 : i32
    %229 = tpu.dynamic_rotate %216 by %c252_i32 dim 1 : vector<32x256xf32>, i32 -> vector<32x256xf32>
    %230 = vector.broadcast %40 : vector<1x256xf32> to vector<32x256xf32>
    %231 = arith.mulf %229, %230 : vector<32x256xf32>
    %cst_105 = arith.constant dense<0.000000e+00> : vector<32x256xf32>
    %232 = tpu.matmul %228, %231, %cst_105 {dimension_numbers = #tpu.dot_dimension_numbers<[1], [0], [0], [1], [0, 0, 1, 1], [], []>} : vector<32x32xf32>, vector<32x256xf32>, vector<32x256xf32> -> vector<32x256xf32>
    %233 = arith.addf %226, %232 : vector<32x256xf32>
    %c0_106 = arith.constant 0 : index
    %c0_107 = arith.constant 0 : index
    %234 = vector.load %arg13[%c0_106, %c0_107] : memref<32x1xf32, #tpu.memory_space<vmem>>, vector<32x1xf32>
    %235 = vector.broadcast %234 : vector<32x1xf32> to vector<32x256xf32>
    %236 = arith.addf %233, %235 : vector<32x256xf32>
    %cst_108 = arith.constant 5.000000e-01 : f32
    %237 = vector.broadcast %cst_108 : f32 to vector<32x256xf32>
    %238 = arith.mulf %237, %236 : vector<32x256xf32>
    %cst_109 = arith.constant 4.471500e-02 : f32
    %239 = vector.broadcast %cst_109 : f32 to vector<32x256xf32>
    %240 = arith.mulf %239, %236 : vector<32x256xf32>
    %241 = arith.mulf %240, %236 : vector<32x256xf32>
    %242 = arith.mulf %241, %236 : vector<32x256xf32>
    %243 = arith.addf %236, %242 : vector<32x256xf32>
    %cst_110 = arith.constant 0.797884583 : f32
    %244 = vector.broadcast %cst_110 : f32 to vector<32x256xf32>
    %245 = arith.mulf %244, %243 : vector<32x256xf32>
    %246 = math.tanh %245 : vector<32x256xf32>
    %cst_111 = arith.constant 1.000000e+00 : f32
    %247 = vector.broadcast %cst_111 : f32 to vector<32x256xf32>
    %248 = arith.addf %247, %246 : vector<32x256xf32>
    %249 = arith.mulf %238, %248 : vector<32x256xf32>
    %c1_112 = arith.constant 1 : index
    %c0_113 = arith.constant 0 : index
    %c0_114 = arith.constant 0 : index
    %250 = vector.load %arg14[%c1_112, %c0_113, %c0_114] : memref<3x32x32xf32, #tpu.memory_space<vmem>>, vector<1x32x32xf32>
    %251 = vector.shape_cast %250 : vector<1x32x32xf32> to vector<32x32xf32>
    %cst_115 = arith.constant dense<0.000000e+00> : vector<32x256xf32>
    %252 = tpu.matmul %251, %249, %cst_115 {dimension_numbers = #tpu.dot_dimension_numbers<[1], [0], [0], [1], [0, 0, 1, 1], [], []>} : vector<32x32xf32>, vector<32x256xf32>, vector<32x256xf32> -> vector<32x256xf32>
    %c0_116 = arith.constant 0 : index
    %c0_117 = arith.constant 0 : index
    %c0_118 = arith.constant 0 : index
    %253 = vector.load %arg14[%c0_116, %c0_117, %c0_118] : memref<3x32x32xf32, #tpu.memory_space<vmem>>, vector<1x32x32xf32>
    %254 = vector.shape_cast %253 : vector<1x32x32xf32> to vector<32x32xf32>
    %c4_i32_119 = arith.constant 4 : i32
    %255 = tpu.dynamic_rotate %249 by %c4_i32_119 dim 1 : vector<32x256xf32>, i32 -> vector<32x256xf32>
    %256 = vector.broadcast %36 : vector<1x256xf32> to vector<32x256xf32>
    %257 = arith.mulf %255, %256 : vector<32x256xf32>
    %cst_120 = arith.constant dense<0.000000e+00> : vector<32x256xf32>
    %258 = tpu.matmul %254, %257, %cst_120 {dimension_numbers = #tpu.dot_dimension_numbers<[1], [0], [0], [1], [0, 0, 1, 1], [], []>} : vector<32x32xf32>, vector<32x256xf32>, vector<32x256xf32> -> vector<32x256xf32>
    %259 = arith.addf %252, %258 : vector<32x256xf32>
    %c2_121 = arith.constant 2 : index
    %c0_122 = arith.constant 0 : index
    %c0_123 = arith.constant 0 : index
    %260 = vector.load %arg14[%c2_121, %c0_122, %c0_123] : memref<3x32x32xf32, #tpu.memory_space<vmem>>, vector<1x32x32xf32>
    %261 = vector.shape_cast %260 : vector<1x32x32xf32> to vector<32x32xf32>
    %c252_i32_124 = arith.constant 252 : i32
    %262 = tpu.dynamic_rotate %249 by %c252_i32_124 dim 1 : vector<32x256xf32>, i32 -> vector<32x256xf32>
    %263 = vector.broadcast %40 : vector<1x256xf32> to vector<32x256xf32>
    %264 = arith.mulf %262, %263 : vector<32x256xf32>
    %cst_125 = arith.constant dense<0.000000e+00> : vector<32x256xf32>
    %265 = tpu.matmul %261, %264, %cst_125 {dimension_numbers = #tpu.dot_dimension_numbers<[1], [0], [0], [1], [0, 0, 1, 1], [], []>} : vector<32x32xf32>, vector<32x256xf32>, vector<32x256xf32> -> vector<32x256xf32>
    %266 = arith.addf %259, %265 : vector<32x256xf32>
    %c0_126 = arith.constant 0 : index
    %c0_127 = arith.constant 0 : index
    %267 = vector.load %arg15[%c0_126, %c0_127] : memref<32x1xf32, #tpu.memory_space<vmem>>, vector<32x1xf32>
    %268 = vector.broadcast %267 : vector<32x1xf32> to vector<32x256xf32>
    %269 = arith.addf %266, %268 : vector<32x256xf32>
    %270 = arith.addf %269, %203 : vector<32x256xf32>
    %c0_128 = arith.constant 0 : index
    %c0_129 = arith.constant 0 : index
    %271 = vector.load %arg20[%c0_128, %c0_129] : memref<16x32xf32, #tpu.memory_space<vmem>>, vector<16x32xf32>
    %cst_130 = arith.constant dense<0.000000e+00> : vector<16x256xf32>
    %272 = tpu.matmul %271, %270, %cst_130 {dimension_numbers = #tpu.dot_dimension_numbers<[1], [0], [0], [1], [0, 0, 1, 1], [], []>} : vector<16x32xf32>, vector<32x256xf32>, vector<16x256xf32> -> vector<16x256xf32>
    %c0_131 = arith.constant 0 : index
    %c0_132 = arith.constant 0 : index
    %273 = vector.load %arg21[%c0_131, %c0_132] : memref<16x1xf32, #tpu.memory_space<vmem>>, vector<16x1xf32>
    %274 = vector.broadcast %273 : vector<16x1xf32> to vector<16x256xf32>
    %275 = arith.addf %272, %274 : vector<16x256xf32>
    %cst_133 = arith.constant 5.000000e-01 : f32
    %276 = vector.broadcast %cst_133 : f32 to vector<32x256xf32>
    %277 = arith.mulf %276, %270 : vector<32x256xf32>
    %cst_134 = arith.constant 4.471500e-02 : f32
    %278 = vector.broadcast %cst_134 : f32 to vector<32x256xf32>
    %279 = arith.mulf %278, %270 : vector<32x256xf32>
    %280 = arith.mulf %279, %270 : vector<32x256xf32>
    %281 = arith.mulf %280, %270 : vector<32x256xf32>
    %282 = arith.addf %270, %281 : vector<32x256xf32>
    %cst_135 = arith.constant 0.797884583 : f32
    %283 = vector.broadcast %cst_135 : f32 to vector<32x256xf32>
    %284 = arith.mulf %283, %282 : vector<32x256xf32>
    %285 = math.tanh %284 : vector<32x256xf32>
    %cst_136 = arith.constant 1.000000e+00 : f32
    %286 = vector.broadcast %cst_136 : f32 to vector<32x256xf32>
    %287 = arith.addf %286, %285 : vector<32x256xf32>
    %288 = arith.mulf %277, %287 : vector<32x256xf32>
    %c1_137 = arith.constant 1 : index
    %c0_138 = arith.constant 0 : index
    %c0_139 = arith.constant 0 : index
    %289 = vector.load %arg16[%c1_137, %c0_138, %c0_139] : memref<3x16x32xf32, #tpu.memory_space<vmem>>, vector<1x16x32xf32>
    %290 = vector.shape_cast %289 : vector<1x16x32xf32> to vector<16x32xf32>
    %cst_140 = arith.constant dense<0.000000e+00> : vector<16x256xf32>
    %291 = tpu.matmul %290, %288, %cst_140 {dimension_numbers = #tpu.dot_dimension_numbers<[1], [0], [0], [1], [0, 0, 1, 1], [], []>} : vector<16x32xf32>, vector<32x256xf32>, vector<16x256xf32> -> vector<16x256xf32>
    %c0_141 = arith.constant 0 : index
    %c0_142 = arith.constant 0 : index
    %c0_143 = arith.constant 0 : index
    %292 = vector.load %arg16[%c0_141, %c0_142, %c0_143] : memref<3x16x32xf32, #tpu.memory_space<vmem>>, vector<1x16x32xf32>
    %293 = vector.shape_cast %292 : vector<1x16x32xf32> to vector<16x32xf32>
    %c8_i32_144 = arith.constant 8 : i32
    %294 = tpu.dynamic_rotate %288 by %c8_i32_144 dim 1 : vector<32x256xf32>, i32 -> vector<32x256xf32>
    %295 = vector.broadcast %44 : vector<1x256xf32> to vector<32x256xf32>
    %296 = arith.mulf %294, %295 : vector<32x256xf32>
    %cst_145 = arith.constant dense<0.000000e+00> : vector<16x256xf32>
    %297 = tpu.matmul %293, %296, %cst_145 {dimension_numbers = #tpu.dot_dimension_numbers<[1], [0], [0], [1], [0, 0, 1, 1], [], []>} : vector<16x32xf32>, vector<32x256xf32>, vector<16x256xf32> -> vector<16x256xf32>
    %298 = arith.addf %291, %297 : vector<16x256xf32>
    %c2_146 = arith.constant 2 : index
    %c0_147 = arith.constant 0 : index
    %c0_148 = arith.constant 0 : index
    %299 = vector.load %arg16[%c2_146, %c0_147, %c0_148] : memref<3x16x32xf32, #tpu.memory_space<vmem>>, vector<1x16x32xf32>
    %300 = vector.shape_cast %299 : vector<1x16x32xf32> to vector<16x32xf32>
    %c248_i32 = arith.constant 248 : i32
    %301 = tpu.dynamic_rotate %288 by %c248_i32 dim 1 : vector<32x256xf32>, i32 -> vector<32x256xf32>
    %302 = vector.broadcast %48 : vector<1x256xf32> to vector<32x256xf32>
    %303 = arith.mulf %301, %302 : vector<32x256xf32>
    %cst_149 = arith.constant dense<0.000000e+00> : vector<16x256xf32>
    %304 = tpu.matmul %300, %303, %cst_149 {dimension_numbers = #tpu.dot_dimension_numbers<[1], [0], [0], [1], [0, 0, 1, 1], [], []>} : vector<16x32xf32>, vector<32x256xf32>, vector<16x256xf32> -> vector<16x256xf32>
    %305 = arith.addf %298, %304 : vector<16x256xf32>
    %c0_150 = arith.constant 0 : index
    %c0_151 = arith.constant 0 : index
    %306 = vector.load %arg17[%c0_150, %c0_151] : memref<16x1xf32, #tpu.memory_space<vmem>>, vector<16x1xf32>
    %307 = vector.broadcast %306 : vector<16x1xf32> to vector<16x256xf32>
    %308 = arith.addf %305, %307 : vector<16x256xf32>
    %cst_152 = arith.constant 5.000000e-01 : f32
    %309 = vector.broadcast %cst_152 : f32 to vector<16x256xf32>
    %310 = arith.mulf %309, %308 : vector<16x256xf32>
    %cst_153 = arith.constant 4.471500e-02 : f32
    %311 = vector.broadcast %cst_153 : f32 to vector<16x256xf32>
    %312 = arith.mulf %311, %308 : vector<16x256xf32>
    %313 = arith.mulf %312, %308 : vector<16x256xf32>
    %314 = arith.mulf %313, %308 : vector<16x256xf32>
    %315 = arith.addf %308, %314 : vector<16x256xf32>
    %cst_154 = arith.constant 0.797884583 : f32
    %316 = vector.broadcast %cst_154 : f32 to vector<16x256xf32>
    %317 = arith.mulf %316, %315 : vector<16x256xf32>
    %318 = math.tanh %317 : vector<16x256xf32>
    %cst_155 = arith.constant 1.000000e+00 : f32
    %319 = vector.broadcast %cst_155 : f32 to vector<16x256xf32>
    %320 = arith.addf %319, %318 : vector<16x256xf32>
    %321 = arith.mulf %310, %320 : vector<16x256xf32>
    %c1_156 = arith.constant 1 : index
    %c0_157 = arith.constant 0 : index
    %c0_158 = arith.constant 0 : index
    %322 = vector.load %arg18[%c1_156, %c0_157, %c0_158] : memref<3x16x16xf32, #tpu.memory_space<vmem>>, vector<1x16x16xf32>
    %323 = vector.shape_cast %322 : vector<1x16x16xf32> to vector<16x16xf32>
    %cst_159 = arith.constant dense<0.000000e+00> : vector<16x256xf32>
    %324 = tpu.matmul %323, %321, %cst_159 {dimension_numbers = #tpu.dot_dimension_numbers<[1], [0], [0], [1], [0, 0, 1, 1], [], []>} : vector<16x16xf32>, vector<16x256xf32>, vector<16x256xf32> -> vector<16x256xf32>
    %c0_160 = arith.constant 0 : index
    %c0_161 = arith.constant 0 : index
    %c0_162 = arith.constant 0 : index
    %325 = vector.load %arg18[%c0_160, %c0_161, %c0_162] : memref<3x16x16xf32, #tpu.memory_space<vmem>>, vector<1x16x16xf32>
    %326 = vector.shape_cast %325 : vector<1x16x16xf32> to vector<16x16xf32>
    %c8_i32_163 = arith.constant 8 : i32
    %327 = tpu.dynamic_rotate %321 by %c8_i32_163 dim 1 : vector<16x256xf32>, i32 -> vector<16x256xf32>
    %328 = vector.broadcast %44 : vector<1x256xf32> to vector<16x256xf32>
    %329 = arith.mulf %327, %328 : vector<16x256xf32>
    %cst_164 = arith.constant dense<0.000000e+00> : vector<16x256xf32>
    %330 = tpu.matmul %326, %329, %cst_164 {dimension_numbers = #tpu.dot_dimension_numbers<[1], [0], [0], [1], [0, 0, 1, 1], [], []>} : vector<16x16xf32>, vector<16x256xf32>, vector<16x256xf32> -> vector<16x256xf32>
    %331 = arith.addf %324, %330 : vector<16x256xf32>
    %c2_165 = arith.constant 2 : index
    %c0_166 = arith.constant 0 : index
    %c0_167 = arith.constant 0 : index
    %332 = vector.load %arg18[%c2_165, %c0_166, %c0_167] : memref<3x16x16xf32, #tpu.memory_space<vmem>>, vector<1x16x16xf32>
    %333 = vector.shape_cast %332 : vector<1x16x16xf32> to vector<16x16xf32>
    %c248_i32_168 = arith.constant 248 : i32
    %334 = tpu.dynamic_rotate %321 by %c248_i32_168 dim 1 : vector<16x256xf32>, i32 -> vector<16x256xf32>
    %335 = vector.broadcast %48 : vector<1x256xf32> to vector<16x256xf32>
    %336 = arith.mulf %334, %335 : vector<16x256xf32>
    %cst_169 = arith.constant dense<0.000000e+00> : vector<16x256xf32>
    %337 = tpu.matmul %333, %336, %cst_169 {dimension_numbers = #tpu.dot_dimension_numbers<[1], [0], [0], [1], [0, 0, 1, 1], [], []>} : vector<16x16xf32>, vector<16x256xf32>, vector<16x256xf32> -> vector<16x256xf32>
    %338 = arith.addf %331, %337 : vector<16x256xf32>
    %c0_170 = arith.constant 0 : index
    %c0_171 = arith.constant 0 : index
    %339 = vector.load %arg19[%c0_170, %c0_171] : memref<16x1xf32, #tpu.memory_space<vmem>>, vector<16x1xf32>
    %340 = vector.broadcast %339 : vector<16x1xf32> to vector<16x256xf32>
    %341 = arith.addf %338, %340 : vector<16x256xf32>
    %342 = arith.addf %341, %275 : vector<16x256xf32>
    %c0_172 = arith.constant 0 : index
    %c0_173 = arith.constant 0 : index
    %343 = vector.load %arg22[%c0_172, %c0_173] : memref<16x256xf32, #tpu.memory_space<vmem>>, vector<16x256xf32>
    tpu.vector_store %arg22[%c0_172, %c0_173], %342 {strides = array<i32>} : memref<16x256xf32, #tpu.memory_space<vmem>>, vector<16x256xf32>,
    return
  }
  func.func @transform_0(%arg0: i32) -> (i32, i32) {
    %c0_i32 = arith.constant 0 : i32
    %c0_i32_0 = arith.constant 0 : i32
    return %c0_i32, %arg0 : i32, i32
  }
  func.func @transform_1(%arg0: i32) -> (i32, i32) {
    %c0_i32 = arith.constant 0 : i32
    %c0_i32_0 = arith.constant 0 : i32
    %c0_i32_1 = arith.constant 0 : i32
    return %c0_i32, %c0_i32_0 : i32, i32
  }
  func.func @transform_2(%arg0: i32) -> (i32, i32) {
    %c0_i32 = arith.constant 0 : i32
    %c0_i32_0 = arith.constant 0 : i32
    %c0_i32_1 = arith.constant 0 : i32
    return %c0_i32, %c0_i32_0 : i32, i32
  }
  func.func @transform_3(%arg0: i32) -> (i32, i32, i32) {
    %c0_i32 = arith.constant 0 : i32
    %c0_i32_0 = arith.constant 0 : i32
    %c0_i32_1 = arith.constant 0 : i32
    %c0_i32_2 = arith.constant 0 : i32
    return %c0_i32, %c0_i32_0, %c0_i32_1 : i32, i32, i32
  }
  func.func @transform_4(%arg0: i32) -> (i32, i32) {
    %c0_i32 = arith.constant 0 : i32
    %c0_i32_0 = arith.constant 0 : i32
    %c0_i32_1 = arith.constant 0 : i32
    return %c0_i32, %c0_i32_0 : i32, i32
  }
  func.func @transform_5(%arg0: i32) -> (i32, i32, i32) {
    %c0_i32 = arith.constant 0 : i32
    %c0_i32_0 = arith.constant 0 : i32
    %c0_i32_1 = arith.constant 0 : i32
    %c0_i32_2 = arith.constant 0 : i32
    return %c0_i32, %c0_i32_0, %c0_i32_1 : i32, i32, i32
  }
  func.func @transform_6(%arg0: i32) -> (i32, i32) {
    %c0_i32 = arith.constant 0 : i32
    %c0_i32_0 = arith.constant 0 : i32
    %c0_i32_1 = arith.constant 0 : i32
    return %c0_i32, %c0_i32_0 : i32, i32
  }
  func.func @transform_7(%arg0: i32) -> (i32, i32, i32) {
    %c0_i32 = arith.constant 0 : i32
    %c0_i32_0 = arith.constant 0 : i32
    %c0_i32_1 = arith.constant 0 : i32
    %c0_i32_2 = arith.constant 0 : i32
    return %c0_i32, %c0_i32_0, %c0_i32_1 : i32, i32, i32
  }
  func.func @transform_8(%arg0: i32) -> (i32, i32) {
    %c0_i32 = arith.constant 0 : i32
    %c0_i32_0 = arith.constant 0 : i32
    %c0_i32_1 = arith.constant 0 : i32
    return %c0_i32, %c0_i32_0 : i32, i32
  }
  func.func @transform_9(%arg0: i32) -> (i32, i32, i32) {
    %c0_i32 = arith.constant 0 : i32
    %c0_i32_0 = arith.constant 0 : i32
    %c0_i32_1 = arith.constant 0 : i32
    %c0_i32_2 = arith.constant 0 : i32
    return %c0_i32, %c0_i32_0, %c0_i32_1 : i32, i32, i32
  }
  func.func @transform_10(%arg0: i32) -> (i32, i32) {
    %c0_i32 = arith.constant 0 : i32
    %c0_i32_0 = arith.constant 0 : i32
    %c0_i32_1 = arith.constant 0 : i32
    return %c0_i32, %c0_i32_0 : i32, i32
  }
  func.func @transform_11(%arg0: i32) -> (i32, i32, i32) {
    %c0_i32 = arith.constant 0 : i32
    %c0_i32_0 = arith.constant 0 : i32
    %c0_i32_1 = arith.constant 0 : i32
    %c0_i32_2 = arith.constant 0 : i32
    return %c0_i32, %c0_i32_0, %c0_i32_1 : i32, i32, i32
  }
  func.func @transform_12(%arg0: i32) -> (i32, i32) {
    %c0_i32 = arith.constant 0 : i32
    %c0_i32_0 = arith.constant 0 : i32
    %c0_i32_1 = arith.constant 0 : i32
    return %c0_i32, %c0_i32_0 : i32, i32
  }
  func.func @transform_13(%arg0: i32) -> (i32, i32, i32) {
    %c0_i32 = arith.constant 0 : i32
    %c0_i32_0 = arith.constant 0 : i32
    %c0_i32_1 = arith.constant 0 : i32
    %c0_i32_2 = arith.constant 0 : i32
    return %c0_i32, %c0_i32_0, %c0_i32_1 : i32, i32, i32
  }
  func.func @transform_14(%arg0: i32) -> (i32, i32) {
    %c0_i32 = arith.constant 0 : i32
    %c0_i32_0 = arith.constant 0 : i32
    %c0_i32_1 = arith.constant 0 : i32
    return %c0_i32, %c0_i32_0 : i32, i32
  }
  func.func @transform_15(%arg0: i32) -> (i32, i32, i32) {
    %c0_i32 = arith.constant 0 : i32
    %c0_i32_0 = arith.constant 0 : i32
    %c0_i32_1 = arith.constant 0 : i32
    %c0_i32_2 = arith.constant 0 : i32
    return %c0_i32, %c0_i32_0, %c0_i32_1 : i32, i32, i32
  }
  func.func @transform_16(%arg0: i32) -> (i32, i32) {
    %c0_i32 = arith.constant 0 : i32
    %c0_i32_0 = arith.constant 0 : i32
    %c0_i32_1 = arith.constant 0 : i32
    return %c0_i32, %c0_i32_0 : i32, i32
  }
  func.func @transform_17(%arg0: i32) -> (i32, i32, i32) {
    %c0_i32 = arith.constant 0 : i32
    %c0_i32_0 = arith.constant 0 : i32
    %c0_i32_1 = arith.constant 0 : i32
    %c0_i32_2 = arith.constant 0 : i32
    return %c0_i32, %c0_i32_0, %c0_i32_1 : i32, i32, i32
  }
  func.func @transform_18(%arg0: i32) -> (i32, i32) {
    %c0_i32 = arith.constant 0 : i32
    %c0_i32_0 = arith.constant 0 : i32
    %c0_i32_1 = arith.constant 0 : i32
    return %c0_i32, %c0_i32_0 : i32, i32
  }
  func.func @transform_19(%arg0: i32) -> (i32, i32) {
    %c0_i32 = arith.constant 0 : i32
    %c0_i32_0 = arith.constant 0 : i32
    %c0_i32_1 = arith.constant 0 : i32
    return %c0_i32, %c0_i32_0 : i32, i32
  }
  func.func @transform_20(%arg0: i32) -> (i32, i32) {
    %c0_i32 = arith.constant 0 : i32
    %c0_i32_0 = arith.constant 0 : i32
    %c0_i32_1 = arith.constant 0 : i32
    return %c0_i32, %c0_i32_0 : i32, i32
  }
  func.func @transform_21(%arg0: i32) -> (i32, i32) {
    %c0_i32 = arith.constant 0 : i32
    %c0_i32_0 = arith.constant 0 : i32
    return %c0_i32, %arg0 : i32, i32
  }
}

</mosaic_0001>

<bundles_post_ra>
// kernel: tpu_custom_call.1
= control target key start
LH: loop header
LB: loop body
LE: loop exit
PB: predicated region body
PF: predicated region fallthrough
CT: control target
= control target key end

     0   :  { %s8026_s0 = inlined_call_operand.hbm [shape: f32[8,512], index: 0, kind: input, shape index: {}]   ;;  %s8027_s1 = inlined_call_operand.vmem [shape: f32[32,8], index: 1, kind: input, shape index: {}]   ;;  %s8028_s2 = inlined_call_operand.vmem [shape: f32[32,1], index: 2, kind: input, shape index: {}]   ;;  %s8029_s3 = inlined_call_operand.vmem [shape: f32[3,32,32], index: 3, kind: input, shape index: {}]   ;;  %s8030_s4 = inlined_call_operand.vmem [shape: f32[32,1], index: 4, kind: input, shape index: {}]   ;;  %s8031_s5 = inlined_call_operand.vmem [shape: f32[3,32,32], index: 5, kind: input, shape index: {}]   ;;  %s8032_s6 = inlined_call_operand.vmem [shape: f32[32,1], index: 6, kind: input, shape index: {}]   ;;  %s8033_s7 = inlined_call_operand.vmem [shape: f32[3,32,32], index: 7, kind: input, shape index: {}]   ;;  %s8034_s8 = inlined_call_operand.vmem [shape: f32[32,1], index: 8, kind: input, shape index: {}]   ;;  %s8035_s9 = inlined_call_operand.hbm [shape: f32[3,32,32], index: 9, kind: input, shape index: {}]   ;;  %s8036_s10 = inlined_call_operand.vmem [shape: f32[32,1], index: 10, kind: input, shape index: {}]   ;;  %s8037_s11 = inlined_call_operand.hbm [shape: f32[3,32,32], index: 11, kind: input, shape index: {}]   ;;  %s8038_s12 = inlined_call_operand.vmem [shape: f32[32,1], index: 12, kind: input, shape index: {}]   ;;  %s8039_s13 = inlined_call_operand.hbm [shape: f32[3,32,32], index: 13, kind: input, shape index: {}]   ;;  %s8040_s14 = inlined_call_operand.vmem [shape: f32[32,1], index: 14, kind: input, shape index: {}]   ;;  %s8041_s15 = inlined_call_operand.vmem [shape: f32[3,16,32], index: 15, kind: input, shape index: {}]   ;;  %s8042_s16 = inlined_call_operand.vmem [shape: f32[16,1], index: 16, kind: input, shape index: {}]   ;;  %s8043_s17 = inlined_call_operand.hbm [shape: f32[3,16,16], index: 17, kind: input, shape index: {}]   ;;  %s8044_s18 = inlined_call_operand.vmem [shape: f32[16,1], index: 18, kind: input, shape index: {}]   ;;  %s8045_s19 = inlined_call_operand.vmem [shape: f32[16,32], index: 19, kind: input, shape index: {}]   ;;  %s8046_s20 = inlined_call_operand.vmem [shape: f32[16,1], index: 20, kind: input, shape index: {}]   ;;  %s8047_s21 = inlined_call_operand.hbm [shape: f32[16,512], index: 21, kind: output, shape index: {}]  }
   0x1   :  { %8077 = sst [smem:[#allocation16_spill]] %s8026_s0 }
   0x2   :  { %8078 = sst [smem:[#allocation17_spill]] %s8027_s1 }
   0x3   :  { %8079 = sst [smem:[#allocation18_spill]] %s8028_s2 }
   0x4   :  { %8080 = sst [smem:[#allocation19_spill]] %s8029_s3 }
   0x5   :  { %8081 = sst [smem:[#allocation20_spill]] %s8030_s4 }
   0x6   :  { %8082 = sst [smem:[#allocation21_spill]] %s8031_s5 }
   0x7   :  { %8083 = sst [smem:[#allocation22_spill]] %s8032_s6 }
   0x8   :  { %8084 = sst [smem:[#allocation23_spill]] %s8033_s7 }
   0x9   :  { %8085 = sst [smem:[#allocation24_spill]] %s8034_s8 }
   0xa   :  { %8086 = sst [smem:[#allocation25_spill]] %s8035_s9 }
   0xb   :  { %8087 = sst [smem:[#allocation26_spill]] %s8036_s10 }
   0xc   :  { %8088 = sst [smem:[#allocation27_spill]] %s8037_s11 }
   0xd   :  { %8089 = sst [smem:[#allocation28_spill]] %s8038_s12 }
   0xe   :  { %8090 = sst [smem:[#allocation29_spill]] %s8039_s13 }
   0xf   :  { %8091 = sst [smem:[#allocation30_spill]] %s8040_s14 }
  0x10   :  { %8092 = sst [smem:[#allocation31_spill]] %s8041_s15 }
  0x11   :  { %8093 = sst [smem:[#allocation32_spill]] %s8042_s16 }
  0x12   :  { %8094 = sst [smem:[#allocation33_spill]] %s8044_s18 }
  0x13   :  { %8095 = sst [smem:[#allocation34_spill]] %s8045_s19 }
  0x14   :  { %8096 = sst [smem:[#allocation35_spill]] %s8046_s20 }
  0x15   :  { %8097 = sst [smem:[#allocation36_spill]] %s8047_s21 }
  0x16   :  { %26 = vsyncpa [#allocation3], 0 }
  0x17   :  { %28 = vsyncpa [#allocation3 + $0x1], 0 }
  0x18   :  { %29 = vsyncpa [#allocation6], 0 }
  0x19   :  { %30 = vsyncpa [#allocation9], 0 }
  0x1a   :  { %31 = vsyncpa [#allocation4], 0 }
  0x1b   :  { %33 = vsyncpa [#allocation4 + $0x1], 0  ;;  %s6007_s2 = smov 0   ;;  %s6009_s25 = smov 0  }
  0x1c   :  { %s6011_s26 = smov 0   ;;  %s6013_s27 = smov 0  }
  0x1d LB: > { %s5876_s3 = smov [#allocation5]   ;;  %s6028_s29 = sadd.s32 4294967295, %s5874_s27   ;;  %s5874_s27 = sphi %s6013_s27, %s8145_s27   ;;  %s5870_s26 = sphi %s6011_s26, %s8144_s26   ;;  %s5866_s25 = sphi %s6009_s25, %s8143_s25   ;;  %s5862_s2 = sphi %s6007_s2, %s8142_s2  }
  0x1e   : > { %s552_s28 = sshll.u32 %s5876_s3, 4  ;;  %p4955_p0 = scmp.ge.s32.totalorder %s5874_s27, 1  ;;  %s6033_s28 = int_to_ptr.vmem [resolvable:$true] %s552_s28 }
  0x1f   : > { %p8061_p1 = scmp.eq.s32.totalorder %s6028_s29, 0  ;;  %p516_p2 = scmp.lt.s32.totalorder %s5874_s27, 3 }
  0x20   : > { %s5877_s4 = smov [#allocation8]   ;;  %s5878_s22 = smov [#allocation7]  }
  0x21   : > { %p6035_p3 = pnand %p4955_p0, %p516_p2  ;;  %s584_s30 = sshll.u32 %s5877_s4, 4  ;;  %s6048_s30 = int_to_ptr.vmem [resolvable:$true] %s584_s30 }
  0x22   : > { %s568_s23 = sshll.u32 %s5878_s22, 4  ;;  %s8100_s9 = sld [smem:[#allocation25_spill]]  ;;  %s6050_s23 = int_to_ptr.vmem [resolvable:$true] %s568_s23 }
  0x23   : > { %s8098_s0 = scalar_select %p6035_p3, 1, 0 }
  0x24   : > { %p5454_p5 = pneg %p6035_p3 }
  0x26   : > { %p6044_p6 = pnand %p5454_p5, %p8061_p1 }
  0x28   : > { %s5658_s3 = scalar_lea.hbm %s8100_s9, 1536  ;;  %p6060_p8 = pneg %p6044_p6 }
  0x29   : > { %p5659_p7 = scmp.ne.s32.totalorder %s8100_s9, %s5658_s3  ;;  %p5665_p11 = scmp.lt.u32.totalorder %s5658_s3, %s8100_s9 }
  0x2b   : > { %p5661_p9 = pnand %p6060_p8, %p5659_p7 }
  0x2d   : > { %p5662_p10 = pneg %p5661_p9 }
  0x2f   : > { %p5667_p12 = pnand %p5665_p11, %p5662_p10 }
  0x31   : > { %5670 = shalt.err (!%p5667_p12)
}
  0x32   : > { %s5671_s18 = scalar_lea.vmem %s6033_s28, 1536  ;;  %p5679_p5 = scmp.lt.s32.totalorder %s6033_s28, %s6033_s28 }
  0x33   : > { %p5672_p13 = scmp.ne.s32.totalorder %s6033_s28, %s5671_s18  ;;  %p5680_p4 = scmp.lt.s32.totalorder %s5671_s18, %s5671_s18 }
  0x35   : > { %p5674_p0 = pnand %p5672_p13, %p6060_p8  ;;  %p5681_p7 = por %p5680_p4, %p5679_p5 }
  0x37   : > { %p5675_p2 = pneg %p5674_p0 }
  0x39   : > { %p5682_p9 = pnand %p5681_p7, %p5675_p2 }
  0x3b   : > { %5685 = shalt.err (!%p5682_p9)
}
  0x3c   : > { %s5879_s21 = smov 128   ;;  %s5880_s20 = smov 8  }
  0x3d   : > { %5457 = dma.hbm_to_vmem [thread:$0]  (!%p6044_p6), %s8100_s9, 1536, %s6033_s28, [#allocation6], %s5879_s21, %s5879_s21, %s5880_s20  }
  0x3e   : > { %s8102_s13 = sld [smem:[#allocation29_spill]] }
  0x44   : > { %s5686_s18 = scalar_lea.hbm %s8102_s13, 1536 }
  0x45   : > { %p5687_p4 = scmp.ne.s32.totalorder %s8102_s13, %s5686_s18  ;;  %p5693_p12 = scmp.lt.u32.totalorder %s5686_s18, %s8102_s13 }
  0x47   : > { %p5689_p10 = pnand %p5687_p4, %p6060_p8 }
  0x49   : > { %p5690_p11 = pneg %p5689_p10 }
  0x4b   : > { %p5695_p13 = pnand %p5693_p12, %p5690_p11 }
  0x4d   : > { %5698 = shalt.err (!%p5695_p13)
}
  0x4e   : > { %s5699_s28 = scalar_lea.vmem %s6048_s30, 1536  ;;  %p5707_p7 = scmp.lt.s32.totalorder %s6048_s30, %s6048_s30 }
  0x4f   : > { %p5700_p0 = scmp.ne.s32.totalorder %s6048_s30, %s5699_s28  ;;  %p5708_p9 = scmp.lt.s32.totalorder %s5699_s28, %s5699_s28 }
  0x51   : > { %p5702_p2 = pnand %p5700_p0, %p6060_p8  ;;  %p5709_p4 = por %p5708_p9, %p5707_p7 }
  0x53   : > { %p5703_p5 = pneg %p5702_p2 }
  0x55   : > { %p5710_p10 = pnand %p5709_p4, %p5703_p5 }
  0x57   : > { %5713 = shalt.err (!%p5710_p10)
}
  0x58   : > { %5463 = dma.hbm_to_vmem [thread:$0]  (!%p6044_p6), %s8102_s13, 1536, %s6048_s30, [#allocation9], %s5879_s21, %s5879_s21, %s5880_s20  }
  0x59   : > { %s8103_s11 = sld [smem:[#allocation27_spill]] }
  0x5f   : > { %s5714_s1 = scalar_lea.hbm %s8103_s11, 1536 }
  0x60   : > { %p5715_p11 = scmp.ne.s32.totalorder %s8103_s11, %s5714_s1  ;;  %p5721_p0 = scmp.lt.u32.totalorder %s5714_s1, %s8103_s11 }
  0x62   : > { %p5717_p12 = pnand %p5715_p11, %p6060_p8 }
  0x64   : > { %p5718_p13 = pneg %p5717_p12 }
  0x66   : > { %p5723_p2 = pnand %p5721_p0, %p5718_p13 }
  0x68   : > { %5726 = shalt.err (!%p5723_p2)
}
  0x69   : > { %s5727_s30 = scalar_lea.vmem %s6050_s23, 1536  ;;  %p5735_p4 = scmp.lt.s32.totalorder %s6050_s23, %s6050_s23 }
  0x6a   : > { %p5728_p5 = scmp.ne.s32.totalorder %s6050_s23, %s5727_s30  ;;  %p5736_p10 = scmp.lt.s32.totalorder %s5727_s30, %s5727_s30 }
  0x6c   : > { %p5730_p7 = pnand %p5728_p5, %p6060_p8  ;;  %p5737_p11 = por %p5736_p10, %p5735_p4 }
  0x6e   : > { %p5731_p9 = pneg %p5730_p7 }
  0x70   : > { %p5738_p12 = pnand %p5737_p11, %p5731_p9 }
  0x72   : > { %5741 = shalt.err (!%p5738_p12)
}
  0x73   : > { %5460 = dma.hbm_to_vmem [thread:$0]  (!%p6044_p6), %s8103_s11, 1536, %s6050_s23, [#allocation6], %s5879_s21, %s5879_s21, %s5880_s20  }
  0x74   : > { %s5881_s15 = smov [#allocation10]   ;;  %s5742_s24 = scalar_lea.hbm %s8043_s17, 768 }
  0x75   : > { %s606_s16 = sshll.u32 %s5881_s15, 4  ;;  %p5743_p13 = scmp.ne.s32.totalorder %s8043_s17, %s5742_s24  ;;  %s607_s16 = int_to_ptr.vmem [resolvable:$true] %s606_s16 }
  0x76   : > { %p5749_p5 = scmp.lt.u32.totalorder %s5742_s24, %s8043_s17 }
  0x77   : > { %p5745_p0 = pnand %p5743_p13, %p6060_p8 }
  0x79   : > { %p5746_p2 = pneg %p5745_p0 }
  0x7b   : > { %p5751_p7 = pnand %p5749_p5, %p5746_p2 }
  0x7d   : > { %5754 = shalt.err (!%p5751_p7)
}
  0x7e   : > { %s5755_s23 = scalar_lea.vmem %s607_s16, 768  ;;  %p5763_p11 = scmp.lt.s32.totalorder %s607_s16, %s607_s16 }
  0x7f   : > { %p5756_p9 = scmp.ne.s32.totalorder %s607_s16, %s5755_s23  ;;  %p5764_p12 = scmp.lt.s32.totalorder %s5755_s23, %s5755_s23 }
  0x81   : > { %p5758_p4 = pnand %p5756_p9, %p6060_p8  ;;  %p5765_p1 = por %p5764_p12, %p5763_p11 }
  0x83   : > { %p5759_p10 = pneg %p5758_p4 }
  0x85   : > { %p5766_p3 = pnand %p5765_p1, %p5759_p10 }
  0x87   : > { %5769 = shalt.err (!%p5766_p3)
}
  0x88   : > { %5466 = dma.hbm_to_vmem [thread:$0]  (!%p6044_p6), %s8043_s17, 768, %s607_s16, [#allocation9], %s5879_s21, %s5879_s21, %s5880_s20  }
  0x89   : > { %s4954_s5 = sadd.s32 4294967294, %s5874_s27   ;;  %s6159_s4 = sadd.s32 1, %s5874_s27  }
  0x8a   : > { %s43_s15 = ssub.s32 %s5874_s27, %s6159_s4  ;;  %s46_s19 = sadd.s32 1, %s5870_s26 }
  0x8b   : > { %p44_p1 = scmp.eq.s32.totalorder %s43_s15, 0  ;;  %p53_p3 = scmp.ne.s32.totalorder %s5870_s26, %s5866_s25 }
  0x8c   : > { %p54_p8 = scmp.eq.s32.totalorder %s5874_s27, 0  ;;  %p59_p13 = scmp.ne.s32.totalorder %s5866_s25, %s5862_s2 }
  0x8d   : > { %s6170_s1 = scalar_select %p44_p1, %s5870_s26, %s46_s19  }
  0x8e   : > { %p6172_p0 = por %p54_p8, %p53_p3  ;;  %p8105_p2 = scmp.eq.s32.totalorder %s6028_s29, 0 }
  0x8f   : > { %p503_p5 = scmp.eq.s32.totalorder %s6028_s29, 1  ;;  %p509_p7 = scmp.eq.s32.totalorder %s4954_s5, 1 }
  0x90   : > { %p6178_p6 = por %p8105_p2, %p59_p13  ;;  %p5479_p9 = scmp.lt.s32.totalorder %s5874_s27, 2 }
  0x91   : > { %s629_s20 = sand.u32 1, %s5870_s26   ;;  %p6185_p4 = por %p503_p5, %p53_p3 }
  0x92   : > { %p6189_p10 = por %p509_p7, %p59_p13  ;;  %s4961_s22 = sshll.u32 %s629_s20, 4 }
  0x93   : > { %s8107_s16 = scalar_select %p6185_p4, 1, 0 }
  0x94   : > { %s8108_s3 = scalar_select %p6189_p10, 1, 0 }
  0x95   : > { %s5116_s18 = sshll.u32 %s5874_s27, 8  ;;  %s8109_s28 = sld [smem:[#allocation16_spill]] }
  0x96   : > { %s633_s5 = scalar_lea.vmem [#allocation2], %s4961_s22  ;;  %p6203_p11 = pnand %p5479_p9, %p6172_p0 }
  0x97   : > { %s641_s15 = sshll.u32 %s633_s5, 4  ;;  %s630_s9 = scalar_lea.sflag [#allocation3], %s629_s20  ;;  %s6199_s15 = int_to_ptr.vmem [resolvable:$true] %s641_s15 }
  0x98   : > { %p5772_p1 = pneg %p6203_p11 }
  0x9b   : > { %s6197_s14 = scalar_lea.hbm %s8109_s28, %s5116_s18  ;;  %s5775_s30 = scalar_lea.hbm %s8109_s28, 512 }
  0x9c   : > { %s5770_s11 = scalar_lea.hbm %s6197_s14, 256  ;;  %p5776_p13 = scmp.lt.u32.totalorder %s6197_s14, %s8109_s28 }
  0x9d   : > { %p5771_p12 = scmp.ne.s32.totalorder %s6197_s14, %s5770_s11  ;;  %p5777_p0 = scmp.lt.u32.totalorder %s5775_s30, %s5770_s11 }
  0x9e   : > { %p5779_p5 = scmp.lt.u32.totalorder %s5770_s11, %s6197_s14 }
  0x9f   : > { %p5773_p3 = pnand %p5772_p1, %p5771_p12  ;;  %p5778_p2 = por %p5777_p0, %p5776_p13 }
  0xa1   : > { %p5774_p8 = pneg %p5773_p3  ;;  %p5780_p7 = por %p5779_p5, %p5778_p2 }
  0xa3   : > { %p5781_p9 = pnand %p5780_p7, %p5774_p8 }
  0xa5   : > { %5784 = shalt.err (!%p5781_p9)
}
  0xa6   : > { %s5785_s20 = scalar_lea.vmem %s6199_s15, 256  ;;  %s5882_s5 = smov [#allocation2]  }
  0xa7   : > { %p5786_p12 = scmp.ne.s32.totalorder %s6199_s15, %s5785_s20  ;;  %s5790_s22 = sshll.u32 %s5882_s5, 4  ;;  %s5791_s22 = int_to_ptr.vmem [resolvable:$false] %s5790_s22 }
  0xa8   : > { %s5792_s18 = scalar_lea.vmem %s5791_s22, 512  ;;  %p5793_p4 = scmp.lt.s32.totalorder %s6199_s15, %s5791_s22 }
  0xa9   : > { %p5788_p3 = pnand %p5786_p12, %p5772_p1  ;;  %p5794_p13 = scmp.lt.s32.totalorder %s5792_s18, %s5785_s20 }
  0xab   : > { %p5789_p10 = pneg %p5788_p3  ;;  %p5795_p0 = por %p5794_p13, %p5793_p4 }
  0xad   : > { %p5796_p2 = pnand %p5795_p0, %p5789_p10 }
  0xaf   : > { %5799 = shalt.err (!%p5796_p2)
}
  0xb0   : > { %5470 = dma.hbm_to_vmem [thread:$0]  (!%p6203_p11), %s6197_s14, 256, %s6199_s15, %s630_s9  }
  0xb1   : > { %p8111_p8 = scmp.ne.s32.totalorder %s8098_s0, 0 }
  0xb2   : > { %s6235_s11 = sand.u32 (!%p8111_p8), 1, %s5866_s25  }
  0xb3   : > { %650 = sbr.rel (%p8111_p8) target bundleno = 3698 (0xe72), region = 104  ;;  %s4965_s30 = sshll.u32 (!%p8111_p8), %s6235_s11, 4 }
  0xb4   : > { %s653_s24 = scalar_lea.sflag (!%p8111_p8), [#allocation3], %s6235_s11  ;;  %s656_s23 = scalar_lea.vmem (!%p8111_p8), [#allocation2], %s4965_s30 }
  0xba   : > { %5845 = dma.done.wait (%p6178_p6), %s653_s24, 256  }
  0xbb   : > { %5847 = vsyncadd (%p6178_p6), %s653_s24, 4294967040  ;;  %p8112_p4 = scmp.eq.s32.totalorder %s6028_s29, 0 }
  0xbd   : > { %5849 = dma.done.wait (%p8112_p4), [#allocation6], 3072   ;;  %p8113_p10 = pmov %p8112_p4 }
  0xbe   : > { %p8114_p11 = pmov %p8112_p4 }
  0xbf   : > { %5851 = vsyncadd (%p8113_p10), [#allocation6], 4294964224 }
  0xc0   : > { %5853 = dma.done.wait (%p8114_p11), [#allocation9], 2304   ;;  %p8115_p1 = pmov %p8112_p4 }
  0xc1   : > { %v5883_v0 = vmov 0.0   ;;  %v5884_v1 = vmov 0   ;;  %v809_v2 = vld [vmem:[%s656_s23 + $0x8] sm:$0xff]  ;;  %v808_v3 = vld [vmem:[%s656_s23] sm:$0xff]  ;;  %s8116_s21 = sld [smem:[#allocation18_spill]]  ;;  %s8117_s24 = sld [smem:[#allocation17_spill]] }
  0xc2   : > { %5855 = vsyncadd (%p8115_p1), [#allocation9], 4294964992  ;;  %941 = vmatprep.mubr.f32.mxu0 %v5883_v0  ;;  %5536 = vset.pattern.permute.xlu0 %v5884_v1  ;;  %vm811_vm0 = vcmp.ne.f32.partialorder %v809_v2, %v809_v2  ;;  %vm810_vm1 = vcmp.ne.f32.partialorder %v808_v3, %v808_v3  ;;  %vm864_vm5 = vcmask 64512   ;;  %s8064_s20 = smov 1   ;;  %s5886_s5 = smov 127   ;;  %vm1088_vm7 = vcmask 261120  }
  0xc3   : > { %5537 = vset.pattern.permute.xlu1 %v5884_v1  ;;  %1278 = vmatprep.mubr.f32.mxu1 %v5883_v0  ;;  %v4988_v4 = vsel %vm811_vm0, 1.0, %v5883_v0  ;;  %v4987_v5 = vsel %vm810_vm1, 1.0, %v5883_v0  ;;  %s8118_s30 = sld [smem:[#allocation19_spill]]  ;;  %s8119_s15 = sld [smem:[#allocation20_spill]] }
  0xc4   : > { %v822_v8 = vrot.slane %v4988_v4, 4  ;;  %v816_v9 = vrot.slane %v4987_v5, 4  ;;  %s8120_s22 = smov 1   ;;  %s8121_s6 = sld [smem:[#allocation22_spill]] }
  0xc5   : > { %s8122_s23 = sld [smem:[#allocation21_spill]]  ;;  %s5888_s18 = smov 126  }
  0xc6   : > { %v823_v12 = vmax.f32 %v4988_v4, %v822_v8  ;;  %v817_v13 = vmax.f32 %v4987_v5, %v816_v9  ;;  %s8123_s8 = sld [smem:[#allocation24_spill]]  ;;  %s8124_s7 = sld [smem:[#allocation23_spill]] }
  0xc7   : > { %v840_v6 = vld [vmem:[%s8116_s21] sm:$0xff]  ;;  %v842_v7 = vld [vmem:[%s8116_s21 + $0x10] sm:$0xff]  ;;  %v841_v10 = vld [vmem:[%s8116_s21 + $0x8] sm:$0xff]  ;;  %s8126_s10 = sld [smem:[#allocation26_spill]]  ;;  %s8127_s12 = sld [smem:[#allocation28_spill]] }
  0xc8   : > { %846 = vperm.xlu0 %5536, %v840_v6   ;;  %856 = vperm.xlu1 %5537, %v842_v7   ;;  %v843_v11 = vld [vmem:[%s8116_s21 + $0x18] sm:$0xff]  ;;  %v824_v14 = vrot.slane %v823_v12, 2  ;;  %v818_v15 = vrot.slane %v817_v13, 2  ;;  %v836_v22 = vld [vmem:[%s8117_s24] sm:$0xff]  ;;  %v837_v23 = vld [vmem:[%s8117_s24 + $0x8] sm:$0xff]  ;;  %s8129_s0 = sld [smem:[#allocation30_spill]] }
  0xc9   : > { %v838_v24 = vld [vmem:[%s8117_s24 + $0x10] sm:$0xff]  ;;  %v839_v25 = vld [vmem:[%s8117_s24 + $0x18] sm:$0xff]  ;;  %s8135_s19 = sld [smem:[#allocation35_spill]]  ;;  %s8137_s14 = sld [smem:[#allocation36_spill]] }
  0xca   : > { %v825_v16 = vmax.f32 %v823_v12, %v824_v14  ;;  %v819_v17 = vmax.f32 %v817_v13, %v818_v15  ;;  %p8138_p5 = scmp.ne.s32.totalorder %s8107_s16, 0 }
  0xcc   : > { %851 = vperm.xlu0 %5536, %v841_v10   ;;  %861 = vperm.xlu1 %5537, %v843_v11   ;;  %v826_v18 = vrot.slane %v825_v16, 1  ;;  %v820_v19 = vrot.slane %v819_v17, 1 }
  0xce   : > { %v6267_v20 = vmax.f32 %v825_v16, %v826_v18  ;;  %v6269_v21 = vmax.f32 %v819_v17, %v820_v19 }
  0xd0   : > { %vm829_vm2 = vcmp.gt.f32.partialorder %v6267_v20, 0.0  ;;  %vm828_vm3 = vcmp.gt.f32.partialorder %v6269_v21, 0.0 }
  0xd1   : > { %vm4989_vm4 = vmneg %vm829_vm2 }
  0xd2   : > { %4990 = vmatprep.subr.msk.mxu0 %vm4989_vm4, %v809_v2  ;;  %vm4991_vm6 = vmneg %vm828_vm3 }
  0xd3   : > { %4992 = vmatpush1.msk.msra.mxu0 %vm4991_vm6, %v808_v3 }
  0xd4   : > { %4993 = vmatmul.mubr.msk.f32.vlgmr.msra.gmra.mrb[0].mxu0 %vm864_vm5, %v836_v22 }
  0xd5   : > { %947 = vmatprep.mubr.f32.mxu0 %v5883_v0 }
  0xd8   : > { %4994 = vmatmul.mubr.msk.f32.gmra.mrb[2].mxu0 %vm864_vm5, %v837_v23 }
  0xd9   : > { %953 = vmatprep.mubr.f32.mxu0 %v5883_v0 }
  0xdc   : > { %4995 = vmatmul.mubr.msk.f32.gmra.mrb[4].mxu0 %vm864_vm5, %v838_v24 }
  0xdd   : > { %959 = vmatprep.mubr.f32.mxu0 %v5883_v0 }
  0xe0   : > { %4996 = vmatmul.mubr.msk.f32.gmra.mrb[6].mxu0 %vm864_vm5, %v839_v25 }
  0xe1   : > { %1165 = vmatprep.mubr.f32.mxu0 %v5883_v0 }
 0x147   : > { %v847_v26 = vpop.permute.xlu0 %846  ;;  %v857_v32 = vpop.permute.xlu1 %856 }
 0x14b   : > { %v852_v33 = vpop.permute.xlu0 %851  ;;  %v862_v54 = vpop.permute.xlu1 %861 }
 0x1a7   : > { %v943_v27 = vpop.f32.mrb[0].mxu0 }
 0x1a8   : > { %v944_v28 = vadd.f32 %v943_v27, %v847_v26  ;;  %v945_v29 = vpop.f32.mrb[1].mxu0 }
 0x1a9   : > { %v946_v30 = vadd.f32 %v945_v29, %v847_v26 }
 0x1aa   : > { %v6295_v31 = vsel %vm828_vm3, 0.0, %v944_v28 }
 0x1ab   : > { %v982_v34 = vmul.f32 0.044715, %v6295_v31  ;;  %v6300_v35 = vsel %vm829_vm2, 0.0, %v946_v30  ;;  %v949_v36 = vpop.f32.mrb[2].mxu0 }
 0x1ac   : > { %v983_v37 = vmul.f32 0.044715, %v6300_v35  ;;  %v950_v38 = vadd.f32 %v949_v36, %v852_v33  ;;  %v951_v39 = vpop.f32.mrb[3].mxu0 }
 0x1ad   : > { %v990_v40 = vmul.f32 %v982_v34, %v6295_v31  ;;  %v952_v41 = vadd.f32 %v951_v39, %v852_v33  ;;  %v974_v34 = vmul.f32 0.5, %v6295_v31 }
 0x1ae   : > { %v991_v42 = vmul.f32 %v983_v37, %v6300_v35  ;;  %v6307_v43 = vsel %vm828_vm3, 0.0, %v950_v38 }
 0x1af   : > { %v998_v44 = vmul.f32 %v990_v40, %v6295_v31  ;;  %v984_v45 = vmul.f32 0.044715, %v6307_v43  ;;  %v6313_v46 = vsel %vm829_vm2, 0.0, %v952_v41  ;;  %v955_v47 = vpop.f32.mrb[4].mxu0  ;;  %v976_v41 = vmul.f32 0.5, %v6307_v43 }
 0x1b0   : > { %v999_v48 = vmul.f32 %v991_v42, %v6300_v35  ;;  %v985_v49 = vmul.f32 0.044715, %v6313_v46  ;;  %v956_v50 = vadd.f32 %v955_v47, %v857_v32  ;;  %v957_v51 = vpop.f32.mrb[5].mxu0 }
 0x1b1   : > { %v992_v52 = vmul.f32 %v984_v45, %v6307_v43  ;;  %v958_v53 = vadd.f32 %v957_v51, %v857_v32  ;;  %v1006_v55 = vadd.f32 %v998_v44, %v6295_v31  ;;  %v975_v44 = vmul.f32 0.5, %v6300_v35 }
 0x1b2   : > { %v1007_v56 = vadd.f32 %v999_v48, %v6300_v35  ;;  %v993_v57 = vmul.f32 %v985_v49, %v6313_v46  ;;  %v6323_v58 = vsel %vm828_vm3, 0.0, %v956_v50  ;;  %v977_v45 = vmul.f32 0.5, %v6313_v46 }
 0x1b3   : > { %v1000_v59 = vmul.f32 %v992_v52, %v6307_v43  ;;  %v986_v60 = vmul.f32 0.044715, %v6323_v58  ;;  %v6329_v61 = vsel %vm829_vm2, 0.0, %v958_v53  ;;  %v961_v62 = vpop.f32.mrb[6].mxu0  ;;  %v1014_v63 = vmul.f32 0.7978846, %v1006_v55 }
 0x1b4   : > { %v1001_v1 = vmul.f32 %v993_v57, %v6313_v46  ;;  %v987_v2 = vmul.f32 0.044715, %v6329_v61  ;;  %v962_v3 = vadd.f32 %v961_v62, %v862_v54  ;;  %v963_v4 = vpop.f32.mrb[7].mxu0  ;;  %v1015_v5 = vmul.f32 0.7978846, %v1007_v56 }
 0x1b5   : > { %v994_v6 = vmul.f32 %v986_v60, %v6323_v58  ;;  %v964_v7 = vadd.f32 %v963_v4, %v862_v54  ;;  %5538 = vtanh.f32 %v1014_v63  ;;  %v1008_v8 = vadd.f32 %v1000_v59, %v6307_v43 }
 0x1b6   : > { %v1009_v9 = vadd.f32 %v1001_v1, %v6313_v46  ;;  %v995_v10 = vmul.f32 %v987_v2, %v6329_v61  ;;  %v6339_v11 = vsel %vm828_vm3, 0.0, %v962_v3  ;;  %5540 = vtanh.f32 %v1015_v5 }
 0x1b7   : > { %v1002_v12 = vmul.f32 %v994_v6, %v6323_v58  ;;  %v988_v13 = vmul.f32 0.044715, %v6339_v11  ;;  %v6345_v14 = vsel %vm829_vm2, 0.0, %v964_v7  ;;  %v1016_v15 = vmul.f32 0.7978846, %v1008_v8 }
 0x1b8   : > { %v1003_v16 = vmul.f32 %v995_v10, %v6329_v61  ;;  %v989_v17 = vmul.f32 0.044715, %v6345_v14  ;;  %v1017_v18 = vmul.f32 0.7978846, %v1009_v9  ;;  %v978_v60 = vmul.f32 0.5, %v6323_v58  ;;  %v4999_v10 = vld [vmem:[%s8118_s30 + $0x30] sm:$0xff] }
 0x1b9   : > { %v996_v19 = vmul.f32 %v988_v13, %v6339_v11  ;;  %5542 = vtanh.f32 %v1016_v15  ;;  %v1010_v21 = vadd.f32 %v1002_v12, %v6323_v58  ;;  %v979_v63 = vmul.f32 0.5, %v6329_v61  ;;  %v5000_v12 = vld [vmem:[%s8118_s30 + $0x38] sm:$0xff]  ;;  %v1438_v13 = vld [vmem:[%s8119_s15] sm:$0xff]  ;;  %v1439_v15 = vld [vmem:[%s8119_s15 + $0x8] sm:$0xff] }
 0x1ba   : > { %v1011_v22 = vadd.f32 %v1003_v16, %v6329_v61  ;;  %v997_v23 = vmul.f32 %v989_v17, %v6345_v14  ;;  %5544 = vtanh.f32 %v1017_v18  ;;  %v981_v1 = vmul.f32 0.5, %v6345_v14  ;;  %v1440_v16 = vld [vmem:[%s8119_s15 + $0x10] sm:$0xff]  ;;  %v1441_v17 = vld [vmem:[%s8119_s15 + $0x18] sm:$0xff] }
 0x1bb   : > { %v1004_v20 = vmul.f32 %v996_v19, %v6339_v11  ;;  %v1018_v24 = vmul.f32 0.7978846, %v1010_v21  ;;  %v980_v3 = vmul.f32 0.5, %v6339_v11  ;;  %v733_v18 = vlaneseq }
 0x1bc   : > { %v1019_v25 = vmul.f32 0.7978846, %v1011_v22  ;;  %v1005_v26 = vmul.f32 %v997_v23, %v6345_v14 }
 0x1bd   : > { %5546 = vtanh.f32 %v1018_v24  ;;  %v1012_v27 = vadd.f32 %v1004_v20, %v6339_v11  ;;  %v6415_v19 = vand.u32 127, %v733_v18 }
 0x1be   : > { %5548 = vtanh.f32 %v1019_v25  ;;  %v1013_v28 = vadd.f32 %v1005_v26, %v6345_v14 }
 0x1bf   : > { %v5539_v29 = vpop.eup %5538  ;;  %v1020_v30 = vmul.f32 0.7978846, %v1012_v27  ;;  %v735_v22 = vadd.s32 128, %v6415_v19  ;;  %v6419_v24 = vand.u32 63, %v6415_v19  ;;  %vm1071_vm10 = vcmp.lt.s32.totalorder %v6415_v19, 1 }
 0x1c0   : > { %v5541_v32 = vpop.eup %5540  ;;  %v1021_v33 = vmul.f32 0.7978846, %v1013_v28  ;;  %v1030_v36 = vadd.f32 1.0, %v5539_v29  ;;  %vm1312_vm13 = vcmp.lt.s32.totalorder %v6415_v19, 127  ;;  %vm2068_vm0 = vcmp.lt.s32.totalorder %v6415_v19, 2 }
 0x1c1   : > { %5550 = vtanh.f32 %v1020_v30  ;;  %v1031_v39 = vadd.f32 1.0, %v5541_v32  ;;  %v6421_v25 = vand.u32 63, %v735_v22  ;;  %vm760_vm8 = vcmp.ge.s32.totalorder %v6419_v24, 1 }
 0x1c2   : > { %5552 = vtanh.f32 %v1021_v33  ;;  %v1038_v37 = vmul.f32 %v1030_v36, %v974_v34  ;;  %v6427_v28 = vsel %vm760_vm8, 1.0, %v5883_v0  ;;  %vm766_vm11 = vcmp.lt.s32.totalorder %v6419_v24, 63 }
 0x1c3   : > { %v5543_v38 = vpop.eup %5542  ;;  %v1039_v50 = vmul.f32 %v1031_v39, %v975_v44  ;;  %vm761_vm9 = vcmp.ge.s32.totalorder %v6421_v25, 1  ;;  %vm767_vm12 = vcmp.lt.s32.totalorder %v6421_v25, 63  ;;  %vm772_vm14 = vcmp.ge.s32.totalorder %v6419_v24, 2 }
 0x1c4   : > { %v5545_v40 = vpop.eup %5544  ;;  %1055 = vrot.lane.b32.xlu0 %v1038_v37, %s8064_s20  ;;  %v1032_v42 = vadd.f32 1.0, %v5543_v38  ;;  %v6430_v29 = vsel %vm761_vm9, 1.0, %v5883_v0  ;;  %vm773_vm15 = vcmp.ge.s32.totalorder %v6421_v25, 2  ;;  %vm779_vm1 = vcmp.lt.s32.totalorder %v6421_v25, 62 }
 0x1c5   : > { %v1033_v47 = vadd.f32 1.0, %v5545_v40  ;;  %vm2308_vm2 = vcmp.lt.s32.totalorder %v6415_v19, 126  ;;  %vm778_vm3 = vcmp.lt.s32.totalorder %v6419_v24, 62  ;;  %vm784_vm4 = vcmp.ge.s32.totalorder %v6419_v24, 4 }
 0x1c6   : > { %v1040_v48 = vmul.f32 %v1032_v42, %v976_v41  ;;  %vm785_vm5 = vcmp.ge.s32.totalorder %v6421_v25, 4  ;;  %vm3064_vm6 = vcmp.lt.s32.totalorder %v6415_v19, 4  ;;  %vm791_vm8 = vcmp.lt.s32.totalorder %v6421_v25, 60 }
 0x1c7   : > { %v5547_v49 = vpop.eup %5546  ;;  %v1041_v51 = vmul.f32 %v1033_v47, %v977_v45  ;;  %vm3304_vm9 = vcmp.lt.s32.totalorder %v6415_v19, 124 }
 0x1c8   : > { %v5549_v52 = vpop.eup %5548  ;;  %1057 = vrot.lane.b32.xlu1 %v1040_v48, %s8064_s20  ;;  %1296 = vrot.lane.b32.xlu0 %v1038_v37, %s5886_s5  ;;  %v1034_v54 = vadd.f32 1.0, %v5547_v49  ;;  %v6367_v56 = vpack.c.bf16 %v1040_v48, %v1038_v37 }
 0x1c9   : > { %v6364_v53 = vpack.c.bf16 %v1041_v51, %v1039_v50  ;;  %v1035_v57 = vadd.f32 1.0, %v5549_v52 }
 0x1ca   : > { %v1042_v4 = vmul.f32 %v1034_v54, %v978_v60 }
 0x1cb   : > { %v5551_v55 = vpop.eup %5550  ;;  %5306 = vmatprep.subr.bf16.mxu1 %v6364_v53  ;;  %v1043_v5 = vmul.f32 %v1035_v57, %v979_v63  ;;  %v6463_v63 = vsel %vm767_vm12, 1.0, %v5883_v0  ;;  %vm797_vm12 = vcmp.ge.s32.totalorder %v6421_v25, 8 }
 0x1cc   : > { %v5553_v59 = vpop.eup %5552  ;;  %1298 = vrot.lane.b32.xlu1 %v1040_v48, %s5886_s5  ;;  %1063 = vrot.lane.b32.xlu0 %v1039_v50, %s8064_s20  ;;  %v1036_v62 = vadd.f32 1.0, %v5551_v55 }
 0x1cd   : > { %5308 = vmatpush1.bf16.msra.mxu1 %v6367_v56  ;;  %v1037_v2 = vadd.f32 1.0, %v5553_v59 }
 0x1ce   : > { %v1044_v7 = vmul.f32 %v1036_v62, %v980_v3  ;;  %v6460_v62 = vsel %vm766_vm11, 1.0, %v5883_v0  ;;  %vm796_vm11 = vcmp.ge.s32.totalorder %v6419_v24, 8 }
 0x1cf   : > { %v1045_v6 = vmul.f32 %v1037_v2, %v981_v1 }
 0x1d0   : > { %1065 = vrot.lane.b32.xlu1 %v1041_v51, %s8064_s20  ;;  %1059 = vrot.lane.b32.xlu0 %v1042_v4, %s8064_s20  ;;  %v6381_v9 = vpack.c.bf16 %v1044_v7, %v1042_v4 }
 0x1d1   : > { %v6378_v8 = vpack.c.bf16 %v1045_v6, %v1043_v5 }
 0x1d3   : > { %5307 = vmatprep.subr.bf16.mxu1 %v6378_v8 }
 0x1d4   : > { %1061 = vrot.lane.b32.xlu1 %v1044_v7, %s8064_s20  ;;  %1067 = vrot.lane.b32.xlu0 %v1043_v5, %s8064_s20 }
 0x1d5   : > { %5309 = vmatpush1.bf16.msra.mxu1 %v6381_v9 }
 0x1d8   : > { %1069 = vrot.lane.b32.xlu1 %v1045_v6, %s8064_s20  ;;  %1304 = vrot.lane.b32.xlu0 %v1039_v50, %s5886_s5  ;;  %s8130_s20 = sld [smem:[#allocation34_spill]] }
 0x1d9   : > { %5007 = vmatmul.mubr.msk.f32.vlgmr.msra.gmra.mrb[0].mxu1 %vm1088_vm7, %v4999_v10 }
 0x1da   : > { %1284 = vmatprep.mubr.f32.mxu1 %v5883_v0 }
 0x1dc   : > { %1306 = vrot.lane.b32.xlu1 %v1041_v51, %s5886_s5  ;;  %1300 = vrot.lane.b32.xlu0 %v1042_v4, %s5886_s5 }
 0x1dd   : > { %5008 = vmatmul.mubr.msk.f32.gmra.mrb[2].mxu1 %vm1088_vm7, %v5000_v12 }
 0x1de   : > { %1405 = vmatprep.mubr.f32.mxu1 %v5883_v0 }
 0x1e0   : > { %1302 = vrot.lane.b32.xlu1 %v1044_v7, %s5886_s5  ;;  %1308 = vrot.lane.b32.xlu0 %v1043_v5, %s5886_s5 }
 0x1e4   : > { %1310 = vrot.lane.b32.xlu1 %v1045_v6, %s5886_s5  ;;  %1444 = vperm.xlu0 %5536, %v1438_v13  }
 0x1e8   : > { %1449 = vperm.xlu1 %5537, %v1439_v15   ;;  %1454 = vperm.xlu0 %5536, %v1440_v16  }
 0x1ec   : > { %1459 = vperm.xlu1 %5537, %v1441_v17   ;;  %v1051_v17 = vld [vmem:[%s8118_s30] sm:$0xff] }
 0x236   : > { %v1056_v21 = vpop.permute.xlu0 %1055 }
 0x23a   : > { %v1058_v23 = vpop.permute.xlu1 %1057  ;;  %v1297_v20 = vpop.permute.xlu0 %1296 }
 0x23e   : > { %v1299_v26 = vpop.permute.xlu1 %1298  ;;  %v1064_v27 = vpop.permute.xlu0 %1063 }
 0x23f   : > { %v1072_v30 = vsel %vm1071_vm10, %v1056_v21, %v1064_v27  ;;  %v1076_v32 = vsel %vm1071_vm10, %v1064_v27, %v1056_v21  ;;  %v1052_v27 = vld [vmem:[%s8118_s30 + $0x8] sm:$0xff] }
 0x240   : > { %v1080_v38 = vmul.f32 %v6427_v28, %v1076_v32  ;;  %v1081_v39 = vmul.f32 %v6430_v29, %v1072_v30 }
 0x242   : > { %v1066_v33 = vpop.permute.xlu1 %1065  ;;  %v1060_v34 = vpop.permute.xlu0 %1059 }
 0x243   : > { %v1073_v36 = vsel %vm1071_vm10, %v1058_v23, %v1066_v33  ;;  %v1077_v37 = vsel %vm1071_vm10, %v1066_v33, %v1058_v23 }
 0x244   : > { %v1082_v40 = vmul.f32 %v6427_v28, %v1077_v37  ;;  %v1083_v41 = vmul.f32 %v6430_v29, %v1073_v36 }
 0x246   : > { %v5120_v42 = vpack.c.bf16 %v1082_v40, %v1080_v38  ;;  %v1062_v44 = vpop.permute.xlu1 %1061  ;;  %v1068_v45 = vpop.permute.xlu0 %1067  ;;  %v5118_v47 = vpack.c.bf16 %v1083_v41, %v1081_v39  ;;  %v1054_v39 = vld [vmem:[%s8118_s30 + $0x18] sm:$0xff]  ;;  %v4997_v40 = vld [vmem:[%s8118_s30 + $0x20] sm:$0xff]  ;;  %v5010_v41 = vld [vmem:[%s8118_s30 + $0x48] sm:$0xff] }
 0x247   : > { %v1074_v48 = vsel %vm1071_vm10, %v1060_v34, %v1068_v45  ;;  %v1078_v49 = vsel %vm1071_vm10, %v1068_v45, %v1060_v34  ;;  %v5012_v45 = vld [vmem:[%s8118_s30 + $0x58] sm:$0xff] }
 0x248   : > { %5119 = vmatprep.subr.bf16.mxu0 %v5118_v47  ;;  %v1084_v55 = vmul.f32 %v6427_v28, %v1078_v49  ;;  %v1085_v57 = vmul.f32 %v6430_v29, %v1074_v48 }
 0x249   : > { %5121 = vmatpush1.bf16.msra.mxu0 %v5120_v42  ;;  %v4998_v42 = vld [vmem:[%s8118_s30 + $0x28] sm:$0xff] }
 0x24a   : > { %v1070_v50 = vpop.permute.xlu1 %1069  ;;  %v1305_v51 = vpop.permute.xlu0 %1304 }
 0x24b   : > { %v1075_v52 = vsel %vm1071_vm10, %v1062_v44, %v1070_v50  ;;  %v1079_v54 = vsel %vm1071_vm10, %v1070_v50, %v1062_v44  ;;  %v1313_v1 = vsel %vm1312_vm13, %v1297_v20, %v1305_v51  ;;  %v1317_v2 = vsel %vm1312_vm13, %v1305_v51, %v1297_v20  ;;  %v5011_v44 = vld [vmem:[%s8118_s30 + $0x50] sm:$0xff] }
 0x24c   : > { %v1086_v59 = vmul.f32 %v6427_v28, %v1079_v54  ;;  %v1087_v60 = vmul.f32 %v6430_v29, %v1075_v52  ;;  %v1321_v12 = vmul.f32 %v6460_v62, %v1313_v1  ;;  %v1322_v13 = vmul.f32 %v6463_v63, %v1317_v2 }
 0x24e   : > { %v5124_v3 = vpack.c.bf16 %v1086_v59, %v1084_v55  ;;  %v1307_v4 = vpop.permute.xlu1 %1306  ;;  %v1301_v5 = vpop.permute.xlu0 %1300  ;;  %v5122_v6 = vpack.c.bf16 %v1087_v60, %v1085_v57 }
 0x24f   : > { %v1314_v7 = vsel %vm1312_vm13, %v1299_v26, %v1307_v4  ;;  %v1318_v10 = vsel %vm1312_vm13, %v1307_v4, %v1299_v26 }
 0x250   : > { %v1323_v15 = vmul.f32 %v6460_v62, %v1314_v7  ;;  %v1324_v16 = vmul.f32 %v6463_v63, %v1318_v10  ;;  %5123 = vmatprep.subr.bf16.mxu0 %v5122_v6 }
 0x251   : > { %5125 = vmatpush1.bf16.msra.mxu0 %v5124_v3 }
 0x252   : > { %v5136_v18 = vpack.c.bf16 %v1323_v15, %v1321_v12  ;;  %v1303_v21 = vpop.permute.xlu1 %1302  ;;  %5127 = vmatprep.subr.bf16.mxu0 %v6364_v53  ;;  %v1309_v22 = vpop.permute.xlu0 %1308  ;;  %v5134_v23 = vpack.c.bf16 %v1324_v16, %v1322_v13 }
 0x253   : > { %v1315_v20 = vsel %vm1312_vm13, %v1301_v5, %v1309_v22  ;;  %v1319_v26 = vsel %vm1312_vm13, %v1309_v22, %v1301_v5 }
 0x254   : > { %5001 = vmatmul.mubr.msk.f32.vlgmr.msra.gmra.mrb[8].mxu0 %vm1088_vm7, %v1051_v17  ;;  %5135 = vmatprep.subr.bf16.mxu1 %v5134_v23  ;;  %v1325_v33 = vmul.f32 %v6460_v62, %v1315_v20 }
 0x255   : > { %5129 = vmatpush1.bf16.msra.mxu0 %v6367_v56  ;;  %5137 = vmatpush1.bf16.msra.mxu1 %v5136_v18  ;;  %v1326_v56 = vmul.f32 %v6463_v63, %v1319_v26 }
 0x256   : > { %v1311_v30 = vpop.permute.xlu1 %1310  ;;  %5131 = vmatprep.subr.bf16.mxu0 %v6378_v8  ;;  %1171 = vmatprep.mubr.f32.mxu0 %v5883_v0  ;;  %v1053_v8 = vld [vmem:[%s8118_s30 + $0x10] sm:$0xff] }
 0x257   : > { %v1316_v53 = vsel %vm1312_vm13, %v1303_v21, %v1311_v30  ;;  %v1320_v32 = vsel %vm1312_vm13, %v1311_v30, %v1303_v21 }
 0x258   : > { %v1327_v34 = vmul.f32 %v6460_v62, %v1316_v53  ;;  %v1328_v36 = vmul.f32 %v6463_v63, %v1320_v32  ;;  %5002 = vmatmul.mubr.msk.f32.gmra.mrb[10].mxu0 %vm1088_vm7, %v1052_v27 }
 0x259   : > { %5133 = vmatpush1.bf16.msra.mxu0 %v6381_v9  ;;  %1177 = vmatprep.mubr.f32.mxu0 %v5883_v0  ;;  %v5009_v9 = vld [vmem:[%s8118_s30 + $0x40] sm:$0xff] }
 0x25a   : > { %v5140_v37 = vpack.c.bf16 %v1327_v34, %v1325_v33  ;;  %v5138_v38 = vpack.c.bf16 %v1328_v36, %v1326_v56 }
 0x25c   : > { %5003 = vmatmul.mubr.msk.f32.gmra.mrb[12].mxu0 %vm1088_vm7, %v1053_v8  ;;  %5139 = vmatprep.subr.bf16.mxu1 %v5138_v38 }
 0x25d   : > { %5141 = vmatpush1.bf16.msra.mxu1 %v5140_v37  ;;  %1183 = vmatprep.mubr.f32.mxu0 %v5883_v0 }
 0x260   : > { %5004 = vmatmul.mubr.msk.f32.gmra.mrb[14].mxu0 %vm1088_vm7, %v1054_v39  ;;  %5013 = vmatmul.mubr.msk.f32.vlgmr.msra.gmra.mrb[4].mxu1 %vm1088_vm7, %v5009_v9 }
 0x261   : > { %1266 = vmatprep.mubr.f32.mxu0 %v5883_v0  ;;  %1411 = vmatprep.mubr.f32.mxu1 %v5883_v0 }
 0x263   : > { %v1445_v54 = vpop.permute.xlu0 %1444 }
 0x264   : > { %5005 = vmatmul.mubr.msk.f32.vlgmr.msra.gmra.mrb[8].mxu0 %vm1088_vm7, %v4997_v40  ;;  %5014 = vmatmul.mubr.msk.f32.gmra.mrb[6].mxu1 %vm1088_vm7, %v5010_v41 }
 0x265   : > { %1272 = vmatprep.mubr.f32.mxu0 %v5883_v0  ;;  %1417 = vmatprep.mubr.f32.mxu1 %v5883_v0 }
 0x267   : > { %v1450_v3 = vpop.permute.xlu1 %1449  ;;  %v1455_v17 = vpop.permute.xlu0 %1454 }
 0x268   : > { %5006 = vmatmul.mubr.msk.f32.gmra.mrb[10].mxu0 %vm1088_vm7, %v4998_v42  ;;  %5015 = vmatmul.mubr.msk.f32.gmra.mrb[0].mxu1 %vm1088_vm7, %v5011_v44 }
 0x269   : > { %1423 = vmatprep.mubr.f32.mxu1 %v5883_v0  ;;  %1659 = vmatprep.mubr.f32.mxu0 %v5883_v0 }
 0x26b   : > { %v1460_v8 = vpop.permute.xlu1 %1459 }
 0x26c   : > { %5016 = vmatmul.mubr.msk.f32.gmra.mrb[2].mxu1 %vm1088_vm7, %v5012_v45 }
 0x26d   : > { %2161 = vmatprep.mubr.f32.mxu1 %v5883_v0 }
 0x32f   : > { %v1179_v47 = vpop.f32.mrb[12].mxu0 }
 0x330   : > { %v1181_v48 = vpop.f32.mrb[13].mxu0 }
 0x333   : > { %v1407_v49 = vpop.f32.mrb[4].mxu1  ;;  %v1185_v50 = vpop.f32.mrb[14].mxu0 }
 0x334   : > { %v1409_v51 = vpop.f32.mrb[5].mxu1  ;;  %v1187_v52 = vpop.f32.mrb[15].mxu0 }
 0x337   : > { %v1268_v55 = vpop.f32.mrb[8].mxu0  ;;  %v1413_v57 = vpop.f32.mrb[6].mxu1 }
 0x338   : > { %v5310_v59 = vadd.f32 %v1407_v49, %v1268_v55  ;;  %v1270_v60 = vpop.f32.mrb[9].mxu0  ;;  %v1415_v1 = vpop.f32.mrb[7].mxu1 }
 0x339   : > { %v5311_v2 = vadd.f32 %v1409_v51, %v1270_v60 }
 0x33a   : > { %v6543_v4 = vadd.f32 %v5310_v59, %v1445_v54 }
 0x33b   : > { %v6545_v5 = vadd.f32 %v5311_v2, %v1445_v54  ;;  %v1274_v6 = vpop.f32.mrb[10].mxu0  ;;  %v1419_v7 = vpop.f32.mrb[0].mxu1 }
 0x33c   : > { %v1478_v10 = vmul.f32 0.044715, %v6543_v4  ;;  %v5312_v12 = vadd.f32 %v1413_v57, %v1274_v6  ;;  %v5314_v13 = vadd.f32 %v1419_v7, %v1179_v47  ;;  %v1276_v15 = vpop.f32.mrb[11].mxu0  ;;  %v1421_v16 = vpop.f32.mrb[1].mxu1 }
 0x33d   : > { %v1479_v18 = vmul.f32 0.044715, %v6545_v5  ;;  %v5313_v21 = vadd.f32 %v1415_v1, %v1276_v15  ;;  %v5315_v22 = vadd.f32 %v1421_v16, %v1181_v48 }
 0x33e   : > { %v6549_v23 = vadd.f32 %v5312_v12, %v1450_v3  ;;  %v1466_v20 = vadd.f32 %v5314_v13, %v1455_v17  ;;  %v1486_v26 = vmul.f32 %v1478_v10, %v6543_v4 }
 0x33f   : > { %v6552_v27 = vadd.f32 %v5313_v21, %v1450_v3  ;;  %v6554_v30 = vadd.f32 %v5315_v22, %v1455_v17  ;;  %v1425_v53 = vpop.f32.mrb[2].mxu1  ;;  %v1487_v32 = vmul.f32 %v1479_v18, %v6545_v5 }
 0x340   : > { %v1480_v33 = vmul.f32 0.044715, %v6549_v23  ;;  %v1482_v56 = vmul.f32 0.044715, %v1466_v20  ;;  %v5316_v34 = vadd.f32 %v1425_v53, %v1185_v50  ;;  %v1427_v36 = vpop.f32.mrb[3].mxu1  ;;  %v1494_v39 = vmul.f32 %v1486_v26, %v6543_v4 }
 0x341   : > { %v1483_v37 = vmul.f32 0.044715, %v6554_v30  ;;  %v5317_v38 = vadd.f32 %v1427_v36, %v1187_v52  ;;  %v1495_v41 = vmul.f32 %v1487_v32, %v6545_v5  ;;  %v1481_v42 = vmul.f32 0.044715, %v6552_v27 }
 0x342   : > { %v1468_v9 = vadd.f32 %v5316_v34, %v1460_v8  ;;  %v1490_v40 = vmul.f32 %v1482_v56, %v1466_v20  ;;  %v1502_v45 = vadd.f32 %v1494_v39, %v6543_v4  ;;  %v1488_v47 = vmul.f32 %v1480_v33, %v6549_v23 }
 0x343   : > { %v6562_v44 = vadd.f32 %v5317_v38, %v1460_v8  ;;  %v1503_v50 = vadd.f32 %v1495_v41, %v6545_v5  ;;  %v1491_v55 = vmul.f32 %v1483_v37, %v6554_v30  ;;  %v1489_v3 = vmul.f32 %v1481_v42, %v6552_v27 }
 0x344   : > { %v1484_v48 = vmul.f32 0.044715, %v1468_v9  ;;  %v1498_v49 = vmul.f32 %v1490_v40, %v1466_v20  ;;  %v1510_v52 = vmul.f32 0.7978846, %v1502_v45  ;;  %v1496_v54 = vmul.f32 %v1488_v47, %v6549_v23 }
 0x345   : > { %v1485_v51 = vmul.f32 0.044715, %v6562_v44  ;;  %v1511_v60 = vmul.f32 0.7978846, %v1503_v50  ;;  %v1499_v2 = vmul.f32 %v1491_v55, %v6554_v30  ;;  %v1497_v13 = vmul.f32 %v1489_v3, %v6552_v27 }
 0x346   : > { %v1506_v57 = vadd.f32 %v1498_v49, %v1466_v20  ;;  %v1492_v59 = vmul.f32 %v1484_v48, %v1468_v9  ;;  %5554 = vtanh.f32 %v1510_v52  ;;  %v1504_v1 = vadd.f32 %v1496_v54, %v6549_v23 }
 0x347   : > { %5556 = vtanh.f32 %v1511_v60  ;;  %v1507_v12 = vadd.f32 %v1499_v2, %v6554_v30  ;;  %v1493_v15 = vmul.f32 %v1485_v51, %v6562_v44  ;;  %v1505_v18 = vadd.f32 %v1497_v13, %v6552_v27  ;;  %v1932_v13 = vld [vmem:[%s8121_s6 + $0x8] sm:$0xff] }
 0x348   : > { %v1514_v6 = vmul.f32 0.7978846, %v1506_v57  ;;  %v1500_v7 = vmul.f32 %v1492_v59, %v1468_v9  ;;  %v1512_v10 = vmul.f32 0.7978846, %v1504_v1  ;;  %v1474_v37 = vmul.f32 0.5, %v1466_v20 }
 0x349   : > { %v1515_v17 = vmul.f32 0.7978846, %v1507_v12  ;;  %v1501_v21 = vmul.f32 %v1493_v15, %v6562_v44  ;;  %v1513_v26 = vmul.f32 0.7978846, %v1505_v18  ;;  %v1470_v39 = vmul.f32 0.5, %v6543_v4  ;;  %v1933_v12 = vld [vmem:[%s8121_s6 + $0x10] sm:$0xff] }
 0x34a   : > { %5558 = vtanh.f32 %v1514_v6  ;;  %v1508_v16 = vadd.f32 %v1500_v7, %v1468_v9  ;;  %v1472_v40 = vmul.f32 0.5, %v6549_v23  ;;  %v1476_v20 = vmul.f32 0.5, %v1468_v9  ;;  %v1934_v15 = vld [vmem:[%s8121_s6 + $0x18] sm:$0xff] }
 0x34b   : > { %5560 = vtanh.f32 %v1512_v10  ;;  %v1509_v53 = vadd.f32 %v1501_v21, %v6562_v44  ;;  %v1471_v4 = vmul.f32 0.5, %v6545_v5  ;;  %v1473_v23 = vmul.f32 0.5, %v6552_v27  ;;  %v1931_v10 = vld [vmem:[%s8121_s6] sm:$0xff]  ;;  %s8125_s6 = smov 2  }
 0x34c   : > { %v1516_v22 = vmul.f32 0.7978846, %v1508_v16  ;;  %5562 = vtanh.f32 %v1515_v17  ;;  %v1475_v1 = vmul.f32 0.5, %v6554_v30  ;;  %v1477_v9 = vmul.f32 0.5, %v6562_v44 }
 0x34d   : > { %v1517_v32 = vmul.f32 0.7978846, %v1509_v53 }
 0x34e   : > { %5564 = vtanh.f32 %v1516_v22 }
 0x34f   : > { %5566 = vtanh.f32 %v1513_v26 }
 0x350   : > { %v5555_v33 = vpop.eup %5554  ;;  %5568 = vtanh.f32 %v1517_v32 }
 0x351   : > { %v5557_v56 = vpop.eup %5556  ;;  %v1526_v36 = vadd.f32 1.0, %v5555_v33 }
 0x352   : > { %v1527_v49 = vadd.f32 1.0, %v5557_v56 }
 0x353   : > { %v6583_v48 = vmul.f32 %v1526_v36, %v1470_v39 }
 0x354   : > { %v5559_v34 = vpop.eup %5558  ;;  %v6596_v2 = vmul.f32 %v1527_v49, %v1471_v4 }
 0x355   : > { %v5561_v8 = vpop.eup %5560  ;;  %v1530_v38 = vadd.f32 1.0, %v5559_v34 }
 0x356   : > { %v1528_v41 = vadd.f32 1.0, %v5561_v8  ;;  %v5563_v42 = vpop.eup %5562 }
 0x357   : > { %v6581_v45 = vmul.f32 %v1530_v38, %v1474_v37  ;;  %v1531_v54 = vadd.f32 1.0, %v5563_v42 }
 0x358   : > { %v5565_v47 = vpop.eup %5564  ;;  %v6585_v50 = vmul.f32 %v1528_v41, %v1472_v40 }
 0x359   : > { %v5567_v51 = vpop.eup %5566  ;;  %1555 = vrot.lane.b32.xlu0 %v6581_v45, %s8120_s22  ;;  %v1532_v52 = vadd.f32 1.0, %v5565_v47  ;;  %v6607_v27 = vmul.f32 %v1531_v54, %v1475_v1 }
 0x35a   : > { %v1529_v55 = vadd.f32 1.0, %v5567_v51  ;;  %v5152_v57 = vpack.c.bf16 %v6585_v50, %v6583_v48  ;;  %v5569_v59 = vpop.eup %5568 }
 0x35b   : > { %v6593_v60 = vmul.f32 %v1532_v52, %v1476_v20  ;;  %v1533_v6 = vadd.f32 1.0, %v5569_v59 }
 0x35c   : > { %v6598_v3 = vmul.f32 %v1529_v55, %v1473_v23 }
 0x35d   : > { %1557 = vrot.lane.b32.xlu1 %v6593_v60, %s8120_s22  ;;  %1551 = vrot.lane.b32.xlu0 %v6583_v48, %s8120_s22  ;;  %v5156_v5 = vpack.c.bf16 %v6593_v60, %v6581_v45  ;;  %v6609_v7 = vmul.f32 %v1533_v6, %v1477_v9 }
 0x35e   : > { %v5150_v30 = vpack.c.bf16 %v6598_v3, %v6596_v2 }
 0x35f   : > { %v5154_v44 = vpack.c.bf16 %v6609_v7, %v6607_v27 }
 0x361   : > { %1559 = vrot.lane.b32.xlu0 %v6596_v2, %s8120_s22  ;;  %1553 = vrot.lane.b32.xlu1 %v6585_v50, %s8120_s22 }
 0x365   : > { %1563 = vrot.lane.b32.xlu0 %v6607_v27, %s8120_s22  ;;  %1561 = vrot.lane.b32.xlu1 %v6598_v3, %s8120_s22 }
 0x369   : > { %1790 = vrot.lane.b32.xlu0 %v6583_v48, %s5886_s5  ;;  %1565 = vrot.lane.b32.xlu1 %v6609_v7, %s8120_s22  ;;  %s8070_s22 = smov 120  }
 0x36d   : > { %1798 = vrot.lane.b32.xlu0 %v6596_v2, %s5886_s5  ;;  %1792 = vrot.lane.b32.xlu1 %v6585_v50, %s5886_s5  ;;  %v1549_v50 = vld [vmem:[%s8122_s23 + $0x10] sm:$0xff] }
 0x371   : > { %1794 = vrot.lane.b32.xlu0 %v6581_v45, %s5886_s5  ;;  %1796 = vrot.lane.b32.xlu1 %v6593_v60, %s5886_s5  ;;  %v1550_v45 = vld [vmem:[%s8122_s23 + $0x18] sm:$0xff] }
 0x375   : > { %1802 = vrot.lane.b32.xlu0 %v6607_v27, %s5886_s5  ;;  %1800 = vrot.lane.b32.xlu1 %v6598_v3, %s5886_s5  ;;  %v1547_v3 = vld [vmem:[%s8122_s23] sm:$0xff] }
 0x379   : > { %1937 = vperm.xlu0 %5536, %v1931_v10   ;;  %1804 = vrot.lane.b32.xlu1 %v6609_v7, %s5886_s5  ;;  %s8066_s5 = smov 2  }
 0x37d   : > { %1947 = vperm.xlu0 %5536, %v1933_v12   ;;  %1942 = vperm.xlu1 %5537, %v1932_v13  }
 0x381   : > { %1952 = vperm.xlu1 %5537, %v1934_v15  }
 0x3cb   : > { %v1556_v16 = vpop.permute.xlu0 %1555 }
 0x3cf   : > { %v1558_v17 = vpop.permute.xlu1 %1557  ;;  %v1552_v18 = vpop.permute.xlu0 %1551 }
 0x3d3   : > { %v1560_v21 = vpop.permute.xlu0 %1559  ;;  %v1554_v22 = vpop.permute.xlu1 %1553 }
 0x3d4   : > { %v1567_v26 = vsel %vm1071_vm10, %v1552_v18, %v1560_v21  ;;  %v1571_v53 = vsel %vm1071_vm10, %v1560_v21, %v1552_v18  ;;  %v5017_v21 = vld [vmem:[%s8122_s23 + $0x20] sm:$0xff] }
 0x3d5   : > { %v1575_v36 = vmul.f32 %v6427_v28, %v1571_v53  ;;  %v1576_v8 = vmul.f32 %v6430_v29, %v1567_v26 }
 0x3d7   : > { %v1564_v32 = vpop.permute.xlu0 %1563  ;;  %v1562_v33 = vpop.permute.xlu1 %1561 }
 0x3d8   : > { %v1568_v56 = vsel %vm1071_vm10, %v1554_v22, %v1562_v33  ;;  %v1572_v34 = vsel %vm1071_vm10, %v1562_v33, %v1554_v22  ;;  %v1569_v39 = vsel %vm1071_vm10, %v1556_v16, %v1564_v32  ;;  %v1573_v40 = vsel %vm1071_vm10, %v1564_v32, %v1556_v16 }
 0x3d9   : > { %v1577_v37 = vmul.f32 %v6427_v28, %v1572_v34  ;;  %v1578_v38 = vmul.f32 %v6430_v29, %v1568_v56  ;;  %v1579_v52 = vmul.f32 %v6427_v28, %v1573_v40  ;;  %v1580_v4 = vmul.f32 %v6430_v29, %v1569_v39  ;;  %v5018_v34 = vld [vmem:[%s8122_s23 + $0x28] sm:$0xff]  ;;  %v5032_v39 = vld [vmem:[%s8122_s23 + $0x58] sm:$0xff] }
 0x3db   : > { %v5144_v41 = vpack.c.bf16 %v1577_v37, %v1575_v36  ;;  %v1791_v42 = vpop.permute.xlu0 %1790  ;;  %v1566_v47 = vpop.permute.xlu1 %1565  ;;  %v5142_v49 = vpack.c.bf16 %v1578_v38, %v1576_v8  ;;  %v5029_v8 = vld [vmem:[%s8122_s23 + $0x40] sm:$0xff]  ;;  %v5030_v37 = vld [vmem:[%s8122_s23 + $0x48] sm:$0xff]  ;;  %v5031_v38 = vld [vmem:[%s8122_s23 + $0x50] sm:$0xff] }
 0x3dc   : > { %v1570_v51 = vsel %vm1071_vm10, %v1558_v17, %v1566_v47  ;;  %v1574_v20 = vsel %vm1071_vm10, %v1566_v47, %v1558_v17  ;;  %vm790_vm10 = vcmp.lt.s32.totalorder %v6419_v24, 60 }
 0x3dd   : > { %v1581_v54 = vmul.f32 %v6427_v28, %v1574_v20  ;;  %v1582_v23 = vmul.f32 %v6430_v29, %v1570_v51  ;;  %5143 = vmatprep.subr.bf16.mxu0 %v5142_v49  ;;  %v1548_v29 = vld [vmem:[%s8122_s23 + $0x8] sm:$0xff] }
 0x3de   : > { %5145 = vmatpush1.bf16.msra.mxu0 %v5144_v41 }
 0x3df   : > { %v5148_v55 = vpack.c.bf16 %v1581_v54, %v1579_v52  ;;  %v1793_v59 = vpop.permute.xlu1 %1792  ;;  %v5146_v1 = vpack.c.bf16 %v1582_v23, %v1580_v4  ;;  %v1799_v2 = vpop.permute.xlu0 %1798 }
 0x3e0   : > { %v1810_v28 = vsel %vm1312_vm13, %v1799_v2, %v1791_v42  ;;  %v1806_v60 = vsel %vm1312_vm13, %v1791_v42, %v1799_v2 }
 0x3e1   : > { %5147 = vmatprep.subr.bf16.mxu0 %v5146_v1  ;;  %v1815_v12 = vmul.f32 %v6463_v63, %v1810_v28  ;;  %v1814_v18 = vmul.f32 %v6460_v62, %v1806_v60 }
 0x3e2   : > { %5149 = vmatpush1.bf16.msra.mxu0 %v5148_v55 }
 0x3e3   : > { %v1797_v9 = vpop.permute.xlu1 %1796  ;;  %5151 = vmatprep.subr.bf16.mxu0 %v5150_v30  ;;  %v1795_v6 = vpop.permute.xlu0 %1794 }
 0x3e5   : > { %5021 = vmatmul.mubr.msk.f32.vlgmr.msra.gmra.mrb[16].mxu0 %vm1088_vm7, %v1547_v3 }
 0x3e6   : > { %5153 = vmatpush1.bf16.msra.mxu0 %v5152_v57  ;;  %1665 = vmatprep.mubr.f32.mxu0 %v5883_v0 }
 0x3e7   : > { %v1801_v10 = vpop.permute.xlu1 %1800  ;;  %5155 = vmatprep.subr.bf16.mxu0 %v5154_v44  ;;  %v1803_v7 = vpop.permute.xlu0 %1802 }
 0x3e8   : > { %v1811_v30 = vsel %vm1312_vm13, %v1801_v10, %v1793_v59  ;;  %v1807_v44 = vsel %vm1312_vm13, %v1793_v59, %v1801_v10  ;;  %v1808_v22 = vsel %vm1312_vm13, %v1795_v6, %v1803_v7 }
 0x3e9   : > { %v1817_v48 = vmul.f32 %v6463_v63, %v1811_v30  ;;  %5022 = vmatmul.mubr.msk.f32.gmra.mrb[18].mxu0 %vm1088_vm7, %v1548_v29  ;;  %v1816_v15 = vmul.f32 %v6460_v62, %v1807_v44  ;;  %v1818_v56 = vmul.f32 %v6460_v62, %v1808_v22 }
 0x3ea   : > { %5157 = vmatpush1.bf16.msra.mxu0 %v5156_v5  ;;  %1671 = vmatprep.mubr.f32.mxu0 %v5883_v0  ;;  %v1812_v5 = vsel %vm1312_vm13, %v1803_v7, %v1795_v6 }
 0x3eb   : > { %v1805_v57 = vpop.permute.xlu1 %1804  ;;  %v5158_v27 = vpack.c.bf16 %v1817_v48, %v1815_v12  ;;  %v1819_v26 = vmul.f32 %v6463_v63, %v1812_v5  ;;  %v5160_v53 = vpack.c.bf16 %v1816_v15, %v1814_v18 }
 0x3ec   : > { %v1813_v13 = vsel %vm1312_vm13, %v1805_v57, %v1797_v9  ;;  %v1809_v16 = vsel %vm1312_vm13, %v1797_v9, %v1805_v57  ;;  %vm4153_vm13 = vcmp.lt.s32.totalorder %v6415_v19, 8 }
 0x3ed   : > { %5023 = vmatmul.mubr.msk.f32.gmra.mrb[20].mxu0 %vm1088_vm7, %v1549_v50  ;;  %5159 = vmatprep.subr.bf16.mxu0 %v5158_v27  ;;  %v1821_v17 = vmul.f32 %v6463_v63, %v1813_v13  ;;  %v1820_v32 = vmul.f32 %v6460_v62, %v1809_v16  ;;  %v5019_v63 = vld [vmem:[%s8122_s23 + $0x30] sm:$0xff]  ;;  %v5020_v62 = vld [vmem:[%s8122_s23 + $0x38] sm:$0xff] }
 0x3ee   : > { %1677 = vmatprep.mubr.f32.mxu0 %v5883_v0 }
 0x3ef   : > { %v5162_v33 = vpack.c.bf16 %v1821_v17, %v1819_v26  ;;  %v5164_v36 = vpack.c.bf16 %v1820_v32, %v1818_v56 }
 0x3f1   : > { %5024 = vmatmul.mubr.msk.f32.gmra.mrb[22].mxu0 %vm1088_vm7, %v1550_v45 }
 0x3f2   : > { %1760 = vmatprep.mubr.f32.mxu0 %v5883_v0 }
 0x3f5   : > { %5025 = vmatmul.mubr.msk.f32.vlgmr.msra.gmra.mrb[16].mxu0 %vm1088_vm7, %v5017_v21 }
 0x3f6   : > { %5161 = vmatpush1.bf16.msra.mxu0 %v5160_v53  ;;  %1766 = vmatprep.mubr.f32.mxu0 %v5883_v0 }
 0x3f7   : > { %5163 = vmatprep.subr.bf16.mxu0 %v5162_v33 }
 0x3f8   : > { %v1938_v40 = vpop.permute.xlu0 %1937 }
 0x3f9   : > { %5026 = vmatmul.mubr.msk.f32.gmra.mrb[18].mxu0 %vm1088_vm7, %v5018_v34 }
 0x3fa   : > { %5165 = vmatpush1.bf16.msra.mxu0 %v5164_v36  ;;  %1772 = vmatprep.mubr.f32.mxu0 %v5883_v0 }
 0x3fc   : > { %v1943_v20 = vpop.permute.xlu1 %1942  ;;  %v1948_v9 = vpop.permute.xlu0 %1947 }
 0x3fd   : > { %5027 = vmatmul.mubr.msk.f32.gmra.mrb[20].mxu0 %vm1088_vm7, %v5019_v63 }
 0x3fe   : > { %1778 = vmatprep.mubr.f32.mxu0 %v5883_v0 }
 0x400   : > { %v1953_v27 = vpop.permute.xlu1 %1952 }
 0x401   : > { %5028 = vmatmul.mubr.msk.f32.gmra.mrb[22].mxu0 %vm1088_vm7, %v5020_v62 }
 0x402   : > { %1898 = vmatprep.mubr.f32.mxu0 %v5883_v0 }
 0x405   : > { %5033 = vmatmul.mubr.msk.f32.vlgmr.msra.gmra.mrb[16].mxu0 %vm1088_vm7, %v5029_v8 }
 0x406   : > { %1904 = vmatprep.mubr.f32.mxu0 %v5883_v0 }
 0x409   : > { %5034 = vmatmul.mubr.msk.f32.gmra.mrb[18].mxu0 %vm1088_vm7, %v5030_v37 }
 0x40a   : > { %1910 = vmatprep.mubr.f32.mxu0 %v5883_v0 }
 0x40d   : > { %5035 = vmatmul.mubr.msk.f32.gmra.mrb[20].mxu0 %vm1088_vm7, %v5031_v38 }
 0x40e   : > { %1916 = vmatprep.mubr.f32.mxu0 %v5883_v0 }
 0x411   : > { %5036 = vmatmul.mubr.msk.f32.gmra.mrb[22].mxu0 %vm1088_vm7, %v5032_v39 }
 0x412   : > { %2655 = vmatprep.mubr.f32.mxu0 %v5883_v0 }
 0x4d8   : > { %v1900_v41 = vpop.f32.mrb[16].mxu0 }
 0x4d9   : > { %v1955_v42 = vadd.f32 %v1938_v40, %v1900_v41  ;;  %v1902_v47 = vpop.f32.mrb[17].mxu0 }
 0x4da   : > { %v1956_v49 = vadd.f32 %v1938_v40, %v1902_v47 }
 0x4db   : > { %v6771_v51 = vadd.f32 %v1955_v42, %v6295_v31 }
 0x4dc   : > { %v6774_v52 = vadd.f32 %v1956_v49, %v6300_v35  ;;  %v1906_v4 = vpop.f32.mrb[18].mxu0 }
 0x4dd   : > { %v1957_v54 = vadd.f32 %v1943_v20, %v1906_v4  ;;  %v1908_v23 = vpop.f32.mrb[19].mxu0  ;;  %v1979_v55 = vmul.f32 0.044715, %v6771_v51 }
 0x4de   : > { %v1958_v59 = vadd.f32 %v1943_v20, %v1908_v23  ;;  %v1980_v1 = vmul.f32 0.044715, %v6774_v52  ;;  %v1971_v23 = vmul.f32 0.5, %v6771_v51 }
 0x4df   : > { %v6779_v2 = vadd.f32 %v1957_v54, %v6307_v43  ;;  %v1987_v3 = vmul.f32 %v1979_v55, %v6771_v51 }
 0x4e0   : > { %v6783_v31 = vadd.f32 %v1958_v59, %v6313_v46  ;;  %v1912_v28 = vpop.f32.mrb[20].mxu0  ;;  %v1988_v35 = vmul.f32 %v1980_v1, %v6774_v52 }
 0x4e1   : > { %v1959_v29 = vadd.f32 %v1948_v9, %v1912_v28  ;;  %v1914_v6 = vpop.f32.mrb[21].mxu0  ;;  %v1995_v10 = vmul.f32 %v1987_v3, %v6771_v51  ;;  %v1981_v30 = vmul.f32 0.044715, %v6779_v2 }
 0x4e2   : > { %v1960_v12 = vadd.f32 %v1948_v9, %v1914_v6  ;;  %v1996_v48 = vmul.f32 %v1988_v35, %v6774_v52  ;;  %v1982_v43 = vmul.f32 0.044715, %v6783_v31  ;;  %v1973_v6 = vmul.f32 0.5, %v6779_v2 }
 0x4e3   : > { %v6791_v50 = vadd.f32 %v1959_v29, %v6323_v58  ;;  %v2003_v46 = vadd.f32 %v1995_v10, %v6771_v51  ;;  %v1989_v57 = vmul.f32 %v1981_v30, %v6779_v2  ;;  %v1972_v29 = vmul.f32 0.5, %v6774_v52 }
 0x4e4   : > { %v1918_v7 = vpop.f32.mrb[22].mxu0  ;;  %v2004_v44 = vadd.f32 %v1996_v48, %v6774_v52  ;;  %v1990_v13 = vmul.f32 %v1982_v43, %v6783_v31  ;;  %v6798_v45 = vadd.f32 %v1960_v12, %v6329_v61  ;;  %v1974_v30 = vmul.f32 0.5, %v6783_v31 }
 0x4e5   : > { %v1961_v60 = vadd.f32 %v1953_v27, %v1918_v7  ;;  %v1920_v5 = vpop.f32.mrb[23].mxu0  ;;  %v2011_v15 = vmul.f32 0.7978846, %v2003_v46  ;;  %v1997_v16 = vmul.f32 %v1989_v57, %v6779_v2  ;;  %v1983_v21 = vmul.f32 0.044715, %v6791_v50 }
 0x4e6   : > { %v1962_v58 = vadd.f32 %v1953_v27, %v1920_v5  ;;  %v2012_v17 = vmul.f32 0.7978846, %v2004_v44  ;;  %v1998_v18 = vmul.f32 %v1990_v13, %v6783_v31  ;;  %v1984_v56 = vmul.f32 0.044715, %v6798_v45 }
 0x4e7   : > { %v6804_v22 = vadd.f32 %v1961_v60, %v6339_v11  ;;  %5570 = vtanh.f32 %v2011_v15  ;;  %v2005_v26 = vadd.f32 %v1997_v16, %v6779_v2  ;;  %v1991_v32 = vmul.f32 %v1983_v21, %v6791_v50 }
 0x4e8   : > { %v6808_v61 = vadd.f32 %v1962_v58, %v6345_v14  ;;  %5572 = vtanh.f32 %v2012_v17  ;;  %v2006_v53 = vadd.f32 %v1998_v18, %v6783_v31  ;;  %v1992_v63 = vmul.f32 %v1984_v56, %v6798_v45 }
 0x4e9   : > { %v2013_v33 = vmul.f32 0.7978846, %v2005_v26  ;;  %v1999_v36 = vmul.f32 %v1991_v32, %v6791_v50  ;;  %v1985_v11 = vmul.f32 0.044715, %v6804_v22  ;;  %v1975_v7 = vmul.f32 0.5, %v6791_v50 }
 0x4ea   : > { %v2014_v34 = vmul.f32 0.7978846, %v2006_v53  ;;  %v1986_v62 = vmul.f32 0.044715, %v6808_v61  ;;  %v2000_v37 = vmul.f32 %v1992_v63, %v6798_v45  ;;  %v1976_v17 = vmul.f32 0.5, %v6798_v45  ;;  %v2436_v63 = vld [vmem:[%s8123_s8 + $0x10] sm:$0xff] }
 0x4eb   : > { %5574 = vtanh.f32 %v2013_v33  ;;  %v2007_v14 = vadd.f32 %v1999_v36, %v6791_v50  ;;  %v1993_v8 = vmul.f32 %v1985_v11, %v6804_v22  ;;  %v1977_v18 = vmul.f32 0.5, %v6804_v22  ;;  %v2434_v11 = vld [vmem:[%s8123_s8] sm:$0xff] }
 0x4ec   : > { %5576 = vtanh.f32 %v2014_v34  ;;  %v1994_v38 = vmul.f32 %v1986_v62, %v6808_v61  ;;  %v2008_v41 = vadd.f32 %v2000_v37, %v6798_v45  ;;  %v1978_v26 = vmul.f32 0.5, %v6808_v61  ;;  %v2435_v62 = vld [vmem:[%s8123_s8 + $0x8] sm:$0xff] }
 0x4ed   : > { %v2015_v39 = vmul.f32 0.7978846, %v2007_v14  ;;  %v2001_v40 = vmul.f32 %v1993_v8, %v6804_v22  ;;  %v2437_v14 = vld [vmem:[%s8123_s8 + $0x18] sm:$0xff]  ;;  %s4970_s8 = sshll.u32 %s6235_s11, 5 }
 0x4ee   : > { %v2002_v42 = vmul.f32 %v1994_v38, %v6808_v61  ;;  %v2016_v20 = vmul.f32 0.7978846, %v2008_v41 }
 0x4ef   : > { %5578 = vtanh.f32 %v2015_v39  ;;  %v2009_v47 = vadd.f32 %v2001_v40, %v6804_v22  ;;  %v6906_v39 = vsel %vm772_vm14, 1.0, %v5883_v0  ;;  %v6909_v40 = vsel %vm773_vm15, 1.0, %v5883_v0 }
 0x4f0   : > { %v2010_v4 = vadd.f32 %v2002_v42, %v6808_v61  ;;  %5580 = vtanh.f32 %v2016_v20  ;;  %vm803_vm14 = vcmp.lt.s32.totalorder %v6421_v25, 56  ;;  %vm4355_vm15 = vcmp.lt.s32.totalorder %v6415_v19, 120  ;;  %v4513_v19 = vld [vmem:[#allocation10 + $0x18] sm:$0xff] }
 0x4f1   : > { %v5571_v49 = vpop.eup %5570  ;;  %v2017_v59 = vmul.f32 0.7978846, %v2009_v47 }
 0x4f2   : > { %v5573_v54 = vpop.eup %5572  ;;  %v2027_v55 = vadd.f32 1.0, %v5571_v49  ;;  %v2018_v1 = vmul.f32 0.7978846, %v2010_v4 }
 0x4f3   : > { %v2028_v9 = vadd.f32 1.0, %v5573_v54  ;;  %5582 = vtanh.f32 %v2017_v59 }
 0x4f4   : > { %v6827_v3 = vmul.f32 %v2027_v55, %v1971_v23  ;;  %5584 = vtanh.f32 %v2018_v1 }
 0x4f5   : > { %v5575_v28 = vpop.eup %5574  ;;  %v6834_v48 = vmul.f32 %v2028_v9, %v1972_v29 }
 0x4f6   : > { %v5577_v35 = vpop.eup %5576  ;;  %2052 = vrot.lane.b32.xlu0 %v6827_v3, %s8066_s5  ;;  %v2029_v10 = vadd.f32 1.0, %v5575_v28 }
 0x4f7   : > { %v2030_v12 = vadd.f32 1.0, %v5577_v35 }
 0x4f8   : > { %v6836_v43 = vmul.f32 %v2029_v10, %v1973_v6 }
 0x4f9   : > { %v6838_v46 = vmul.f32 %v2030_v12, %v1974_v30  ;;  %v5579_v57 = vpop.eup %5578 }
 0x4fa   : > { %2060 = vrot.lane.b32.xlu0 %v6834_v48, %s8066_s5  ;;  %2054 = vrot.lane.b32.xlu1 %v6836_v43, %s8066_s5  ;;  %v5176_v27 = vpack.c.bf16 %v6836_v43, %v6827_v3  ;;  %v2031_v44 = vadd.f32 1.0, %v5579_v57  ;;  %v5581_v60 = vpop.eup %5580 }
 0x4fb   : > { %v5174_v13 = vpack.c.bf16 %v6838_v46, %v6834_v48  ;;  %v2032_v16 = vadd.f32 1.0, %v5581_v60 }
 0x4fc   : > { %v6849_v5 = vmul.f32 %v2031_v44, %v1975_v7 }
 0x4fd   : > { %v5583_v15 = vpop.eup %5582  ;;  %v6858_v32 = vmul.f32 %v2032_v16, %v1976_v17 }
 0x4fe   : > { %2062 = vrot.lane.b32.xlu1 %v6838_v46, %s8066_s5  ;;  %v5585_v58 = vpop.eup %5584  ;;  %2056 = vrot.lane.b32.xlu0 %v6849_v5, %s8066_s5  ;;  %v2033_v21 = vadd.f32 1.0, %v5583_v15 }
 0x4ff   : > { %v2034_v53 = vadd.f32 1.0, %v5585_v58 }
 0x500   : > { %v6860_v33 = vmul.f32 %v2033_v21, %v1977_v18  ;;  %v2048_v21 = vld [vmem:[%s8124_s7] sm:$0xff] }
 0x501   : > { %v6862_v56 = vmul.f32 %v2034_v53, %v1978_v26  ;;  %v6944_v53 = vsel %vm779_vm1, 1.0, %v5883_v0 }
 0x502   : > { %2064 = vrot.lane.b32.xlu0 %v6858_v32, %s8066_s5  ;;  %2058 = vrot.lane.b32.xlu1 %v6860_v33, %s8066_s5  ;;  %v5180_v34 = vpack.c.bf16 %v6860_v33, %v6849_v5 }
 0x503   : > { %v5178_v36 = vpack.c.bf16 %v6862_v56, %v6858_v32 }
 0x506   : > { %2292 = vrot.lane.b32.xlu0 %v6827_v3, %s5888_s18  ;;  %2066 = vrot.lane.b32.xlu1 %v6862_v56, %s8066_s5  ;;  %v2050_v3 = vld [vmem:[%s8124_s7 + $0x10] sm:$0xff]  ;;  %s5890_s5 = smov 124  }
 0x50a   : > { %2300 = vrot.lane.b32.xlu0 %v6834_v48, %s5888_s18  ;;  %2294 = vrot.lane.b32.xlu1 %v6836_v43, %s5888_s18  ;;  %v2049_v48 = vld [vmem:[%s8124_s7 + $0x8] sm:$0xff] }
 0x50e   : > { %2296 = vrot.lane.b32.xlu0 %v6849_v5, %s5888_s18  ;;  %2302 = vrot.lane.b32.xlu1 %v6838_v46, %s5888_s18 }
 0x512   : > { %2304 = vrot.lane.b32.xlu0 %v6858_v32, %s5888_s18  ;;  %2298 = vrot.lane.b32.xlu1 %v6860_v33, %s5888_s18  ;;  %v2051_v33 = vld [vmem:[%s8124_s7 + $0x18] sm:$0xff] }
 0x516   : > { %2440 = vperm.xlu0 %5536, %v2434_v11   ;;  %2306 = vrot.lane.b32.xlu1 %v6862_v56, %s5888_s18  ;;  %v6982_v56 = vsel %vm778_vm3, 1.0, %v5883_v0 }
 0x51a   : > { %2450 = vperm.xlu0 %5536, %v2436_v63   ;;  %2445 = vperm.xlu1 %5537, %v2435_v62  }
 0x51e   : > { %2455 = vperm.xlu1 %5537, %v2437_v14  }
 0x568   : > { %v2053_v8 = vpop.permute.xlu0 %2052 }
 0x56c   : > { %v2061_v37 = vpop.permute.xlu0 %2060  ;;  %v2055_v38 = vpop.permute.xlu1 %2054 }
 0x56d   : > { %v2069_v41 = vsel %vm2068_vm0, %v2053_v8, %v2061_v37  ;;  %v2073_v42 = vsel %vm2068_vm0, %v2061_v37, %v2053_v8 }
 0x56e   : > { %v2077_v54 = vmul.f32 %v6906_v39, %v2073_v42  ;;  %v2078_v23 = vmul.f32 %v6909_v40, %v2069_v41 }
 0x570   : > { %v2063_v47 = vpop.permute.xlu1 %2062  ;;  %v2057_v4 = vpop.permute.xlu0 %2056 }
 0x571   : > { %v2070_v49 = vsel %vm2068_vm0, %v2055_v38, %v2063_v47  ;;  %v2074_v20 = vsel %vm2068_vm0, %v2063_v47, %v2055_v38  ;;  %v5037_v47 = vld [vmem:[%s8124_s7 + $0x20] sm:$0xff] }
 0x572   : > { %v2079_v55 = vmul.f32 %v6906_v39, %v2074_v20  ;;  %v2080_v59 = vmul.f32 %v6909_v40, %v2070_v49 }
 0x574   : > { %v5168_v1 = vpack.c.bf16 %v2079_v55, %v2077_v54  ;;  %v5166_v9 = vpack.c.bf16 %v2080_v59, %v2078_v23  ;;  %v2065_v28 = vpop.permute.xlu0 %2064  ;;  %v2059_v35 = vpop.permute.xlu1 %2058  ;;  %v5038_v59 = vld [vmem:[%s8124_s7 + $0x28] sm:$0xff] }
 0x575   : > { %v2071_v29 = vsel %vm2068_vm0, %v2057_v4, %v2065_v28  ;;  %v2075_v6 = vsel %vm2068_vm0, %v2065_v28, %v2057_v4  ;;  %v5040_v28 = vld [vmem:[%s8124_s7 + $0x38] sm:$0xff] }
 0x576   : > { %5167 = vmatprep.subr.bf16.mxu1 %v5166_v9  ;;  %v2081_v7 = vmul.f32 %v6906_v39, %v2075_v6  ;;  %v2082_v44 = vmul.f32 %v6909_v40, %v2071_v29  ;;  %v5039_v9 = vld [vmem:[%s8124_s7 + $0x30] sm:$0xff]  ;;  %v5050_v29 = vld [vmem:[%s8124_s7 + $0x48] sm:$0xff] }
 0x577   : > { %5169 = vmatpush1.bf16.msra.mxu1 %v5168_v1  ;;  %v5051_v6 = vld [vmem:[%s8124_s7 + $0x50] sm:$0xff] }
 0x578   : > { %v2293_v10 = vpop.permute.xlu0 %2292  ;;  %v2067_v30 = vpop.permute.xlu1 %2066 }
 0x579   : > { %v2072_v12 = vsel %vm2068_vm0, %v2059_v35, %v2067_v30  ;;  %v2076_v57 = vsel %vm2068_vm0, %v2067_v30, %v2059_v35  ;;  %v5049_v35 = vld [vmem:[%s8124_s7 + $0x40] sm:$0xff] }
 0x57a   : > { %v2083_v60 = vmul.f32 %v6906_v39, %v2076_v57  ;;  %v2084_v15 = vmul.f32 %v6909_v40, %v2072_v12 }
 0x57c   : > { %v5172_v16 = vpack.c.bf16 %v2083_v60, %v2081_v7  ;;  %v2295_v58 = vpop.permute.xlu1 %2294  ;;  %v5170_v17 = vpack.c.bf16 %v2084_v15, %v2082_v44  ;;  %v2301_v18 = vpop.permute.xlu0 %2300 }
 0x57d   : > { %v2313_v11 = vsel %vm2308_vm2, %v2301_v18, %v2293_v10 }
 0x57e   : > { %5171 = vmatprep.subr.bf16.mxu1 %v5170_v17  ;;  %v2318_v46 = vmul.f32 %v6944_v53, %v2313_v11 }
 0x57f   : > { %5173 = vmatpush1.bf16.msra.mxu1 %v5172_v16 }
 0x580   : > { %5175 = vmatprep.subr.bf16.mxu1 %v5174_v13  ;;  %v2303_v26 = vpop.permute.xlu1 %2302  ;;  %v2297_v13 = vpop.permute.xlu0 %2296 }
 0x581   : > { %v2314_v63 = vsel %vm2308_vm2, %v2303_v26, %v2295_v58 }
 0x582   : > { %v2320_v62 = vmul.f32 %v6944_v53, %v2314_v63  ;;  %5041 = vmatmul.mubr.msk.f32.vlgmr.msra.gmra.mrb[8].mxu1 %vm1088_vm7, %v2048_v21 }
 0x583   : > { %5177 = vmatpush1.bf16.msra.mxu1 %v5176_v27  ;;  %2167 = vmatprep.mubr.f32.mxu1 %v5883_v0  ;;  %v2310_v27 = vsel %vm2308_vm2, %v2295_v58, %v2303_v26 }
 0x584   : > { %v2299_v14 = vpop.permute.xlu1 %2298  ;;  %5179 = vmatprep.subr.bf16.mxu1 %v5178_v36  ;;  %v5182_v8 = vpack.c.bf16 %v2320_v62, %v2318_v46  ;;  %v2305_v32 = vpop.permute.xlu0 %2304  ;;  %v2319_v36 = vmul.f32 %v6982_v56, %v2310_v27 }
 0x585   : > { %v2315_v37 = vsel %vm2308_vm2, %v2305_v32, %v2297_v13  ;;  %v2311_v49 = vsel %vm2308_vm2, %v2297_v13, %v2305_v32 }
 0x586   : > { %5042 = vmatmul.mubr.msk.f32.gmra.mrb[10].mxu1 %vm1088_vm7, %v2049_v48  ;;  %v2322_v20 = vmul.f32 %v6944_v53, %v2315_v37  ;;  %v2321_v55 = vmul.f32 %v6982_v56, %v2311_v49 }
 0x587   : > { %5181 = vmatpush1.bf16.msra.mxu1 %v5180_v34  ;;  %2173 = vmatprep.mubr.f32.mxu1 %v5883_v0  ;;  %v2309_v34 = vsel %vm2308_vm2, %v2293_v10, %v2301_v18  ;;  %v5052_v10 = vld [vmem:[%s8124_s7 + $0x58] sm:$0xff]  ;;  %s8072_s7 = smov 8  }
 0x588   : > { %v2307_v43 = vpop.permute.xlu1 %2306  ;;  %5183 = vmatprep.subr.bf16.mxu1 %v5182_v8  ;;  %v2317_v42 = vmul.f32 %v6982_v56, %v2309_v34 }
 0x589   : > { %v2316_v5 = vsel %vm2308_vm2, %v2307_v43, %v2299_v14  ;;  %v2312_v38 = vsel %vm2308_vm2, %v2299_v14, %v2307_v43 }
 0x58a   : > { %5043 = vmatmul.mubr.msk.f32.gmra.mrb[12].mxu1 %vm1088_vm7, %v2050_v3  ;;  %v2324_v41 = vmul.f32 %v6944_v53, %v2316_v5  ;;  %v5184_v4 = vpack.c.bf16 %v2319_v36, %v2317_v42  ;;  %v2323_v54 = vmul.f32 %v6982_v56, %v2312_v38 }
 0x58b   : > { %2179 = vmatprep.mubr.f32.mxu1 %v5883_v0 }
 0x58c   : > { %v5186_v23 = vpack.c.bf16 %v2324_v41, %v2322_v20  ;;  %v5188_v1 = vpack.c.bf16 %v2323_v54, %v2321_v55 }
 0x58e   : > { %5044 = vmatmul.mubr.msk.f32.gmra.mrb[14].mxu1 %vm1088_vm7, %v2051_v33 }
 0x58f   : > { %2262 = vmatprep.mubr.f32.mxu1 %v5883_v0 }
 0x592   : > { %5045 = vmatmul.mubr.msk.f32.vlgmr.msra.gmra.mrb[8].mxu1 %vm1088_vm7, %v5037_v47 }
 0x593   : > { %5185 = vmatpush1.bf16.msra.mxu1 %v5184_v4  ;;  %2268 = vmatprep.mubr.f32.mxu1 %v5883_v0 }
 0x594   : > { %5187 = vmatprep.subr.bf16.mxu1 %v5186_v23 }
 0x595   : > { %v2441_v30 = vpop.permute.xlu0 %2440 }
 0x596   : > { %5046 = vmatmul.mubr.msk.f32.gmra.mrb[10].mxu1 %vm1088_vm7, %v5038_v59 }
 0x597   : > { %5189 = vmatpush1.bf16.msra.mxu1 %v5188_v1  ;;  %2274 = vmatprep.mubr.f32.mxu1 %v5883_v0 }
 0x599   : > { %v2446_v15 = vpop.permute.xlu1 %2445  ;;  %v2451_v48 = vpop.permute.xlu0 %2450 }
 0x59a   : > { %5047 = vmatmul.mubr.msk.f32.gmra.mrb[12].mxu1 %vm1088_vm7, %v5039_v9 }
 0x59b   : > { %2280 = vmatprep.mubr.f32.mxu1 %v5883_v0 }
 0x59d   : > { %v2456_v38 = vpop.permute.xlu1 %2455 }
 0x59e   : > { %5048 = vmatmul.mubr.msk.f32.gmra.mrb[14].mxu1 %vm1088_vm7, %v5040_v28 }
 0x59f   : > { %2401 = vmatprep.mubr.f32.mxu1 %v5883_v0 }
 0x5a2   : > { %5053 = vmatmul.mubr.msk.f32.vlgmr.msra.gmra.mrb[8].mxu1 %vm1088_vm7, %v5049_v35 }
 0x5a3   : > { %2407 = vmatprep.mubr.f32.mxu1 %v5883_v0 }
 0x5a6   : > { %5054 = vmatmul.mubr.msk.f32.gmra.mrb[10].mxu1 %vm1088_vm7, %v5050_v29 }
 0x5a7   : > { %2413 = vmatprep.mubr.f32.mxu1 %v5883_v0 }
 0x5aa   : > { %5055 = vmatmul.mubr.msk.f32.gmra.mrb[12].mxu1 %vm1088_vm7, %v5051_v6 }
 0x5ab   : > { %2419 = vmatprep.mubr.f32.mxu1 %v5883_v0 }
 0x5ae   : > { %5056 = vmatmul.mubr.msk.f32.gmra.mrb[14].mxu1 %vm1088_vm7, %v5052_v10 }
 0x5af   : > { %3157 = vmatprep.mubr.f32.mxu1 %v5883_v0 }
 0x675   : > { %v2403_v12 = vpop.f32.mrb[8].mxu1 }
 0x676   : > { %v7040_v57 = vadd.f32 %v2441_v30, %v2403_v12  ;;  %v2405_v7 = vpop.f32.mrb[9].mxu1 }
 0x677   : > { %v7042_v44 = vadd.f32 %v2441_v30, %v2405_v7 }
 0x678   : > { %v2474_v60 = vmul.f32 0.044715, %v7040_v57 }
 0x679   : > { %v2475_v16 = vmul.f32 0.044715, %v7042_v44  ;;  %v2409_v58 = vpop.f32.mrb[10].mxu1 }
 0x67a   : > { %v2482_v17 = vmul.f32 %v2474_v60, %v7040_v57  ;;  %v7047_v18 = vadd.f32 %v2446_v15, %v2409_v58  ;;  %v2411_v21 = vpop.f32.mrb[11].mxu1 }
 0x67b   : > { %v2483_v26 = vmul.f32 %v2475_v16, %v7042_v44  ;;  %v7050_v11 = vadd.f32 %v2446_v15, %v2411_v21 }
 0x67c   : > { %v2476_v63 = vmul.f32 0.044715, %v7047_v18  ;;  %v2490_v62 = vmul.f32 %v2482_v17, %v7040_v57 }
 0x67d   : > { %v2477_v46 = vmul.f32 0.044715, %v7050_v11  ;;  %v2415_v13 = vpop.f32.mrb[12].mxu1  ;;  %v2491_v14 = vmul.f32 %v2483_v26, %v7042_v44 }
 0x67e   : > { %v2484_v8 = vmul.f32 %v2476_v63, %v7047_v18  ;;  %v7057_v3 = vadd.f32 %v2451_v48, %v2415_v13  ;;  %v2417_v43 = vpop.f32.mrb[13].mxu1  ;;  %v2498_v27 = vadd.f32 %v2490_v62, %v7040_v57 }
 0x67f   : > { %v2485_v32 = vmul.f32 %v2477_v46, %v7050_v11  ;;  %v7061_v5 = vadd.f32 %v2451_v48, %v2417_v43  ;;  %v2499_v33 = vadd.f32 %v2491_v14, %v7042_v44  ;;  %v2466_v46 = vmul.f32 0.5, %v7040_v57 }
 0x680   : > { %v2478_v34 = vmul.f32 0.044715, %v7057_v3  ;;  %v2506_v36 = vmul.f32 0.7978846, %v2498_v27  ;;  %v2492_v37 = vmul.f32 %v2484_v8, %v7047_v18 }
 0x681   : > { %v2479_v41 = vmul.f32 0.044715, %v7061_v5  ;;  %v2421_v42 = vpop.f32.mrb[14].mxu1  ;;  %v2507_v47 = vmul.f32 0.7978846, %v2499_v33  ;;  %v2493_v49 = vmul.f32 %v2485_v32, %v7050_v11  ;;  %v2467_v33 = vmul.f32 0.5, %v7042_v44 }
 0x682   : > { %v2486_v20 = vmul.f32 %v2478_v34, %v7057_v3  ;;  %v7069_v4 = vadd.f32 %v2456_v38, %v2421_v42  ;;  %v2423_v54 = vpop.f32.mrb[15].mxu1  ;;  %5586 = vtanh.f32 %v2506_v36  ;;  %v2500_v23 = vadd.f32 %v2492_v37, %v7047_v18 }
 0x683   : > { %v2487_v55 = vmul.f32 %v2479_v41, %v7061_v5  ;;  %v2465_v59 = vadd.f32 %v2456_v38, %v2423_v54  ;;  %5588 = vtanh.f32 %v2507_v47  ;;  %v2501_v1 = vadd.f32 %v2493_v49, %v7050_v11 }
 0x684   : > { %v2480_v9 = vmul.f32 0.044715, %v7069_v4  ;;  %v2508_v28 = vmul.f32 0.7978846, %v2500_v23  ;;  %v2494_v35 = vmul.f32 %v2486_v20, %v7057_v3  ;;  %v2468_v34 = vmul.f32 0.5, %v7047_v18 }
 0x685   : > { %v2481_v29 = vmul.f32 0.044715, %v2465_v59  ;;  %v2509_v6 = vmul.f32 0.7978846, %v2501_v1  ;;  %v2495_v10 = vmul.f32 %v2487_v55, %v7061_v5  ;;  %v2469_v37 = vmul.f32 0.5, %v7050_v11 }
 0x686   : > { %v2488_v30 = vmul.f32 %v2480_v9, %v7069_v4  ;;  %5590 = vtanh.f32 %v2508_v28  ;;  %v2502_v12 = vadd.f32 %v2494_v35, %v7057_v3  ;;  %v2470_v44 = vmul.f32 0.5, %v7057_v3 }
 0x687   : > { %v2489_v7 = vmul.f32 %v2481_v29, %v2465_v59  ;;  %5592 = vtanh.f32 %v2509_v6  ;;  %v2503_v60 = vadd.f32 %v2495_v10, %v7061_v5  ;;  %v2471_v3 = vmul.f32 0.5, %v7061_v5 }
 0x688   : > { %v2510_v15 = vmul.f32 0.7978846, %v2502_v12  ;;  %v2496_v16 = vmul.f32 %v2488_v30, %v7069_v4  ;;  %v2472_v9 = vmul.f32 0.5, %v7069_v4  ;;  %v2473_v35 = vmul.f32 0.5, %v2465_v59  ;;  %v2929_v12 = vld [vmem:[%s8126_s10 + $0x10] sm:$0xff] }
 0x689   : > { %v2511_v58 = vmul.f32 0.7978846, %v2503_v60  ;;  %v2497_v17 = vmul.f32 %v2489_v7, %v2465_v59  ;;  %v2928_v7 = vld [vmem:[%s8126_s10 + $0x8] sm:$0xff]  ;;  %v2930_v60 = vld [vmem:[%s8126_s10 + $0x18] sm:$0xff] }
 0x68a   : > { %5594 = vtanh.f32 %v2510_v15  ;;  %v2504_v21 = vadd.f32 %v2496_v16, %v7069_v4 }
 0x68b   : > { %5596 = vtanh.f32 %v2511_v58  ;;  %v2505_v26 = vadd.f32 %v2497_v17, %v2465_v59  ;;  %v2927_v59 = vld [vmem:[%s8126_s10] sm:$0xff]  ;;  %s730_s10 = scalar_lea.vmem [#allocation11], %s4970_s8  ;;  %s5893_s8 = smov [#allocation11]  }
 0x68c   : > { %v5587_v63 = vpop.eup %5586  ;;  %v2512_v62 = vmul.f32 0.7978846, %v2504_v21 }
 0x68d   : > { %v5589_v48 = vpop.eup %5588  ;;  %v2522_v13 = vadd.f32 1.0, %v5587_v63  ;;  %v2513_v14 = vmul.f32 0.7978846, %v2505_v26 }
 0x68e   : > { %5598 = vtanh.f32 %v2512_v62  ;;  %v2523_v43 = vadd.f32 1.0, %v5589_v48 }
 0x68f   : > { %v7083_v8 = vmul.f32 %v2522_v13, %v2466_v46  ;;  %5600 = vtanh.f32 %v2513_v14 }
 0x690   : > { %v5591_v27 = vpop.eup %5590  ;;  %v7090_v38 = vmul.f32 %v2523_v43, %v2467_v33 }
 0x691   : > { %v5593_v32 = vpop.eup %5592  ;;  %2547 = vrot.lane.b32.xlu0 %v7083_v8, %s8125_s6  ;;  %v2524_v36 = vadd.f32 1.0, %v5591_v27 }
 0x692   : > { %v2525_v57 = vadd.f32 1.0, %v5593_v32 }
 0x693   : > { %v7092_v41 = vmul.f32 %v2524_v36, %v2468_v34 }
 0x694   : > { %v5595_v42 = vpop.eup %5594  ;;  %v7094_v47 = vmul.f32 %v2525_v57, %v2469_v37 }
 0x695   : > { %v5597_v49 = vpop.eup %5596  ;;  %2555 = vrot.lane.b32.xlu0 %v7090_v38, %s8125_s6  ;;  %2549 = vrot.lane.b32.xlu1 %v7092_v41, %s8125_s6  ;;  %v2526_v18 = vadd.f32 1.0, %v5595_v42  ;;  %v5200_v11 = vpack.c.bf16 %v7092_v41, %v7083_v8 }
 0x696   : > { %v5198_v20 = vpack.c.bf16 %v7094_v47, %v7090_v38  ;;  %v2527_v23 = vadd.f32 1.0, %v5597_v49 }
 0x697   : > { %v7105_v54 = vmul.f32 %v2526_v18, %v2470_v44 }
 0x698   : > { %v5599_v55 = vpop.eup %5598  ;;  %v7113_v6 = vmul.f32 %v2527_v23, %v2471_v3 }
 0x699   : > { %v5601_v1 = vpop.eup %5600  ;;  %2557 = vrot.lane.b32.xlu1 %v7094_v47, %s8125_s6  ;;  %2551 = vrot.lane.b32.xlu0 %v7105_v54, %s8125_s6  ;;  %v2528_v28 = vadd.f32 1.0, %v5599_v55 }
 0x69a   : > { %v2529_v29 = vadd.f32 1.0, %v5601_v1 }
 0x69b   : > { %v7115_v10 = vmul.f32 %v2528_v28, %v2472_v9 }
 0x69c   : > { %v7117_v30 = vmul.f32 %v2529_v29, %v2473_v35  ;;  %v2543_v29 = vld [vmem:[#allocation5] sm:$0xff] }
 0x69d   : > { %2559 = vrot.lane.b32.xlu0 %v7113_v6, %s8125_s6  ;;  %2553 = vrot.lane.b32.xlu1 %v7115_v10, %s8125_s6  ;;  %v5204_v5 = vpack.c.bf16 %v7115_v10, %v7105_v54 }
 0x69e   : > { %v5202_v4 = vpack.c.bf16 %v7117_v30, %v7113_v6 }
 0x6a1   : > { %2786 = vrot.lane.b32.xlu0 %v7083_v8, %s5888_s18  ;;  %2561 = vrot.lane.b32.xlu1 %v7117_v30, %s8125_s6  ;;  %v2545_v8 = vld [vmem:[#allocation5 + $0x10] sm:$0xff] }
 0x6a5   : > { %2794 = vrot.lane.b32.xlu0 %v7090_v38, %s5888_s18  ;;  %2788 = vrot.lane.b32.xlu1 %v7092_v41, %s5888_s18 }
 0x6a9   : > { %2790 = vrot.lane.b32.xlu0 %v7105_v54, %s5888_s18  ;;  %2796 = vrot.lane.b32.xlu1 %v7094_v47, %s5888_s18 }
 0x6ad   : > { %2798 = vrot.lane.b32.xlu0 %v7113_v6, %s5888_s18  ;;  %2792 = vrot.lane.b32.xlu1 %v7115_v10, %s5888_s18 }
 0x6b1   : > { %2933 = vperm.xlu0 %5536, %v2927_v59   ;;  %2800 = vrot.lane.b32.xlu1 %v7117_v30, %s5888_s18  ;;  %v2546_v30 = vld [vmem:[#allocation5 + $0x18] sm:$0xff]  ;;  %s8068_s18 = smov 4  }
 0x6b5   : > { %2943 = vperm.xlu0 %5536, %v2929_v12   ;;  %2938 = vperm.xlu1 %5537, %v2928_v7   ;;  %v2544_v7 = vld [vmem:[#allocation5 + $0x8] sm:$0xff] }
 0x6b9   : > { %2948 = vperm.xlu1 %5537, %v2930_v60  }
 0x703   : > { %v2548_v15 = vpop.permute.xlu0 %2547 }
 0x707   : > { %v2556_v16 = vpop.permute.xlu0 %2555  ;;  %v2550_v58 = vpop.permute.xlu1 %2549 }
 0x708   : > { %v2563_v17 = vsel %vm2068_vm0, %v2548_v15, %v2556_v16  ;;  %v2567_v21 = vsel %vm2068_vm0, %v2556_v16, %v2548_v15 }
 0x709   : > { %v2571_v46 = vmul.f32 %v6906_v39, %v2567_v21  ;;  %v2572_v13 = vmul.f32 %v6909_v40, %v2563_v17  ;;  %v2539_v17 = vld [vmem:[#allocation5 + $0x20] sm:$0xff] }
 0x70b   : > { %v2558_v26 = vpop.permute.xlu1 %2557  ;;  %v2552_v63 = vpop.permute.xlu0 %2551 }
 0x70c   : > { %v2564_v62 = vsel %vm2068_vm0, %v2550_v58, %v2558_v26  ;;  %v2568_v48 = vsel %vm2068_vm0, %v2558_v26, %v2550_v58 }
 0x70d   : > { %v2573_v14 = vmul.f32 %v6906_v39, %v2568_v48  ;;  %v2574_v43 = vmul.f32 %v6909_v40, %v2564_v62 }
 0x70f   : > { %v5192_v27 = vpack.c.bf16 %v2573_v14, %v2571_v46  ;;  %v2560_v32 = vpop.permute.xlu0 %2559  ;;  %v2554_v33 = vpop.permute.xlu1 %2553  ;;  %v5190_v34 = vpack.c.bf16 %v2574_v43, %v2572_v13  ;;  %v2540_v13 = vld [vmem:[#allocation5 + $0x28] sm:$0xff]  ;;  %v2542_v43 = vld [vmem:[#allocation5 + $0x38] sm:$0xff] }
 0x710   : > { %v2565_v36 = vsel %vm2068_vm0, %v2552_v63, %v2560_v32  ;;  %v2569_v37 = vsel %vm2068_vm0, %v2560_v32, %v2552_v63  ;;  %v2784_v32 = vld [vmem:[#allocation5 + $0x50] sm:$0xff] }
 0x711   : > { %5191 = vmatprep.subr.bf16.mxu0 %v5190_v34  ;;  %v2575_v18 = vmul.f32 %v6906_v39, %v2569_v37  ;;  %v2576_v23 = vmul.f32 %v6909_v40, %v2565_v36 }
 0x712   : > { %5193 = vmatpush1.bf16.msra.mxu0 %v5192_v27  ;;  %v2783_v27 = vld [vmem:[#allocation5 + $0x48] sm:$0xff] }
 0x713   : > { %v2787_v57 = vpop.permute.xlu0 %2786  ;;  %v2562_v42 = vpop.permute.xlu1 %2561 }
 0x714   : > { %v2566_v49 = vsel %vm2068_vm0, %v2554_v33, %v2562_v42  ;;  %v2570_v44 = vsel %vm2068_vm0, %v2562_v42, %v2554_v33  ;;  %v2785_v33 = vld [vmem:[#allocation5 + $0x58] sm:$0xff]  ;;  %vm802_vm0 = vcmp.lt.s32.totalorder %v6419_v24, 56 }
 0x715   : > { %v2577_v55 = vmul.f32 %v6906_v39, %v2570_v44  ;;  %v2578_v1 = vmul.f32 %v6909_v40, %v2566_v49 }
 0x717   : > { %v5196_v3 = vpack.c.bf16 %v2577_v55, %v2575_v18  ;;  %v2789_v9 = vpop.permute.xlu1 %2788  ;;  %v5194_v28 = vpack.c.bf16 %v2578_v1, %v2576_v23  ;;  %v2795_v35 = vpop.permute.xlu0 %2794 }
 0x718   : > { %v2806_v12 = vsel %vm2308_vm2, %v2795_v35, %v2787_v57  ;;  %v2802_v54 = vsel %vm2308_vm2, %v2787_v57, %v2795_v35 }
 0x719   : > { %5195 = vmatprep.subr.bf16.mxu0 %v5194_v28  ;;  %v2811_v38 = vmul.f32 %v6944_v53, %v2806_v12  ;;  %v2810_v58 = vmul.f32 %v6982_v56, %v2802_v54 }
 0x71a   : > { %5197 = vmatpush1.bf16.msra.mxu0 %v5196_v3 }
 0x71b   : > { %5199 = vmatprep.subr.bf16.mxu0 %v5198_v20  ;;  %v2797_v59 = vpop.permute.xlu1 %2796  ;;  %v2791_v47 = vpop.permute.xlu0 %2790 }
 0x71c   : > { %v2807_v39 = vsel %vm2308_vm2, %v2797_v59, %v2789_v9 }
 0x71d   : > { %v2813_v40 = vmul.f32 %v6944_v53, %v2807_v39  ;;  %5057 = vmatmul.mubr.msk.f32.vlgmr.msra.gmra.mrb[24].mxu0 %vm1088_vm7, %v2543_v29 }
 0x71e   : > { %5201 = vmatpush1.bf16.msra.mxu0 %v5200_v11  ;;  %2661 = vmatprep.mubr.f32.mxu0 %v5883_v0  ;;  %v2803_v11 = vsel %vm2308_vm2, %v2789_v9, %v2797_v59 }
 0x71f   : > { %v2793_v20 = vpop.permute.xlu1 %2792  ;;  %5203 = vmatprep.subr.bf16.mxu0 %v5202_v4  ;;  %v5206_v60 = vpack.c.bf16 %v2813_v40, %v2811_v38  ;;  %v2799_v15 = vpop.permute.xlu0 %2798  ;;  %v2812_v10 = vmul.f32 %v6982_v56, %v2803_v11 }
 0x720   : > { %v2804_v21 = vsel %vm2308_vm2, %v2791_v47, %v2799_v15 }
 0x721   : > { %5058 = vmatmul.mubr.msk.f32.gmra.mrb[26].mxu0 %vm1088_vm7, %v2544_v7  ;;  %v5208_v63 = vpack.c.bf16 %v2812_v10, %v2810_v58  ;;  %v2814_v46 = vmul.f32 %v6982_v56, %v2804_v21 }
 0x722   : > { %5205 = vmatpush1.bf16.msra.mxu0 %v5204_v5  ;;  %2667 = vmatprep.mubr.f32.mxu0 %v5883_v0  ;;  %v2808_v5 = vsel %vm2308_vm2, %v2799_v15, %v2791_v47 }
 0x723   : > { %v2801_v41 = vpop.permute.xlu1 %2800  ;;  %5207 = vmatprep.subr.bf16.mxu0 %v5206_v60  ;;  %v2815_v26 = vmul.f32 %v6944_v53, %v2808_v5 }
 0x724   : > { %v2809_v6 = vsel %vm2308_vm2, %v2801_v41, %v2793_v20  ;;  %v2805_v4 = vsel %vm2308_vm2, %v2793_v20, %v2801_v41 }
 0x725   : > { %5059 = vmatmul.mubr.msk.f32.gmra.mrb[28].mxu0 %vm1088_vm7, %v2545_v8  ;;  %v2817_v16 = vmul.f32 %v6944_v53, %v2809_v6  ;;  %v2816_v62 = vmul.f32 %v6982_v56, %v2805_v4  ;;  %v2541_v53 = vld [vmem:[#allocation5 + $0x30] sm:$0xff]  ;;  %v2782_v56 = vld [vmem:[#allocation5 + $0x40] sm:$0xff] }
 0x726   : > { %2673 = vmatprep.mubr.f32.mxu0 %v5883_v0 }
 0x727   : > { %v5210_v48 = vpack.c.bf16 %v2817_v16, %v2815_v26  ;;  %v5212_v14 = vpack.c.bf16 %v2816_v62, %v2814_v46 }
 0x729   : > { %5060 = vmatmul.mubr.msk.f32.gmra.mrb[30].mxu0 %vm1088_vm7, %v2546_v30 }
 0x72a   : > { %2756 = vmatprep.mubr.f32.mxu0 %v5883_v0 }
 0x72d   : > { %5061 = vmatmul.mubr.msk.f32.vlgmr.msra.gmra.mrb[24].mxu0 %vm1088_vm7, %v2539_v17 }
 0x72e   : > { %5209 = vmatpush1.bf16.msra.mxu0 %v5208_v63  ;;  %2762 = vmatprep.mubr.f32.mxu0 %v5883_v0 }
 0x72f   : > { %5211 = vmatprep.subr.bf16.mxu0 %v5210_v48 }
 0x730   : > { %v2934_v34 = vpop.permute.xlu0 %2933 }
 0x731   : > { %5062 = vmatmul.mubr.msk.f32.gmra.mrb[26].mxu0 %vm1088_vm7, %v2540_v13 }
 0x732   : > { %5213 = vmatpush1.bf16.msra.mxu0 %v5212_v14  ;;  %2768 = vmatprep.mubr.f32.mxu0 %v5883_v0 }
 0x734   : > { %v2939_v44 = vpop.permute.xlu1 %2938  ;;  %v2944_v59 = vpop.permute.xlu0 %2943 }
 0x735   : > { %5063 = vmatmul.mubr.msk.f32.gmra.mrb[28].mxu0 %vm1088_vm7, %v2541_v53 }
 0x736   : > { %2774 = vmatprep.mubr.f32.mxu0 %v5883_v0 }
 0x738   : > { %v2949_v41 = vpop.permute.xlu1 %2948 }
 0x739   : > { %5064 = vmatmul.mubr.msk.f32.gmra.mrb[30].mxu0 %vm1088_vm7, %v2542_v43 }
 0x73a   : > { %2894 = vmatprep.mubr.f32.mxu0 %v5883_v0 }
 0x73d   : > { %5065 = vmatmul.mubr.msk.f32.vlgmr.msra.gmra.mrb[24].mxu0 %vm1088_vm7, %v2782_v56 }
 0x73e   : > { %2900 = vmatprep.mubr.f32.mxu0 %v5883_v0 }
 0x741   : > { %5066 = vmatmul.mubr.msk.f32.gmra.mrb[26].mxu0 %vm1088_vm7, %v2783_v27 }
 0x742   : > { %2906 = vmatprep.mubr.f32.mxu0 %v5883_v0 }
 0x745   : > { %5067 = vmatmul.mubr.msk.f32.gmra.mrb[28].mxu0 %vm1088_vm7, %v2784_v32 }
 0x746   : > { %2912 = vmatprep.mubr.f32.mxu0 %v5883_v0 }
 0x749   : > { %5068 = vmatmul.mubr.msk.f32.gmra.mrb[30].mxu0 %vm1088_vm7, %v2785_v33 }
 0x74a   : > { %3651 = vmatprep.mubr.f32.mxu0 %v5883_v0 }
 0x810   : > { %v2896_v36 = vpop.f32.mrb[24].mxu0 }
 0x811   : > { %v2951_v37 = vadd.f32 %v2934_v34, %v2896_v36  ;;  %v2898_v57 = vpop.f32.mrb[25].mxu0 }
 0x812   : > { %v2952_v42 = vadd.f32 %v2934_v34, %v2898_v57 }
 0x813   : > { %v7242_v49 = vadd.f32 %v2951_v37, %v6771_v51 }
 0x814   : > { %v7245_v18 = vadd.f32 %v2952_v42, %v6774_v52  ;;  %v2902_v23 = vpop.f32.mrb[26].mxu0 }
 0x815   : > { %v2953_v55 = vadd.f32 %v2939_v44, %v2902_v23  ;;  %v2904_v1 = vpop.f32.mrb[27].mxu0  ;;  %v2975_v3 = vmul.f32 0.044715, %v7242_v49 }
 0x816   : > { %v2954_v9 = vadd.f32 %v2939_v44, %v2904_v1  ;;  %v2976_v28 = vmul.f32 0.044715, %v7245_v18  ;;  %v2967_v1 = vmul.f32 0.5, %v7242_v49 }
 0x817   : > { %v7250_v35 = vadd.f32 %v2953_v55, %v6779_v2  ;;  %v2983_v29 = vmul.f32 %v2975_v3, %v7242_v49 }
 0x818   : > { %v7254_v51 = vadd.f32 %v2954_v9, %v6783_v31  ;;  %v2908_v12 = vpop.f32.mrb[28].mxu0  ;;  %v2984_v52 = vmul.f32 %v2976_v28, %v7245_v18 }
 0x819   : > { %v2955_v39 = vadd.f32 %v2944_v59, %v2908_v12  ;;  %v2910_v40 = vpop.f32.mrb[29].mxu0  ;;  %v2991_v7 = vmul.f32 %v2983_v29, %v7242_v49  ;;  %v2977_v38 = vmul.f32 0.044715, %v7250_v35 }
 0x81a   : > { %v2956_v47 = vadd.f32 %v2944_v59, %v2910_v40  ;;  %v2992_v20 = vmul.f32 %v2984_v52, %v7245_v18  ;;  %v2978_v2 = vmul.f32 0.044715, %v7254_v51  ;;  %v2969_v40 = vmul.f32 0.5, %v7250_v35 }
 0x81b   : > { %v7262_v60 = vadd.f32 %v2955_v39, %v6791_v50  ;;  %v2999_v31 = vadd.f32 %v2991_v7, %v7242_v49  ;;  %v2985_v8 = vmul.f32 %v2977_v38, %v7250_v35  ;;  %v2968_v39 = vmul.f32 0.5, %v7245_v18 }
 0x81c   : > { %v2914_v11 = vpop.f32.mrb[30].mxu0  ;;  %v3000_v15 = vadd.f32 %v2992_v20, %v7245_v18  ;;  %v2986_v6 = vmul.f32 %v2978_v2, %v7254_v51  ;;  %v7269_v30 = vadd.f32 %v2956_v47, %v6798_v45  ;;  %v2970_v38 = vmul.f32 0.5, %v7254_v51 }
 0x81d   : > { %v2957_v54 = vadd.f32 %v2949_v41, %v2914_v11  ;;  %v2916_v10 = vpop.f32.mrb[31].mxu0  ;;  %v3007_v5 = vmul.f32 0.7978846, %v2999_v31  ;;  %v2993_v4 = vmul.f32 %v2985_v8, %v7250_v35  ;;  %v2979_v17 = vmul.f32 0.044715, %v7262_v60 }
 0x81e   : > { %v2958_v50 = vadd.f32 %v2949_v41, %v2916_v10  ;;  %v3008_v16 = vmul.f32 0.7978846, %v3000_v15  ;;  %v2994_v58 = vmul.f32 %v2986_v6, %v7254_v51  ;;  %v2980_v46 = vmul.f32 0.044715, %v7269_v30 }
 0x81f   : > { %v7275_v21 = vadd.f32 %v2957_v54, %v6804_v22  ;;  %5602 = vtanh.f32 %v3007_v5  ;;  %v3001_v26 = vadd.f32 %v2993_v4, %v7250_v35  ;;  %v2987_v62 = vmul.f32 %v2979_v17, %v7262_v60 }
 0x820   : > { %v7279_v45 = vadd.f32 %v2958_v50, %v6808_v61  ;;  %5604 = vtanh.f32 %v3008_v16  ;;  %v3002_v63 = vadd.f32 %v2994_v58, %v7254_v51  ;;  %v2988_v53 = vmul.f32 %v2980_v46, %v7269_v30 }
 0x821   : > { %v3009_v48 = vmul.f32 0.7978846, %v3001_v26  ;;  %v2995_v14 = vmul.f32 %v2987_v62, %v7262_v60  ;;  %v2981_v22 = vmul.f32 0.044715, %v7275_v21  ;;  %v2971_v11 = vmul.f32 0.5, %v7262_v60 }
 0x822   : > { %v3010_v13 = vmul.f32 0.7978846, %v3002_v63  ;;  %v2982_v43 = vmul.f32 0.044715, %v7279_v45  ;;  %v2996_v27 = vmul.f32 %v2988_v53, %v7269_v30  ;;  %v2972_v16 = vmul.f32 0.5, %v7269_v30  ;;  %v3432_v53 = vld [vmem:[%s8127_s12 + $0x10] sm:$0xff] }
 0x823   : > { %5606 = vtanh.f32 %v3009_v48  ;;  %v3003_v61 = vadd.f32 %v2995_v14, %v7262_v60  ;;  %v2989_v56 = vmul.f32 %v2981_v22, %v7275_v21  ;;  %v2973_v58 = vmul.f32 0.5, %v7275_v21  ;;  %v3430_v22 = vld [vmem:[%s8127_s12] sm:$0xff] }
 0x824   : > { %5608 = vtanh.f32 %v3010_v13  ;;  %v2990_v32 = vmul.f32 %v2982_v43, %v7279_v45  ;;  %v3004_v36 = vadd.f32 %v2996_v27, %v7269_v30  ;;  %v2974_v26 = vmul.f32 0.5, %v7279_v45  ;;  %v3431_v43 = vld [vmem:[%s8127_s12 + $0x8] sm:$0xff] }
 0x825   : > { %v3011_v33 = vmul.f32 0.7978846, %v3003_v61  ;;  %v2997_v34 = vmul.f32 %v2989_v56, %v7275_v21  ;;  %v3433_v61 = vld [vmem:[%s8127_s12 + $0x18] sm:$0xff]  ;;  %s4843_s12 = sshll.u32 %s730_s10, 4  ;;  %s7977_s12 = int_to_ptr.vmem [resolvable:$true] %s4843_s12 }
 0x826   : > { %v2998_v37 = vmul.f32 %v2990_v32, %v7279_v45  ;;  %v3012_v44 = vmul.f32 0.7978846, %v3004_v36 }
 0x827   : > { %5610 = vtanh.f32 %v3011_v33  ;;  %v3005_v57 = vadd.f32 %v2997_v34, %v7275_v21  ;;  %v7377_v33 = vsel %vm784_vm4, 1.0, %v5883_v0  ;;  %v7380_v34 = vsel %vm785_vm5, 1.0, %v5883_v0 }
 0x828   : > { %v3006_v23 = vadd.f32 %v2998_v37, %v7279_v45  ;;  %5612 = vtanh.f32 %v3012_v44 }
 0x829   : > { %v5603_v42 = vpop.eup %5602  ;;  %v3013_v9 = vmul.f32 0.7978846, %v3005_v57 }
 0x82a   : > { %v5605_v55 = vpop.eup %5604  ;;  %v3023_v3 = vadd.f32 1.0, %v5603_v42  ;;  %v3014_v28 = vmul.f32 0.7978846, %v3006_v23 }
 0x82b   : > { %v3024_v59 = vadd.f32 1.0, %v5605_v55  ;;  %5614 = vtanh.f32 %v3013_v9 }
 0x82c   : > { %v7298_v29 = vmul.f32 %v3023_v3, %v2967_v1  ;;  %5616 = vtanh.f32 %v3014_v28 }
 0x82d   : > { %v5607_v12 = vpop.eup %5606  ;;  %v7305_v20 = vmul.f32 %v3024_v59, %v2968_v39 }
 0x82e   : > { %v5609_v52 = vpop.eup %5608  ;;  %3048 = vrot.lane.b32.xlu0 %v7298_v29, %s8068_s18  ;;  %v3025_v7 = vadd.f32 1.0, %v5607_v12 }
 0x82f   : > { %v3026_v47 = vadd.f32 1.0, %v5609_v52 }
 0x830   : > { %v7307_v2 = vmul.f32 %v3025_v7, %v2969_v40 }
 0x831   : > { %v7309_v31 = vmul.f32 %v3026_v47, %v2970_v38  ;;  %v5611_v8 = vpop.eup %5610 }
 0x832   : > { %3056 = vrot.lane.b32.xlu0 %v7305_v20, %s8068_s18  ;;  %3050 = vrot.lane.b32.xlu1 %v7307_v2, %s8068_s18  ;;  %v5224_v41 = vpack.c.bf16 %v7307_v2, %v7298_v29  ;;  %v3027_v15 = vadd.f32 1.0, %v5611_v8  ;;  %v5613_v54 = vpop.eup %5612 }
 0x833   : > { %v5222_v6 = vpack.c.bf16 %v7309_v31, %v7305_v20  ;;  %v3028_v4 = vadd.f32 1.0, %v5613_v54 }
 0x834   : > { %v7320_v10 = vmul.f32 %v3027_v15, %v2971_v11 }
 0x835   : > { %v5615_v5 = vpop.eup %5614  ;;  %v7329_v62 = vmul.f32 %v3028_v4, %v2972_v16 }
 0x836   : > { %3058 = vrot.lane.b32.xlu1 %v7309_v31, %s8068_s18  ;;  %v5617_v50 = vpop.eup %5616  ;;  %3052 = vrot.lane.b32.xlu0 %v7320_v10, %s8068_s18  ;;  %v3029_v17 = vadd.f32 1.0, %v5615_v5 }
 0x837   : > { %v3030_v63 = vadd.f32 1.0, %v5617_v50 }
 0x838   : > { %v7331_v48 = vmul.f32 %v3029_v17, %v2973_v58  ;;  %v3044_v17 = vld [vmem:[#allocation7] sm:$0xff] }
 0x839   : > { %v7333_v46 = vmul.f32 %v3030_v63, %v2974_v26  ;;  %v7412_v63 = vsel %vm791_vm8, 1.0, %v5883_v0 }
 0x83a   : > { %3060 = vrot.lane.b32.xlu0 %v7329_v62, %s8068_s18  ;;  %3054 = vrot.lane.b32.xlu1 %v7331_v48, %s8068_s18  ;;  %v5228_v13 = vpack.c.bf16 %v7331_v48, %v7320_v10 }
 0x83b   : > { %v5226_v14 = vpack.c.bf16 %v7333_v46, %v7329_v62 }
 0x83e   : > { %3288 = vrot.lane.b32.xlu0 %v7298_v29, %s5890_s5  ;;  %3062 = vrot.lane.b32.xlu1 %v7333_v46, %s8068_s18  ;;  %v3046_v29 = vld [vmem:[#allocation7 + $0x10] sm:$0xff]  ;;  %s8128_s18 = smov 4  }
 0x842   : > { %3296 = vrot.lane.b32.xlu0 %v7305_v20, %s5890_s5  ;;  %3290 = vrot.lane.b32.xlu1 %v7307_v2, %s5890_s5  ;;  %v3045_v20 = vld [vmem:[#allocation7 + $0x8] sm:$0xff] }
 0x846   : > { %3292 = vrot.lane.b32.xlu0 %v7320_v10, %s5890_s5  ;;  %3298 = vrot.lane.b32.xlu1 %v7309_v31, %s5890_s5  ;;  %v3047_v10 = vld [vmem:[#allocation7 + $0x18] sm:$0xff] }
 0x84a   : > { %3300 = vrot.lane.b32.xlu0 %v7329_v62, %s5890_s5  ;;  %3294 = vrot.lane.b32.xlu1 %v7331_v48, %s5890_s5  ;;  %v7441_v48 = vsel %vm790_vm10, 1.0, %v5883_v0 }
 0x84e   : > { %3436 = vperm.xlu0 %5536, %v3430_v22   ;;  %3302 = vrot.lane.b32.xlu1 %v7333_v46, %s5890_s5 }
 0x852   : > { %3446 = vperm.xlu0 %5536, %v3432_v53   ;;  %3441 = vperm.xlu1 %5537, %v3431_v43  }
 0x856   : > { %3451 = vperm.xlu1 %5537, %v3433_v61  }
 0x8a0   : > { %v3049_v56 = vpop.permute.xlu0 %3048 }
 0x8a4   : > { %v3057_v27 = vpop.permute.xlu0 %3056  ;;  %v3051_v32 = vpop.permute.xlu1 %3050 }
 0x8a5   : > { %v3065_v36 = vsel %vm3064_vm6, %v3049_v56, %v3057_v27  ;;  %v3069_v37 = vsel %vm3064_vm6, %v3057_v27, %v3049_v56 }
 0x8a6   : > { %v3073_v55 = vmul.f32 %v7377_v33, %v3069_v37  ;;  %v3074_v1 = vmul.f32 %v7380_v34, %v3065_v36 }
 0x8a8   : > { %v3059_v57 = vpop.permute.xlu1 %3058  ;;  %v3053_v23 = vpop.permute.xlu0 %3052 }
 0x8a9   : > { %v3066_v42 = vsel %vm3064_vm6, %v3051_v32, %v3059_v57  ;;  %v3070_v44 = vsel %vm3064_vm6, %v3059_v57, %v3051_v32  ;;  %v3040_v57 = vld [vmem:[#allocation7 + $0x20] sm:$0xff] }
 0x8aa   : > { %v3075_v3 = vmul.f32 %v7377_v33, %v3070_v44  ;;  %v3076_v9 = vmul.f32 %v7380_v34, %v3066_v42 }
 0x8ac   : > { %v5216_v28 = vpack.c.bf16 %v3075_v3, %v3073_v55  ;;  %v5214_v59 = vpack.c.bf16 %v3076_v9, %v3074_v1  ;;  %v3061_v12 = vpop.permute.xlu0 %3060  ;;  %v3055_v52 = vpop.permute.xlu1 %3054  ;;  %v3041_v9 = vld [vmem:[#allocation7 + $0x28] sm:$0xff] }
 0x8ad   : > { %v3067_v39 = vsel %vm3064_vm6, %v3053_v23, %v3061_v12  ;;  %v3071_v40 = vsel %vm3064_vm6, %v3061_v12, %v3053_v23  ;;  %v3043_v12 = vld [vmem:[#allocation7 + $0x38] sm:$0xff] }
 0x8ae   : > { %5215 = vmatprep.subr.bf16.mxu1 %v5214_v59  ;;  %v3077_v11 = vmul.f32 %v7377_v33, %v3071_v40  ;;  %v3078_v15 = vmul.f32 %v7380_v34, %v3067_v39  ;;  %v3042_v59 = vld [vmem:[#allocation7 + $0x30] sm:$0xff]  ;;  %v3285_v39 = vld [vmem:[#allocation7 + $0x48] sm:$0xff] }
 0x8af   : > { %5217 = vmatpush1.bf16.msra.mxu1 %v5216_v28  ;;  %v3286_v40 = vld [vmem:[#allocation7 + $0x50] sm:$0xff] }
 0x8b0   : > { %v3289_v7 = vpop.permute.xlu0 %3288  ;;  %v3063_v38 = vpop.permute.xlu1 %3062 }
 0x8b1   : > { %v3068_v47 = vsel %vm3064_vm6, %v3055_v52, %v3063_v38  ;;  %v3072_v8 = vsel %vm3064_vm6, %v3063_v38, %v3055_v52  ;;  %v3284_v52 = vld [vmem:[#allocation7 + $0x40] sm:$0xff] }
 0x8b2   : > { %v3079_v54 = vmul.f32 %v7377_v33, %v3072_v8  ;;  %v3080_v5 = vmul.f32 %v7380_v34, %v3068_v47 }
 0x8b4   : > { %v5220_v4 = vpack.c.bf16 %v3079_v54, %v3077_v11  ;;  %v3291_v50 = vpop.permute.xlu1 %3290  ;;  %v5218_v16 = vpack.c.bf16 %v3080_v5, %v3078_v15  ;;  %v3297_v58 = vpop.permute.xlu0 %3296 }
 0x8b5   : > { %v3309_v22 = vsel %vm3304_vm9, %v3297_v58, %v3289_v7  ;;  %v3305_v46 = vsel %vm3304_vm9, %v3289_v7, %v3297_v58  ;;  %v3287_v7 = vld [vmem:[#allocation7 + $0x58] sm:$0xff] }
 0x8b6   : > { %5219 = vmatprep.subr.bf16.mxu1 %v5218_v16  ;;  %v3314_v31 = vmul.f32 %v7412_v63, %v3309_v22  ;;  %v3313_v37 = vmul.f32 %v7441_v48, %v3305_v46 }
 0x8b7   : > { %5221 = vmatpush1.bf16.msra.mxu1 %v5220_v4 }
 0x8b8   : > { %5223 = vmatprep.subr.bf16.mxu1 %v5222_v6  ;;  %v3299_v26 = vpop.permute.xlu1 %3298  ;;  %v3293_v6 = vpop.permute.xlu0 %3292 }
 0x8b9   : > { %v3310_v53 = vsel %vm3304_vm9, %v3299_v26, %v3291_v50 }
 0x8ba   : > { %v3316_v43 = vmul.f32 %v7412_v63, %v3310_v53  ;;  %5069 = vmatmul.mubr.msk.f32.vlgmr.msra.gmra.mrb[16].mxu1 %vm1088_vm7, %v3044_v17 }
 0x8bb   : > { %5225 = vmatpush1.bf16.msra.mxu1 %v5224_v41  ;;  %3163 = vmatprep.mubr.f32.mxu1 %v5883_v0  ;;  %v3306_v41 = vsel %vm3304_vm9, %v3291_v50, %v3299_v26 }
 0x8bc   : > { %v3295_v61 = vpop.permute.xlu1 %3294  ;;  %5227 = vmatprep.subr.bf16.mxu1 %v5226_v14  ;;  %v5230_v56 = vpack.c.bf16 %v3316_v43, %v3314_v31  ;;  %v3301_v27 = vpop.permute.xlu0 %3300 }
 0x8bd   : > { %v3311_v14 = vsel %vm3304_vm9, %v3301_v27, %v3293_v6  ;;  %v3307_v42 = vsel %vm3304_vm9, %v3293_v6, %v3301_v27 }
 0x8be   : > { %5070 = vmatmul.mubr.msk.f32.gmra.mrb[18].mxu1 %vm1088_vm7, %v3045_v20  ;;  %v3318_v44 = vmul.f32 %v7412_v63, %v3311_v14  ;;  %v3317_v3 = vmul.f32 %v7441_v48, %v3307_v42 }
 0x8bf   : > { %5229 = vmatpush1.bf16.msra.mxu1 %v5228_v13  ;;  %3169 = vmatprep.mubr.f32.mxu1 %v5883_v0  ;;  %v3315_v13 = vmul.f32 %v7441_v48, %v3306_v41 }
 0x8c0   : > { %v3303_v2 = vpop.permute.xlu1 %3302  ;;  %5231 = vmatprep.subr.bf16.mxu1 %v5230_v56 }
 0x8c1   : > { %v3312_v62 = vsel %vm3304_vm9, %v3303_v2, %v3295_v61  ;;  %v3308_v32 = vsel %vm3304_vm9, %v3295_v61, %v3303_v2  ;;  %v5232_v23 = vpack.c.bf16 %v3315_v13, %v3313_v37 }
 0x8c2   : > { %5071 = vmatmul.mubr.msk.f32.gmra.mrb[20].mxu1 %vm1088_vm7, %v3046_v29  ;;  %v3320_v36 = vmul.f32 %v7412_v63, %v3312_v62  ;;  %v3319_v55 = vmul.f32 %v7441_v48, %v3308_v32 }
 0x8c3   : > { %3175 = vmatprep.mubr.f32.mxu1 %v5883_v0 }
 0x8c4   : > { %v5234_v1 = vpack.c.bf16 %v3320_v36, %v3318_v44  ;;  %v5236_v28 = vpack.c.bf16 %v3319_v55, %v3317_v3 }
 0x8c6   : > { %5072 = vmatmul.mubr.msk.f32.gmra.mrb[22].mxu1 %vm1088_vm7, %v3047_v10 }
 0x8c7   : > { %3258 = vmatprep.mubr.f32.mxu1 %v5883_v0 }
 0x8ca   : > { %5073 = vmatmul.mubr.msk.f32.vlgmr.msra.gmra.mrb[16].mxu1 %vm1088_vm7, %v3040_v57 }
 0x8cb   : > { %5233 = vmatpush1.bf16.msra.mxu1 %v5232_v23  ;;  %3264 = vmatprep.mubr.f32.mxu1 %v5883_v0 }
 0x8cc   : > { %5235 = vmatprep.subr.bf16.mxu1 %v5234_v1 }
 0x8cd   : > { %v3437_v38 = vpop.permute.xlu0 %3436 }
 0x8ce   : > { %5074 = vmatmul.mubr.msk.f32.gmra.mrb[18].mxu1 %vm1088_vm7, %v3041_v9 }
 0x8cf   : > { %5237 = vmatpush1.bf16.msra.mxu1 %v5236_v28  ;;  %3270 = vmatprep.mubr.f32.mxu1 %v5883_v0 }
 0x8d1   : > { %v3442_v5 = vpop.permute.xlu1 %3441  ;;  %v3447_v20 = vpop.permute.xlu0 %3446 }
 0x8d2   : > { %5075 = vmatmul.mubr.msk.f32.gmra.mrb[20].mxu1 %vm1088_vm7, %v3042_v59 }
 0x8d3   : > { %3276 = vmatprep.mubr.f32.mxu1 %v5883_v0 }
 0x8d5   : > { %v3452_v32 = vpop.permute.xlu1 %3451 }
 0x8d6   : > { %5076 = vmatmul.mubr.msk.f32.gmra.mrb[22].mxu1 %vm1088_vm7, %v3043_v12 }
 0x8d7   : > { %3397 = vmatprep.mubr.f32.mxu1 %v5883_v0 }
 0x8da   : > { %5077 = vmatmul.mubr.msk.f32.vlgmr.msra.gmra.mrb[16].mxu1 %vm1088_vm7, %v3284_v52 }
 0x8db   : > { %3403 = vmatprep.mubr.f32.mxu1 %v5883_v0 }
 0x8de   : > { %5078 = vmatmul.mubr.msk.f32.gmra.mrb[18].mxu1 %vm1088_vm7, %v3285_v39 }
 0x8df   : > { %3409 = vmatprep.mubr.f32.mxu1 %v5883_v0 }
 0x8e2   : > { %5079 = vmatmul.mubr.msk.f32.gmra.mrb[20].mxu1 %vm1088_vm7, %v3286_v40 }
 0x8e3   : > { %3415 = vmatprep.mubr.f32.mxu1 %v5883_v0 }
 0x8e6   : > { %5080 = vmatmul.mubr.msk.f32.gmra.mrb[22].mxu1 %vm1088_vm7, %v3287_v7 }
 0x8e7   : > { %4047 = vmatprep.mubr.f32.mxu1 %v5883_v0 }
 0x9ad   : > { %v3399_v47 = vpop.f32.mrb[16].mxu1 }
 0x9ae   : > { %v7475_v8 = vadd.f32 %v3437_v38, %v3399_v47  ;;  %v3401_v11 = vpop.f32.mrb[17].mxu1 }
 0x9af   : > { %v7477_v15 = vadd.f32 %v3437_v38, %v3401_v11 }
 0x9b0   : > { %v3470_v54 = vmul.f32 0.044715, %v7475_v8 }
 0x9b1   : > { %v3471_v4 = vmul.f32 0.044715, %v7477_v15  ;;  %v3405_v50 = vpop.f32.mrb[18].mxu1 }
 0x9b2   : > { %v3478_v16 = vmul.f32 %v3470_v54, %v7475_v8  ;;  %v7482_v58 = vadd.f32 %v3442_v5, %v3405_v50  ;;  %v3407_v17 = vpop.f32.mrb[19].mxu1 }
 0x9b3   : > { %v3479_v26 = vmul.f32 %v3471_v4, %v7477_v15  ;;  %v7485_v22 = vadd.f32 %v3442_v5, %v3407_v17 }
 0x9b4   : > { %v3486_v53 = vmul.f32 %v3478_v16, %v7475_v8  ;;  %v3472_v43 = vmul.f32 0.044715, %v7482_v58 }
 0x9b5   : > { %v3487_v31 = vmul.f32 %v3479_v26, %v7477_v15  ;;  %v3473_v6 = vmul.f32 0.044715, %v7485_v22  ;;  %v3411_v61 = vpop.f32.mrb[20].mxu1 }
 0x9b6   : > { %v3494_v56 = vadd.f32 %v3486_v53, %v7475_v8  ;;  %v3480_v29 = vmul.f32 %v3472_v43, %v7482_v58  ;;  %v7493_v2 = vadd.f32 %v3447_v20, %v3411_v61  ;;  %v3413_v41 = vpop.f32.mrb[21].mxu1 }
 0x9b7   : > { %v3495_v27 = vadd.f32 %v3487_v31, %v7477_v15  ;;  %v3481_v62 = vmul.f32 %v3473_v6, %v7485_v22  ;;  %v7497_v10 = vadd.f32 %v3447_v20, %v3413_v41  ;;  %v3462_v31 = vmul.f32 0.5, %v7475_v8 }
 0x9b8   : > { %v3488_v46 = vmul.f32 %v3480_v29, %v7482_v58  ;;  %v3474_v13 = vmul.f32 0.044715, %v7493_v2  ;;  %v3502_v14 = vmul.f32 0.7978846, %v3494_v56 }
 0x9b9   : > { %v3489_v36 = vmul.f32 %v3481_v62, %v7485_v22  ;;  %v3475_v37 = vmul.f32 0.044715, %v7497_v10  ;;  %v3417_v57 = vpop.f32.mrb[22].mxu1  ;;  %v3503_v42 = vmul.f32 0.7978846, %v3495_v27  ;;  %v3463_v62 = vmul.f32 0.5, %v7477_v15 }
 0x9ba   : > { %v3496_v44 = vadd.f32 %v3488_v46, %v7482_v58  ;;  %v3482_v23 = vmul.f32 %v3474_v13, %v7493_v2  ;;  %v3460_v55 = vadd.f32 %v3452_v32, %v3417_v57  ;;  %v3419_v1 = vpop.f32.mrb[23].mxu1  ;;  %5618 = vtanh.f32 %v3502_v14 }
 0x9bb   : > { %v3497_v3 = vadd.f32 %v3489_v36, %v7485_v22  ;;  %v3483_v9 = vmul.f32 %v3475_v37, %v7497_v10  ;;  %v3461_v28 = vadd.f32 %v3452_v32, %v3419_v1  ;;  %5620 = vtanh.f32 %v3503_v42 }
 0x9bc   : > { %v3490_v59 = vmul.f32 %v3482_v23, %v7493_v2  ;;  %v3476_v12 = vmul.f32 0.044715, %v3460_v55  ;;  %v3504_v52 = vmul.f32 0.7978846, %v3496_v44  ;;  %v3464_v46 = vmul.f32 0.5, %v7482_v58 }
 0x9bd   : > { %v3491_v39 = vmul.f32 %v3483_v9, %v7497_v10  ;;  %v3477_v40 = vmul.f32 0.044715, %v3461_v28  ;;  %v3505_v7 = vmul.f32 0.7978846, %v3497_v3  ;;  %v3465_v14 = vmul.f32 0.5, %v7485_v22 }
 0x9be   : > { %v3498_v38 = vadd.f32 %v3490_v59, %v7493_v2  ;;  %v3484_v47 = vmul.f32 %v3476_v12, %v3460_v55  ;;  %5622 = vtanh.f32 %v3504_v52  ;;  %v3466_v15 = vmul.f32 0.5, %v7493_v2 }
 0x9bf   : > { %v3499_v11 = vadd.f32 %v3491_v39, %v7497_v10  ;;  %v3485_v54 = vmul.f32 %v3477_v40, %v3461_v28  ;;  %5624 = vtanh.f32 %v3505_v7  ;;  %v3467_v2 = vmul.f32 0.5, %v7497_v10 }
 0x9c0   : > { %v3492_v5 = vmul.f32 %v3484_v47, %v3460_v55  ;;  %v3506_v4 = vmul.f32 0.7978846, %v3498_v38  ;;  %v3468_v59 = vmul.f32 0.5, %v3460_v55  ;;  %v3469_v52 = vmul.f32 0.5, %v3461_v28 }
 0x9c1   : > { %v3493_v50 = vmul.f32 %v3485_v54, %v3461_v28  ;;  %v3507_v16 = vmul.f32 0.7978846, %v3499_v11  ;;  %v3924_v11 = vld [vmem:[%s8129_s0 + $0x8] sm:$0xff]  ;;  %v3926_v54 = vld [vmem:[%s8129_s0 + $0x18] sm:$0xff] }
 0x9c2   : > { %v3500_v17 = vadd.f32 %v3492_v5, %v3460_v55  ;;  %5626 = vtanh.f32 %v3506_v4  ;;  %v3923_v55 = vld [vmem:[%s8129_s0] sm:$0xff] }
 0x9c3   : > { %v3501_v26 = vadd.f32 %v3493_v50, %v3461_v28  ;;  %5628 = vtanh.f32 %v3507_v16  ;;  %v3925_v28 = vld [vmem:[%s8129_s0 + $0x10] sm:$0xff]  ;;  %s5117_s0 = sshll.u32 %s6028_s29, 8 }
 0x9c4   : > { %v5619_v53 = vpop.eup %5618  ;;  %v3508_v43 = vmul.f32 0.7978846, %v3500_v17  ;;  %s7982_s6 = scalar_lea.hbm %s8137_s14, %s5117_s0 }
 0x9c5   : > { %v5621_v20 = vpop.eup %5620  ;;  %v3518_v6 = vadd.f32 1.0, %v5619_v53  ;;  %v3509_v61 = vmul.f32 0.7978846, %v3501_v26 }
 0x9c6   : > { %5630 = vtanh.f32 %v3508_v43  ;;  %v3519_v29 = vadd.f32 1.0, %v5621_v20 }
 0x9c7   : > { %v7512_v56 = vmul.f32 %v3518_v6, %v3462_v31  ;;  %5632 = vtanh.f32 %v3509_v61 }
 0x9c8   : > { %v5623_v41 = vpop.eup %5622  ;;  %v7519_v32 = vmul.f32 %v3519_v29, %v3463_v62 }
 0x9c9   : > { %v5625_v27 = vpop.eup %5624  ;;  %3543 = vrot.lane.b32.xlu0 %v7512_v56, %s8128_s18  ;;  %v3520_v13 = vadd.f32 1.0, %v5623_v41 }
 0x9ca   : > { %v3521_v8 = vadd.f32 1.0, %v5625_v27 }
 0x9cb   : > { %v7521_v36 = vmul.f32 %v3520_v13, %v3464_v46 }
 0x9cc   : > { %v5627_v37 = vpop.eup %5626  ;;  %v7523_v57 = vmul.f32 %v3521_v8, %v3465_v14 }
 0x9cd   : > { %v5629_v42 = vpop.eup %5628  ;;  %3551 = vrot.lane.b32.xlu0 %v7519_v32, %s8128_s18  ;;  %3545 = vrot.lane.b32.xlu1 %v7521_v36, %s8128_s18  ;;  %v3522_v58 = vadd.f32 1.0, %v5627_v37  ;;  %v5248_v22 = vpack.c.bf16 %v7521_v36, %v7512_v56 }
 0x9ce   : > { %v5246_v44 = vpack.c.bf16 %v7523_v57, %v7519_v32  ;;  %v3523_v1 = vadd.f32 1.0, %v5629_v42 }
 0x9cf   : > { %v7534_v23 = vmul.f32 %v3522_v58, %v3466_v15 }
 0x9d0   : > { %v5631_v3 = vpop.eup %5630  ;;  %v7541_v40 = vmul.f32 %v3523_v1, %v3467_v2 }
 0x9d1   : > { %v5633_v9 = vpop.eup %5632  ;;  %3553 = vrot.lane.b32.xlu1 %v7523_v57, %s8128_s18  ;;  %3547 = vrot.lane.b32.xlu0 %v7534_v23, %s8128_s18  ;;  %v3524_v12 = vadd.f32 1.0, %v5631_v3 }
 0x9d2   : > { %v3525_v39 = vadd.f32 1.0, %v5633_v9 }
 0x9d3   : > { %v7543_v7 = vmul.f32 %v3524_v12, %v3468_v59 }
 0x9d4   : > { %v7545_v38 = vmul.f32 %v3525_v39, %v3469_v52  ;;  %v3539_v39 = vld [vmem:[#allocation8] sm:$0xff] }
 0x9d5   : > { %3555 = vrot.lane.b32.xlu0 %v7541_v40, %s8128_s18  ;;  %3549 = vrot.lane.b32.xlu1 %v7543_v7, %s8128_s18  ;;  %v5252_v47 = vpack.c.bf16 %v7543_v7, %v7534_v23 }
 0x9d6   : > { %v5250_v10 = vpack.c.bf16 %v7545_v38, %v7541_v40 }
 0x9d9   : > { %3782 = vrot.lane.b32.xlu0 %v7512_v56, %s5890_s5  ;;  %3557 = vrot.lane.b32.xlu1 %v7545_v38, %s8128_s18  ;;  %v3541_v56 = vld [vmem:[#allocation8 + $0x10] sm:$0xff]  ;;  %s8132_s18 = sld [smem:[#allocation31_spill]] }
 0x9dd   : > { %3790 = vrot.lane.b32.xlu0 %v7519_v32, %s5890_s5  ;;  %3784 = vrot.lane.b32.xlu1 %v7521_v36, %s5890_s5 }
 0x9df   : > { %v4136_v24 = vld [vmem:[%s8132_s18 + $0x8] sm:$0xff] }
 0x9e1   : > { %3786 = vrot.lane.b32.xlu0 %v7534_v23, %s5890_s5  ;;  %3792 = vrot.lane.b32.xlu1 %v7523_v57, %s5890_s5 }
 0x9e5   : > { %3794 = vrot.lane.b32.xlu0 %v7541_v40, %s5890_s5  ;;  %3788 = vrot.lane.b32.xlu1 %v7543_v7, %s5890_s5 }
 0x9e9   : > { %3929 = vperm.xlu0 %5536, %v3923_v55   ;;  %3796 = vrot.lane.b32.xlu1 %v7545_v38, %s5890_s5  ;;  %v3542_v38 = vld [vmem:[#allocation8 + $0x18] sm:$0xff]  ;;  %s8131_s5 = sld [smem:[#allocation32_spill]] }
 0x9ed   : > { %3939 = vperm.xlu0 %5536, %v3925_v28   ;;  %3934 = vperm.xlu1 %5537, %v3924_v11   ;;  %v3540_v11 = vld [vmem:[#allocation8 + $0x8] sm:$0xff] }
 0x9f1   : > { %3944 = vperm.xlu1 %5537, %v3926_v54  }
 0xa3b   : > { %v3544_v5 = vpop.permute.xlu0 %3543 }
 0xa3f   : > { %v3552_v4 = vpop.permute.xlu0 %3551  ;;  %v3546_v50 = vpop.permute.xlu1 %3545 }
 0xa40   : > { %v3559_v16 = vsel %vm3064_vm6, %v3544_v5, %v3552_v4  ;;  %v3563_v17 = vsel %vm3064_vm6, %v3552_v4, %v3544_v5 }
 0xa41   : > { %v3567_v31 = vmul.f32 %v7377_v33, %v3563_v17  ;;  %v3568_v6 = vmul.f32 %v7380_v34, %v3559_v16  ;;  %v3535_v16 = vld [vmem:[#allocation8 + $0x20] sm:$0xff] }
 0xa43   : > { %v3554_v26 = vpop.permute.xlu1 %3553  ;;  %v3548_v53 = vpop.permute.xlu0 %3547 }
 0xa44   : > { %v3560_v43 = vsel %vm3064_vm6, %v3546_v50, %v3554_v26  ;;  %v3564_v20 = vsel %vm3064_vm6, %v3554_v26, %v3546_v50 }
 0xa45   : > { %v3569_v61 = vmul.f32 %v7377_v33, %v3564_v20  ;;  %v3570_v29 = vmul.f32 %v7380_v34, %v3560_v43 }
 0xa47   : > { %v5240_v41 = vpack.c.bf16 %v3569_v61, %v3567_v31  ;;  %v3556_v27 = vpop.permute.xlu0 %3555  ;;  %v3550_v62 = vpop.permute.xlu1 %3549  ;;  %v5238_v46 = vpack.c.bf16 %v3570_v29, %v3568_v6  ;;  %v3536_v6 = vld [vmem:[#allocation8 + $0x28] sm:$0xff]  ;;  %v3538_v29 = vld [vmem:[#allocation8 + $0x38] sm:$0xff] }
 0xa48   : > { %v3561_v13 = vsel %vm3064_vm6, %v3548_v53, %v3556_v27  ;;  %v3565_v14 = vsel %vm3064_vm6, %v3556_v27, %v3548_v53  ;;  %v3780_v27 = vld [vmem:[#allocation8 + $0x50] sm:$0xff] }
 0xa49   : > { %5239 = vmatprep.subr.bf16.mxu0 %v5238_v46  ;;  %v3571_v58 = vmul.f32 %v7377_v33, %v3565_v14  ;;  %v3572_v1 = vmul.f32 %v7380_v34, %v3561_v13 }
 0xa4a   : > { %5241 = vmatpush1.bf16.msra.mxu0 %v5240_v41  ;;  %v3779_v41 = vld [vmem:[#allocation8 + $0x48] sm:$0xff] }
 0xa4b   : > { %v3783_v8 = vpop.permute.xlu0 %3782  ;;  %v3558_v37 = vpop.permute.xlu1 %3557 }
 0xa4c   : > { %v3562_v42 = vsel %vm3064_vm6, %v3550_v62, %v3558_v37  ;;  %v3566_v15 = vsel %vm3064_vm6, %v3558_v37, %v3550_v62  ;;  %v3781_v62 = vld [vmem:[#allocation8 + $0x58] sm:$0xff] }
 0xa4d   : > { %v3573_v3 = vmul.f32 %v7377_v33, %v3566_v15  ;;  %v3574_v9 = vmul.f32 %v7380_v34, %v3562_v42 }
 0xa4f   : > { %v5244_v2 = vpack.c.bf16 %v3573_v3, %v3571_v58  ;;  %v3785_v59 = vpop.permute.xlu1 %3784  ;;  %v5242_v12 = vpack.c.bf16 %v3574_v9, %v3572_v1  ;;  %v3791_v52 = vpop.permute.xlu0 %3790 }
 0xa50   : > { %v3802_v28 = vsel %vm3304_vm9, %v3791_v52, %v3783_v8  ;;  %v3798_v23 = vsel %vm3304_vm9, %v3783_v8, %v3791_v52 }
 0xa51   : > { %5243 = vmatprep.subr.bf16.mxu0 %v5242_v12  ;;  %v3807_v32 = vmul.f32 %v7412_v63, %v3802_v28  ;;  %v3806_v50 = vmul.f32 %v7441_v48, %v3798_v23 }
 0xa52   : > { %5245 = vmatpush1.bf16.msra.mxu0 %v5244_v2 }
 0xa53   : > { %5247 = vmatprep.subr.bf16.mxu0 %v5246_v44  ;;  %v3793_v55 = vpop.permute.xlu1 %3792  ;;  %v3787_v57 = vpop.permute.xlu0 %3786 }
 0xa54   : > { %v3803_v33 = vsel %vm3304_vm9, %v3793_v55, %v3785_v59 }
 0xa55   : > { %v3809_v34 = vmul.f32 %v7412_v63, %v3803_v33  ;;  %5081 = vmatmul.mubr.msk.f32.vlgmr.msra.gmra.mrb[32].mxu0 %vm1088_vm7, %v3539_v39 }
 0xa56   : > { %5249 = vmatpush1.bf16.msra.mxu0 %v5248_v22  ;;  %3657 = vmatprep.mubr.f32.mxu0 %v5883_v0  ;;  %v3799_v22 = vsel %vm3304_vm9, %v3785_v59, %v3793_v55 }
 0xa57   : > { %v3789_v44 = vpop.permute.xlu1 %3788  ;;  %5251 = vmatprep.subr.bf16.mxu0 %v5250_v10  ;;  %v5254_v54 = vpack.c.bf16 %v3809_v34, %v3807_v32  ;;  %v3795_v5 = vpop.permute.xlu0 %3794  ;;  %v3808_v7 = vmul.f32 %v7441_v48, %v3799_v22 }
 0xa58   : > { %v3800_v17 = vsel %vm3304_vm9, %v3787_v57, %v3795_v5 }
 0xa59   : > { %5082 = vmatmul.mubr.msk.f32.gmra.mrb[34].mxu0 %vm1088_vm7, %v3540_v11  ;;  %v5256_v53 = vpack.c.bf16 %v3808_v7, %v3806_v50  ;;  %v3810_v31 = vmul.f32 %v7441_v48, %v3800_v17 }
 0xa5a   : > { %5253 = vmatpush1.bf16.msra.mxu0 %v5252_v47  ;;  %3663 = vmatprep.mubr.f32.mxu0 %v5883_v0  ;;  %v3804_v47 = vsel %vm3304_vm9, %v3795_v5, %v3787_v57 }
 0xa5b   : > { %v3797_v36 = vpop.permute.xlu1 %3796  ;;  %5255 = vmatprep.subr.bf16.mxu0 %v5254_v54  ;;  %v3811_v26 = vmul.f32 %v7412_v63, %v3804_v47 }
 0xa5c   : > { %v3805_v40 = vsel %vm3304_vm9, %v3797_v36, %v3789_v44  ;;  %v3801_v10 = vsel %vm3304_vm9, %v3789_v44, %v3797_v36 }
 0xa5d   : > { %5083 = vmatmul.mubr.msk.f32.gmra.mrb[36].mxu0 %vm1088_vm7, %v3541_v56  ;;  %v3813_v4 = vmul.f32 %v7412_v63, %v3805_v40  ;;  %v3812_v43 = vmul.f32 %v7441_v48, %v3801_v10  ;;  %v3537_v63 = vld [vmem:[#allocation8 + $0x30] sm:$0xff]  ;;  %v3778_v48 = vld [vmem:[#allocation8 + $0x40] sm:$0xff] }
 0xa5e   : > { %3669 = vmatprep.mubr.f32.mxu0 %v5883_v0 }
 0xa5f   : > { %v5258_v20 = vpack.c.bf16 %v3813_v4, %v3811_v26  ;;  %v5260_v61 = vpack.c.bf16 %v3812_v43, %v3810_v31 }
 0xa61   : > { %5084 = vmatmul.mubr.msk.f32.gmra.mrb[38].mxu0 %vm1088_vm7, %v3542_v38 }
 0xa62   : > { %3752 = vmatprep.mubr.f32.mxu0 %v5883_v0 }
 0xa65   : > { %5085 = vmatmul.mubr.msk.f32.vlgmr.msra.gmra.mrb[32].mxu0 %vm1088_vm7, %v3535_v16 }
 0xa66   : > { %5257 = vmatpush1.bf16.msra.mxu0 %v5256_v53  ;;  %3758 = vmatprep.mubr.f32.mxu0 %v5883_v0 }
 0xa67   : > { %5259 = vmatprep.subr.bf16.mxu0 %v5258_v20 }
 0xa68   : > { %v3930_v46 = vpop.permute.xlu0 %3929 }
 0xa69   : > { %5086 = vmatmul.mubr.msk.f32.gmra.mrb[34].mxu0 %vm1088_vm7, %v3536_v6 }
 0xa6a   : > { %5261 = vmatpush1.bf16.msra.mxu0 %v5260_v61  ;;  %3764 = vmatprep.mubr.f32.mxu0 %v5883_v0 }
 0xa6c   : > { %v3935_v15 = vpop.permute.xlu1 %3934  ;;  %v3940_v55 = vpop.permute.xlu0 %3939 }
 0xa6d   : > { %5087 = vmatmul.mubr.msk.f32.gmra.mrb[36].mxu0 %vm1088_vm7, %v3537_v63 }
 0xa6e   : > { %3770 = vmatprep.mubr.f32.mxu0 %v5883_v0 }
 0xa70   : > { %v3945_v22 = vpop.permute.xlu1 %3944 }
 0xa71   : > { %5088 = vmatmul.mubr.msk.f32.gmra.mrb[38].mxu0 %vm1088_vm7, %v3538_v29 }
 0xa72   : > { %3890 = vmatprep.mubr.f32.mxu0 %v5883_v0 }
 0xa75   : > { %5089 = vmatmul.mubr.msk.f32.vlgmr.msra.gmra.mrb[32].mxu0 %vm1088_vm7, %v3778_v48 }
 0xa76   : > { %3896 = vmatprep.mubr.f32.mxu0 %v5883_v0 }
 0xa79   : > { %5090 = vmatmul.mubr.msk.f32.gmra.mrb[34].mxu0 %vm1088_vm7, %v3779_v41 }
 0xa7a   : > { %3902 = vmatprep.mubr.f32.mxu0 %v5883_v0 }
 0xa7d   : > { %5091 = vmatmul.mubr.msk.f32.gmra.mrb[36].mxu0 %vm1088_vm7, %v3780_v27 }
 0xa7e   : > { %3908 = vmatprep.mubr.f32.mxu0 %v5883_v0 }
 0xa81   : > { %5092 = vmatmul.mubr.msk.f32.gmra.mrb[38].mxu0 %vm1088_vm7, %v3781_v62 }
 0xb48   : > { %v3892_v13 = vpop.f32.mrb[32].mxu0 }
 0xb49   : > { %v3947_v14 = vadd.f32 %v3930_v46, %v3892_v13  ;;  %v3894_v8 = vpop.f32.mrb[33].mxu0 }
 0xb4a   : > { %v3948_v37 = vadd.f32 %v3930_v46, %v3894_v8 }
 0xb4b   : > { %v7669_v42 = vadd.f32 %v3947_v14, %v7242_v49 }
 0xb4c   : > { %v7672_v58 = vadd.f32 %v3948_v37, %v7245_v18  ;;  %v3898_v1 = vpop.f32.mrb[34].mxu0 }
 0xb4d   : > { %v3949_v3 = vadd.f32 %v3935_v15, %v3898_v1  ;;  %v3900_v9 = vpop.f32.mrb[35].mxu0  ;;  %v4068_v2 = vmul.f32 0.044715, %v7669_v42 }
 0xb4e   : > { %v3950_v59 = vadd.f32 %v3935_v15, %v3900_v9  ;;  %v4069_v12 = vmul.f32 0.044715, %v7672_v58 }
 0xb4f   : > { %v7677_v52 = vadd.f32 %v3949_v3, %v7250_v35  ;;  %v4076_v39 = vmul.f32 %v4068_v2, %v7669_v42 }
 0xb50   : > { %v7681_v49 = vadd.f32 %v3950_v59, %v7254_v51  ;;  %v3904_v28 = vpop.f32.mrb[36].mxu0  ;;  %v4077_v18 = vmul.f32 %v4069_v12, %v7672_v58 }
 0xb51   : > { %v3951_v33 = vadd.f32 %v3940_v55, %v3904_v28  ;;  %v3906_v34 = vpop.f32.mrb[37].mxu0  ;;  %v5264_v11 = vpack.c.bf16 %v7677_v52, %v7669_v42  ;;  %v4084_v32 = vmul.f32 %v4076_v39, %v7669_v42  ;;  %v4070_v54 = vmul.f32 0.044715, %v7677_v52 }
 0xb52   : > { %v3952_v57 = vadd.f32 %v3940_v55, %v3906_v34  ;;  %v5262_v35 = vpack.c.bf16 %v7681_v49, %v7672_v58  ;;  %v4085_v44 = vmul.f32 %v4077_v18, %v7672_v58  ;;  %v4071_v36 = vmul.f32 0.044715, %v7681_v49 }
 0xb53   : > { %v7692_v51 = vadd.f32 %v3951_v33, %v7262_v60  ;;  %v4092_v56 = vadd.f32 %v4084_v32, %v7669_v42  ;;  %v4078_v38 = vmul.f32 %v4070_v54, %v7677_v52  ;;  %v4060_v39 = vmul.f32 0.5, %v7669_v42 }
 0xb54   : > { %v3910_v5 = vpop.f32.mrb[38].mxu0  ;;  %5263 = vmatprep.subr.bf16.mxu1 %v5262_v35  ;;  %v4093_v40 = vadd.f32 %v4085_v44, %v7672_v58  ;;  %v7699_v23 = vadd.f32 %v3952_v57, %v7269_v30  ;;  %v4079_v60 = vmul.f32 %v4071_v36, %v7681_v49  ;;  %v4061_v32 = vmul.f32 0.5, %v7672_v58  ;;  %v3963_v44 = vld [vmem:[%s8130_s20] sm:$0xff] }
 0xb55   : > { %v3953_v7 = vadd.f32 %v3945_v22, %v3910_v5  ;;  %v3912_v47 = vpop.f32.mrb[39].mxu0  ;;  %5265 = vmatpush1.bf16.msra.mxu1 %v5264_v11  ;;  %v4100_v10 = vmul.f32 0.7978846, %v4092_v56  ;;  %v4086_v16 = vmul.f32 %v4078_v38, %v7677_v52  ;;  %v4072_v17 = vmul.f32 0.044715, %v7692_v51 }
 0xb56   : > { %v3954_v4 = vadd.f32 %v3945_v22, %v3912_v47  ;;  %v4101_v50 = vmul.f32 0.7978846, %v4093_v40  ;;  %v4087_v53 = vmul.f32 %v4079_v60, %v7681_v49  ;;  %v4073_v61 = vmul.f32 0.044715, %v7699_v23 }
 0xb57   : > { %v7705_v26 = vadd.f32 %v3953_v7, %v7275_v21  ;;  %5634 = vtanh.f32 %v4100_v10  ;;  %v4094_v43 = vadd.f32 %v4086_v16, %v7677_v52  ;;  %v4080_v20 = vmul.f32 %v4072_v17, %v7692_v51  ;;  %v3964_v17 = vld [vmem:[%s8130_s20 + $0x8] sm:$0xff] }
 0xb58   : > { %v7709_v30 = vadd.f32 %v3954_v4, %v7279_v45  ;;  %5636 = vtanh.f32 %v4101_v50  ;;  %v4095_v6 = vadd.f32 %v4087_v53, %v7681_v49  ;;  %v4081_v41 = vmul.f32 %v4073_v61, %v7699_v23  ;;  %v4460_v61 = vld [vmem:[%s8131_s5 + $0x8] sm:$0xff] }
 0xb59   : > { %v5268_v31 = vpack.c.bf16 %v7705_v26, %v7692_v51  ;;  %v4102_v63 = vmul.f32 0.7978846, %v4094_v43  ;;  %v4088_v29 = vmul.f32 %v4080_v20, %v7692_v51  ;;  %v4074_v45 = vmul.f32 0.044715, %v7705_v26 }
 0xb5a   : > { %v5266_v21 = vpack.c.bf16 %v7709_v30, %v7699_v23  ;;  %v4103_v48 = vmul.f32 0.7978846, %v4095_v6  ;;  %v4075_v27 = vmul.f32 0.044715, %v7709_v30  ;;  %v4089_v13 = vmul.f32 %v4081_v41, %v7699_v23 }
 0xb5b   : > { %5638 = vtanh.f32 %v4102_v63  ;;  %v4096_v62 = vadd.f32 %v4088_v29, %v7692_v51  ;;  %v4082_v46 = vmul.f32 %v4074_v45, %v7705_v26  ;;  %v4062_v35 = vmul.f32 0.5, %v7677_v52 }
 0xb5c   : > { %5267 = vmatprep.subr.bf16.mxu1 %v5266_v21  ;;  %5640 = vtanh.f32 %v4103_v48  ;;  %v4083_v14 = vmul.f32 %v4075_v27, %v7709_v30  ;;  %v4097_v15 = vadd.f32 %v4089_v13, %v7699_v23  ;;  %v4063_v56 = vmul.f32 0.5, %v7681_v49 }
 0xb5d   : > { %5269 = vmatpush1.bf16.msra.mxu1 %v5268_v31  ;;  %v4104_v8 = vmul.f32 0.7978846, %v4096_v62  ;;  %v4090_v37 = vmul.f32 %v4082_v46, %v7705_v26  ;;  %v4064_v5 = vmul.f32 0.5, %v7692_v51  ;;  %v4065_v51 = vmul.f32 0.5, %v7699_v23 }
 0xb5e   : > { %v4091_v1 = vmul.f32 %v4083_v14, %v7709_v30  ;;  %v4105_v2 = vmul.f32 0.7978846, %v4097_v15  ;;  %v4066_v50 = vmul.f32 0.5, %v7705_v26  ;;  %v4067_v53 = vmul.f32 0.5, %v7709_v30 }
 0xb5f   : > { %5642 = vtanh.f32 %v4104_v8  ;;  %v4098_v3 = vadd.f32 %v4090_v37, %v7705_v26  ;;  %v7816_v45 = vsel %vm796_vm11, 1.0, %v5883_v0  ;;  %v7819_v48 = vsel %vm797_vm12, 1.0, %v5883_v0 }
 0xb60   : > { %v4099_v59 = vadd.f32 %v4091_v1, %v7709_v30  ;;  %5644 = vtanh.f32 %v4105_v2  ;;  %5093 = vmatmul.mubr.msk.f32.vlgmr.msra.gmra.mrb[24].mxu1 %vm1088_vm7, %v3963_v44  ;;  %v4459_v30 = vld [vmem:[%s8131_s5] sm:$0xff]  ;;  %s8136_s5 = sld [smem:[#allocation33_spill]] }
 0xb61   : > { %v5635_v9 = vpop.eup %5634  ;;  %v4106_v28 = vmul.f32 0.7978846, %v4098_v3  ;;  %4053 = vmatprep.mubr.f32.mxu1 %v5883_v0 }
 0xb62   : > { %v5637_v12 = vpop.eup %5636  ;;  %v4116_v55 = vadd.f32 1.0, %v5635_v9  ;;  %v4107_v18 = vmul.f32 0.7978846, %v4099_v59 }
 0xb63   : > { %v4117_v34 = vadd.f32 1.0, %v5637_v12  ;;  %5646 = vtanh.f32 %v4106_v28 }
 0xb64   : > { %v7733_v33 = vmul.f32 %v4116_v55, %v4060_v39  ;;  %5648 = vtanh.f32 %v4107_v18  ;;  %5094 = vmatmul.mubr.msk.f32.gmra.mrb[26].mxu1 %vm1088_vm7, %v3964_v17 }
 0xb65   : > { %v5639_v11 = vpop.eup %5638  ;;  %v7742_v54 = vmul.f32 %v4117_v34, %v4061_v32  ;;  %4240 = vmatprep.mubr.f32.mxu1 %v5883_v0 }
 0xb66   : > { %4137 = vrot.lane.b32.xlu0 %v7733_v33, %s8072_s7  ;;  %v5641_v57 = vpop.eup %5640  ;;  %v4118_v42 = vadd.f32 1.0, %v5639_v11 }
 0xb67   : > { %v4119_v36 = vadd.f32 1.0, %v5641_v57 }
 0xb68   : > { %v7746_v22 = vmul.f32 %v4118_v42, %v4062_v35 }
 0xb69   : > { %v5643_v58 = vpop.eup %5642  ;;  %v7751_v52 = vmul.f32 %v4119_v36, %v4063_v56 }
 0xb6a   : > { %4145 = vrot.lane.b32.xlu0 %v7742_v54, %s8072_s7  ;;  %4139 = vrot.lane.b32.xlu1 %v7746_v22, %s8072_s7  ;;  %v4120_v40 = vadd.f32 1.0, %v5643_v58  ;;  %v5280_v49 = vpack.c.bf16 %v7746_v22, %v7733_v33  ;;  %v5645_v7 = vpop.eup %5644  ;;  %v4135_v58 = vld [vmem:[%s8132_s18] sm:$0xff] }
 0xb6b   : > { %v5278_v38 = vpack.c.bf16 %v7751_v52, %v7742_v54  ;;  %v4121_v60 = vadd.f32 1.0, %v5645_v7  ;;  %v7855_v7 = vsel %vm803_vm14, 1.0, %v5883_v0 }
 0xb6c   : > { %v7760_v47 = vmul.f32 %v4120_v40, %v4064_v5 }
 0xb6d   : > { %v5647_v10 = vpop.eup %5646  ;;  %v7773_v20 = vmul.f32 %v4121_v60, %v4065_v51 }
 0xb6e   : > { %v5649_v4 = vpop.eup %5648  ;;  %4147 = vrot.lane.b32.xlu1 %v7751_v52, %s8072_s7  ;;  %4141 = vrot.lane.b32.xlu0 %v7760_v47, %s8072_s7  ;;  %v4122_v16 = vadd.f32 1.0, %v5647_v10 }
 0xb6f   : > { %v4123_v43 = vadd.f32 1.0, %v5649_v4 }
 0xb70   : > { %v7775_v31 = vmul.f32 %v4122_v16, %v4066_v50 }
 0xb71   : > { %v7778_v6 = vmul.f32 %v4123_v43, %v4067_v53  ;;  %v5095_v53 = vld [vmem:[%s8132_s18 + $0x10] sm:$0xff] }
 0xb72   : > { %4149 = vrot.lane.b32.xlu0 %v7773_v20, %s8072_s7  ;;  %4143 = vrot.lane.b32.xlu1 %v7775_v31, %s8072_s7  ;;  %v5284_v23 = vpack.c.bf16 %v7775_v31, %v7760_v47 }
 0xb73   : > { %v5282_v26 = vpack.c.bf16 %v7778_v6, %v7773_v20 }
 0xb76   : > { %4339 = vrot.lane.b32.xlu0 %v7733_v33, %s8070_s22  ;;  %4151 = vrot.lane.b32.xlu1 %v7778_v6, %s8072_s7  ;;  %s8133_s7 = smov 8  }
 0xb7a   : > { %4347 = vrot.lane.b32.xlu0 %v7742_v54, %s8070_s22  ;;  %4341 = vrot.lane.b32.xlu1 %v7746_v22, %s8070_s22  ;;  %v7873_v54 = vsel %vm802_vm0, 1.0, %v5883_v0 }
 0xb7e   : > { %4343 = vrot.lane.b32.xlu0 %v7760_v47, %s8070_s22  ;;  %4349 = vrot.lane.b32.xlu1 %v7751_v52, %s8070_s22 }
 0xb82   : > { %4351 = vrot.lane.b32.xlu0 %v7773_v20, %s8070_s22  ;;  %4345 = vrot.lane.b32.xlu1 %v7775_v31, %s8070_s22 }
 0xb86   : > { %4463 = vperm.xlu0 %5536, %v4459_v30   ;;  %4353 = vrot.lane.b32.xlu1 %v7778_v6, %s8070_s22  ;;  %s8134_s22 = smov 120  }
 0xb8a   : > { %4468 = vperm.xlu1 %5537, %v4460_v61   ;;  %v5096_v61 = vld [vmem:[%s8132_s18 + $0x18] sm:$0xff] }
 0xbd8   : > { %v4138_v21 = vpop.permute.xlu0 %4137 }
 0xbdc   : > { %v4146_v63 = vpop.permute.xlu0 %4145  ;;  %v4140_v29 = vpop.permute.xlu1 %4139 }
 0xbdd   : > { %v4154_v41 = vsel %vm4153_vm13, %v4138_v21, %v4146_v63  ;;  %v4158_v27 = vsel %vm4153_vm13, %v4146_v63, %v4138_v21 }
 0xbde   : > { %v4162_v8 = vmul.f32 %v7816_v45, %v4158_v27  ;;  %v4163_v37 = vmul.f32 %v7819_v48, %v4154_v41  ;;  %v5102_v41 = vld [vmem:[%s8132_s18 + $0x28] sm:$0xff] }
 0xbe0   : > { %v4148_v62 = vpop.permute.xlu1 %4147  ;;  %v4142_v46 = vpop.permute.xlu0 %4141 }
 0xbe1   : > { %v4155_v13 = vsel %vm4153_vm13, %v4140_v29, %v4148_v62  ;;  %v4159_v14 = vsel %vm4153_vm13, %v4148_v62, %v4140_v29  ;;  %v5101_v29 = vld [vmem:[%s8132_s18 + $0x20] sm:$0xff] }
 0xbe2   : > { %v4164_v15 = vmul.f32 %v7816_v45, %v4159_v14  ;;  %v4165_v1 = vmul.f32 %v7819_v48, %v4155_v13 }
 0xbe4   : > { %v5272_v3 = vpack.c.bf16 %v4164_v15, %v4162_v8  ;;  %v4150_v9 = vpop.permute.xlu0 %4149  ;;  %v4144_v2 = vpop.permute.xlu1 %4143  ;;  %v5270_v59 = vpack.c.bf16 %v4165_v1, %v4163_v37 }
 0xbe5   : > { %v4156_v12 = vsel %vm4153_vm13, %v4142_v46, %v4150_v9  ;;  %v4160_v39 = vsel %vm4153_vm13, %v4150_v9, %v4142_v46 }
 0xbe6   : > { %5271 = vmatprep.subr.bf16.mxu1 %v5270_v59  ;;  %v4166_v11 = vmul.f32 %v7816_v45, %v4160_v39  ;;  %v4167_v32 = vmul.f32 %v7819_v48, %v4156_v12 }
 0xbe7   : > { %5273 = vmatpush1.bf16.msra.mxu1 %v5272_v3 }
 0xbe8   : > { %v4340_v55 = vpop.permute.xlu0 %4339  ;;  %v4152_v28 = vpop.permute.xlu1 %4151 }
 0xbe9   : > { %v4157_v18 = vsel %vm4153_vm13, %v4144_v2, %v4152_v28  ;;  %v4161_v34 = vsel %vm4153_vm13, %v4152_v28, %v4144_v2 }
 0xbea   : > { %v4168_v57 = vmul.f32 %v7816_v45, %v4161_v34  ;;  %v4169_v35 = vmul.f32 %v7819_v48, %v4157_v18 }
 0xbec   : > { %v5276_v42 = vpack.c.bf16 %v4168_v57, %v4166_v11  ;;  %v4348_v44 = vpop.permute.xlu0 %4347  ;;  %v4342_v56 = vpop.permute.xlu1 %4341  ;;  %v5274_v36 = vpack.c.bf16 %v4169_v35, %v4167_v32 }
 0xbed   : > { %v4360_v25 = vsel %vm4355_vm15, %v4348_v44, %v4340_v55  ;;  %v4356_v52 = vsel %vm4355_vm15, %v4340_v55, %v4348_v44 }
 0xbee   : > { %5275 = vmatprep.subr.bf16.mxu1 %v5274_v36 }
 0xbef   : > { %5277 = vmatpush1.bf16.msra.mxu1 %v5276_v42 }
 0xbf0   : > { %v4344_v5 = vpop.permute.xlu0 %4343  ;;  %v4350_v40 = vpop.permute.xlu1 %4349  ;;  %5279 = vmatprep.subr.bf16.mxu1 %v5278_v38  ;;  %v4365_v38 = vmul.f32 %v7855_v7, %v4360_v25 }
 0xbf1   : > { %v4361_v10 = vsel %vm4355_vm15, %v4350_v40, %v4342_v56  ;;  %v4357_v60 = vsel %vm4355_vm15, %v4342_v56, %v4350_v40 }
 0xbf2   : > { %v4367_v4 = vmul.f32 %v7855_v7, %v4361_v10  ;;  %5097 = vmatmul.mubr.msk.f32.vlgmr.msra.gmra.mrb[28].mxu1 %vm1088_vm7, %v4135_v58  ;;  %v4366_v33 = vmul.f32 %v7873_v54, %v4357_v60 }
 0xbf3   : > { %5281 = vmatpush1.bf16.msra.mxu1 %v5280_v49  ;;  %4246 = vmatprep.mubr.f32.mxu1 %v5883_v0  ;;  %v4364_v49 = vmul.f32 %v7873_v54, %v4356_v52 }
 0xbf4   : > { %v4352_v51 = vpop.permute.xlu0 %4351  ;;  %v4346_v50 = vpop.permute.xlu1 %4345  ;;  %5283 = vmatprep.subr.bf16.mxu1 %v5282_v26  ;;  %v5286_v22 = vpack.c.bf16 %v4367_v4, %v4365_v38 }
 0xbf5   : > { %v4358_v16 = vsel %vm4355_vm15, %v4344_v5, %v4352_v51  ;;  %v4362_v17 = vsel %vm4355_vm15, %v4352_v51, %v4344_v5  ;;  %v5288_v20 = vpack.c.bf16 %v4366_v33, %v4364_v49 }
 0xbf6   : > { %5098 = vmatmul.mubr.msk.f32.gmra.mrb[30].mxu1 %vm1088_vm7, %v4136_v24  ;;  %v4368_v30 = vmul.f32 %v7873_v54, %v4358_v16  ;;  %v4369_v47 = vmul.f32 %v7855_v7, %v4362_v17 }
 0xbf7   : > { %5285 = vmatpush1.bf16.msra.mxu1 %v5284_v23  ;;  %4323 = vmatprep.mubr.f32.mxu1 %v5883_v0 }
 0xbf8   : > { %v4354_v43 = vpop.permute.xlu1 %4353  ;;  %5287 = vmatprep.subr.bf16.mxu1 %v5286_v22 }
 0xbf9   : > { %v4359_v6 = vsel %vm4355_vm15, %v4346_v50, %v4354_v43  ;;  %v4363_v26 = vsel %vm4355_vm15, %v4354_v43, %v4346_v50 }
 0xbfa   : > { %v4370_v31 = vmul.f32 %v7873_v54, %v4359_v6  ;;  %v4371_v23 = vmul.f32 %v7855_v7, %v4363_v26  ;;  %5099 = vmatmul.mubr.msk.f32.vlgmr.msra.gmra.mrb[28].mxu1 %vm1088_vm7, %v5095_v53  ;;  %v3965_v26 = vld [vmem:[%s8135_s19] sm:$0xff] }
 0xbfb   : > { %5289 = vmatpush1.bf16.msra.mxu1 %v5288_v20  ;;  %4329 = vmatprep.mubr.f32.mxu1 %v5883_v0 }
 0xbfc   : > { %v5292_v21 = vpack.c.bf16 %v4370_v31, %v4368_v30  ;;  %v5290_v63 = vpack.c.bf16 %v4371_v23, %v4369_v47  ;;  %v4805_v30 = vld [vmem:[%s8136_s5] sm:$0xff]  ;;  %v3966_v47 = vld [vmem:[%s8135_s19 + $0x8] sm:$0xff] }
 0xbfd   : > { %v4806_v31 = vld [vmem:[%s8136_s5 + $0x8] sm:$0xff]  ;;  %s5804_s5 = sshll.u32 %s5893_s8, 4  ;;  %s5805_s5 = int_to_ptr.vmem [resolvable:$false] %s5804_s5 }
 0xbfe   : > { %5100 = vmatmul.mubr.msk.f32.gmra.mrb[30].mxu1 %vm1088_vm7, %v5096_v61  ;;  %5291 = vmatprep.subr.bf16.mxu1 %v5290_v63  ;;  %s5806_s13 = scalar_lea.vmem %s5805_s5, 1024  ;;  %p5807_p12 = scmp.lt.s32.totalorder %s7977_s12, %s5805_s5 }
 0xbff   : > { %5293 = vmatpush1.bf16.msra.mxu1 %v5292_v21  ;;  %4442 = vmatprep.mubr.f32.mxu1 %v5883_v0 }
 0xc02   : > { %5103 = vmatmul.mubr.msk.f32.vlgmr.msra.gmra.mrb[28].mxu1 %vm1088_vm7, %v5101_v29 }
 0xc03   : > { %4448 = vmatprep.mubr.f32.mxu1 %v5883_v0 }
 0xc05   : > { %v4464_v27 = vpop.permute.xlu0 %4463 }
 0xc06   : > { %5104 = vmatmul.mubr.msk.f32.gmra.mrb[30].mxu1 %vm1088_vm7, %v5102_v41  ;;  %vm4532_vm7 = vcmask 130048  }
 0xc07   : > { %4603 = vmatprep.mubr.f32.mxu1 %v5883_v0 }
 0xc09   : > { %v4469_v37 = vpop.permute.xlu1 %4468 }
 0xcd5   : > { %v4444_v62 = vpop.f32.mrb[28].mxu1 }
 0xcd6   : > { %v4471_v46 = vadd.f32 %v4464_v27, %v4444_v62  ;;  %v4446_v13 = vpop.f32.mrb[29].mxu1 }
 0xcd7   : > { %v4472_v14 = vadd.f32 %v4464_v27, %v4446_v13 }
 0xcd8   : > { %v4479_v8 = vmul.f32 0.044715, %v4471_v46  ;;  %v4475_v60 = vmul.f32 0.5, %v4471_v46 }
 0xcd9   : > { %v4480_v15 = vmul.f32 0.044715, %v4472_v14  ;;  %v4450_v1 = vpop.f32.mrb[30].mxu1  ;;  %v4476_v50 = vmul.f32 0.5, %v4472_v14 }
 0xcda   : > { %v4483_v3 = vmul.f32 %v4479_v8, %v4471_v46  ;;  %v4473_v9 = vadd.f32 %v4469_v37, %v4450_v1  ;;  %v4452_v2 = vpop.f32.mrb[31].mxu1 }
 0xcdb   : > { %v4484_v59 = vmul.f32 %v4480_v15, %v4472_v14  ;;  %v4474_v12 = vadd.f32 %v4469_v37, %v4452_v2 }
 0xcdc   : > { %v4487_v39 = vmul.f32 %v4483_v3, %v4471_v46  ;;  %v4481_v55 = vmul.f32 0.044715, %v4473_v9  ;;  %v4477_v33 = vmul.f32 0.5, %v4473_v9 }
 0xcdd   : > { %v4488_v28 = vmul.f32 %v4484_v59, %v4472_v14  ;;  %v4482_v18 = vmul.f32 0.044715, %v4474_v12  ;;  %v4478_v49 = vmul.f32 0.5, %v4474_v12  ;;  %v4514_v59 = vld [vmem:[#allocation10] sm:$0xff] }
 0xcde   : > { %v4491_v34 = vadd.f32 %v4487_v39, %v4471_v46  ;;  %v4485_v11 = vmul.f32 %v4481_v55, %v4473_v9 }
 0xcdf   : > { %v4492_v32 = vadd.f32 %v4488_v28, %v4472_v14  ;;  %v4486_v57 = vmul.f32 %v4482_v18, %v4474_v12  ;;  %v4515_v28 = vld [vmem:[#allocation10 + $0x8] sm:$0xff] }
 0xce0   : > { %v4489_v35 = vmul.f32 %v4485_v11, %v4473_v9  ;;  %v4495_v42 = vmul.f32 0.7978846, %v4491_v34 }
 0xce1   : > { %v4490_v44 = vmul.f32 %v4486_v57, %v4474_v12  ;;  %v4496_v56 = vmul.f32 0.7978846, %v4492_v32 }
 0xce2   : > { %v4493_v36 = vadd.f32 %v4489_v35, %v4473_v9  ;;  %5650 = vtanh.f32 %v4495_v42  ;;  %v4700_v35 = vld [vmem:[#allocation10 + $0x20] sm:$0xff] }
 0xce3   : > { %v4494_v58 = vadd.f32 %v4490_v44, %v4474_v12  ;;  %5652 = vtanh.f32 %v4496_v56 }
 0xce4   : > { %v4497_v5 = vmul.f32 0.7978846, %v4493_v36 }
 0xce5   : > { %v4498_v40 = vmul.f32 0.7978846, %v4494_v58 }
 0xce6   : > { %5654 = vtanh.f32 %v4497_v5 }
 0xce7   : > { %5656 = vtanh.f32 %v4498_v40 }
 0xcec   : > { %v5651_v25 = vpop.eup %5650 }
 0xced   : > { %v5653_v10 = vpop.eup %5652  ;;  %v4503_v4 = vadd.f32 1.0, %v5651_v25 }
 0xcee   : > { %v4504_v52 = vadd.f32 1.0, %v5653_v10 }
 0xcef   : > { %v4507_v24 = vmul.f32 %v4503_v4, %v4475_v60 }
 0xcf0   : > { %v5655_v38 = vpop.eup %5654  ;;  %v4508_v17 = vmul.f32 %v4504_v52, %v4476_v50 }
 0xcf1   : > { %v5657_v51 = vpop.eup %5656  ;;  %4516 = vrot.lane.b32.xlu0 %v4507_v24, %s8133_s7  ;;  %v4505_v22 = vadd.f32 1.0, %v5655_v38 }
 0xcf2   : > { %v4506_v16 = vadd.f32 1.0, %v5657_v51 }
 0xcf3   : > { %v4509_v53 = vmul.f32 %v4505_v22, %v4477_v33 }
 0xcf4   : > { %v4510_v43 = vmul.f32 %v4506_v16, %v4478_v49 }
 0xcf5   : > { %4520 = vrot.lane.b32.xlu0 %v4508_v17, %s8133_s7  ;;  %4518 = vrot.lane.b32.xlu1 %v4509_v53, %s8133_s7  ;;  %v5300_v20 = vpack.c.bf16 %v4509_v53, %v4507_v24 }
 0xcf6   : > { %v5298_v6 = vpack.c.bf16 %v4510_v43, %v4508_v17 }
 0xcf9   : > { %4702 = vrot.lane.b32.xlu0 %v4507_v24, %s8134_s22  ;;  %4522 = vrot.lane.b32.xlu1 %v4510_v43, %s8133_s7  ;;  %s5800_s7 = scalar_lea.vmem %s7977_s12, 512 }
 0xcfa   : > { %p5801_p6 = scmp.ne.s32.totalorder %s7977_s12, %s5800_s7  ;;  %p5808_p3 = scmp.lt.s32.totalorder %s5806_s13, %s5800_s7 }
 0xcfc   : > { %p5802_p7 = pnand %p5801_p6, %p8138_p5  ;;  %p5809_p13 = por %p5808_p3, %p5807_p12 }
 0xcfd   : > { %4706 = vrot.lane.b32.xlu0 %v4508_v17, %s8134_s22  ;;  %4704 = vrot.lane.b32.xlu1 %v4509_v53, %s8134_s22 }
 0xcfe   : > { %p5803_p9 = pneg %p5802_p7 }
 0xd00   : > { %p5810_p0 = pnand %p5809_p13, %p5803_p9 }
 0xd01   : > { %3969 = vperm.xlu0 %5536, %v3965_v26   ;;  %4708 = vrot.lane.b32.xlu1 %v4510_v43, %s8134_s22 }
 0xd05   : > { %4809 = vperm.xlu0 %5536, %v4805_v30   ;;  %3974 = vperm.xlu1 %5537, %v3966_v47  }
 0xd09   : > { %4814 = vperm.xlu1 %5537, %v4806_v31  }
 0xd63   : > { %v4517_v23 = vpop.permute.xlu0 %4516 }
 0xd67   : > { %v4521_v61 = vpop.permute.xlu0 %4520  ;;  %v4519_v21 = vpop.permute.xlu1 %4518 }
 0xd68   : > { %v4524_v63 = vsel %vm4153_vm13, %v4517_v23, %v4521_v61  ;;  %v4526_v29 = vsel %vm4153_vm13, %v4521_v61, %v4517_v23 }
 0xd69   : > { %v4528_v13 = vmul.f32 %v7816_v45, %v4526_v29  ;;  %v4529_v14 = vmul.f32 %v7819_v48, %v4524_v63 }
 0xd6b   : > { %v4703_v41 = vpop.permute.xlu0 %4702  ;;  %v4523_v27 = vpop.permute.xlu1 %4522 }
 0xd6c   : > { %v4525_v62 = vsel %vm4153_vm13, %v4519_v21, %v4523_v27  ;;  %v4527_v46 = vsel %vm4153_vm13, %v4523_v27, %v4519_v21 }
 0xd6d   : > { %v4530_v8 = vmul.f32 %v7816_v45, %v4527_v46  ;;  %v4531_v37 = vmul.f32 %v7819_v48, %v4525_v62 }
 0xd6f   : > { %v5296_v15 = vpack.c.bf16 %v4530_v8, %v4528_v13  ;;  %v4707_v1 = vpop.permute.xlu0 %4706  ;;  %v4705_v3 = vpop.permute.xlu1 %4704  ;;  %v5294_v9 = vpack.c.bf16 %v4531_v37, %v4529_v14 }
 0xd70   : > { %v4712_v2 = vsel %vm4355_vm15, %v4707_v1, %v4703_v41  ;;  %v4710_v18 = vsel %vm4355_vm15, %v4703_v41, %v4707_v1 }
 0xd71   : > { %5295 = vmatprep.subr.bf16.mxu1 %v5294_v9  ;;  %v4715_v45 = vmul.f32 %v7855_v7, %v4712_v2  ;;  %v4714_v32 = vmul.f32 %v7873_v54, %v4710_v18 }
 0xd72   : > { %5297 = vmatpush1.bf16.msra.mxu1 %v5296_v15 }
 0xd73   : > { %v4709_v12 = vpop.permute.xlu1 %4708  ;;  %5299 = vmatprep.subr.bf16.mxu1 %v5298_v6 }
 0xd74   : > { %v4713_v39 = vsel %vm4355_vm15, %v4709_v12, %v4705_v3  ;;  %v4711_v48 = vsel %vm4355_vm15, %v4705_v3, %v4709_v12 }
 0xd75   : > { %v4717_v55 = vmul.f32 %v7855_v7, %v4713_v39  ;;  %5105 = vmatmul.mubr.msk.f32.vlgmr.msra.gmra.mrb[24].mxu1 %vm4532_vm7, %v4514_v59  ;;  %v4716_v11 = vmul.f32 %v7873_v54, %v4711_v48  ;;  %v4512_v7 = vld [vmem:[#allocation10 + $0x10] sm:$0xff]  ;;  %v4701_v54 = vld [vmem:[#allocation10 + $0x28] sm:$0xff] }
 0xd76   : > { %5301 = vmatpush1.bf16.msra.mxu1 %v5300_v20  ;;  %4609 = vmatprep.mubr.f32.mxu1 %v5883_v0 }
 0xd77   : > { %v5302_v34 = vpack.c.bf16 %v4717_v55, %v4715_v45  ;;  %v5304_v57 = vpack.c.bf16 %v4716_v11, %v4714_v32 }
 0xd79   : > { %5106 = vmatmul.mubr.msk.f32.gmra.mrb[26].mxu1 %vm4532_vm7, %v4515_v28  ;;  %5303 = vmatprep.subr.bf16.mxu1 %v5302_v34 }
 0xd7a   : > { %4686 = vmatprep.mubr.f32.mxu1 %v5883_v0 }
 0xd7d   : > { %5107 = vmatmul.mubr.msk.f32.vlgmr.msra.gmra.mrb[24].mxu1 %vm4532_vm7, %v4512_v7 }
 0xd7e   : > { %5305 = vmatpush1.bf16.msra.mxu1 %v5304_v57  ;;  %4692 = vmatprep.mubr.f32.mxu1 %v5883_v0 }
 0xd80   : > { %v3970_v42 = vpop.permute.xlu0 %3969 }
 0xd81   : > { %5108 = vmatmul.mubr.msk.f32.gmra.mrb[26].mxu1 %vm4532_vm7, %v4513_v19 }
 0xd82   : > { %4788 = vmatprep.mubr.f32.mxu1 %v5883_v0 }
 0xd84   : > { %v3975_v44 = vpop.permute.xlu1 %3974  ;;  %v4810_v5 = vpop.permute.xlu0 %4809 }
 0xd85   : > { %5109 = vmatmul.mubr.msk.f32.vlgmr.msra.gmra.mrb[24].mxu1 %vm4532_vm7, %v4700_v35 }
 0xd86   : > { %4794 = vmatprep.mubr.f32.mxu1 %v5883_v0 }
 0xd88   : > { %v4815_v24 = vpop.permute.xlu1 %4814 }
 0xd89   : > { %5110 = vmatmul.mubr.msk.f32.gmra.mrb[26].mxu1 %vm4532_vm7, %v4701_v54 }
 0xe58   : > { %v4790_v56 = vpop.f32.mrb[24].mxu1 }
 0xe59   : > { %v5318_v36 = vadd.f32 %v4790_v56, %v3970_v42  ;;  %v4792_v58 = vpop.f32.mrb[25].mxu1 }
 0xe5a   : > { %v5320_v40 = vadd.f32 %v4792_v58, %v3970_v42 }
 0xe5b   : > { %v5319_v25 = vadd.f32 %v5318_v36, %v4810_v5 }
 0xe5c   : > { %v5321_v10 = vadd.f32 %v5320_v40, %v4810_v5  ;;  %v4796_v60 = vpop.f32.mrb[26].mxu1 }
 0xe5d   : > { %4825 = vst [vmem:[%s730_s10] sm:$0xff] %v5319_v25  ;;  %v5322_v0 = vadd.f32 %v4796_v60, %v3975_v44  ;;  %v4798_v4 = vpop.f32.mrb[27].mxu1 }
 0xe5e   : > { %4826 = vst [vmem:[%s730_s10 + $0x8] sm:$0xff] %v5321_v10  ;;  %v5324_v52 = vadd.f32 %v4798_v4, %v3975_v44 }
 0xe5f   : > { %v5323_v38 = vadd.f32 %v5322_v0, %v4815_v24 }
 0xe60   : > { %v5325_v51 = vadd.f32 %v5324_v52, %v4815_v24 }
 0xe61   : > { %4827 = vst [vmem:[%s730_s10 + $0x10] sm:$0xff] %v5323_v38 }
 0xe62   : > { %4828 = vst [vmem:[%s730_s10 + $0x18] sm:$0xff] %v5325_v51 }
 0xe63   : > { %5813 = shalt.err (!%p5810_p0)
}
 0xe64   : > { %s5814_s10 = scalar_lea.hbm %s7982_s6, 512  ;;  %s5818_s9 = scalar_lea.hbm %s8137_s14, 1024 }
 0xe65   : > { %p5815_p2 = scmp.ne.s32.totalorder %s7982_s6, %s5814_s10  ;;  %p5819_p10 = scmp.lt.u32.totalorder %s7982_s6, %s8137_s14 }
 0xe66   : > { %p5820_p11 = scmp.lt.u32.totalorder %s5818_s9, %s5814_s10  ;;  %p5822_p6 = scmp.lt.u32.totalorder %s5814_s10, %s7982_s6 }
 0xe67   : > { %p5816_p8 = pnand %p5815_p2, %p8138_p5 }
 0xe68   : > { %p5821_p1 = por %p5820_p11, %p5819_p10 }
 0xe69   : > { %p5817_p4 = pneg %p5816_p8 }
 0xe6a   : > { %p5823_p7 = por %p5822_p6, %p5821_p1 }
 0xe6c   : > { %p5824_p9 = pnand %p5823_p7, %p5817_p4 }
 0xe6e   : > { %5827 = shalt.err (!%p5824_p9)
}
 0xe6f   : > { %s5894_s13 = smov 256   ;;  %s5895_s7 = smov 512  }
 0xe70   : > { %s5896_s29 = smov 16   ;;  %s8139_s0 = scalar_lea.sflag [#allocation4], %s6235_s11 }
 0xe71   : > { %5452 = dma.vmem_to_hbm [thread:$0]  (%p8138_p5), %s7977_s12, 512, %s7982_s6, %s8139_s0, %s5894_s13, %s5895_s7, %s5896_s29  }
 0xe72 PF: > { %s4858_s22 = sand.u32 1, %s5862_s2   ;;  %p8140_p12 = scmp.ne.s32.totalorder %s8108_s3, 0 }
 0xe73   : > { %p8141_p3 = scmp.ge.s32.totalorder %s5874_s27, 2  ;;  %s4859_s10 = scalar_lea.sflag [#allocation4], %s4858_s22 }
 0xe75   : > { %p5472_p13 = pnand %p8141_p3, %p8140_p12 }
 0xe77   : > { %5857 = dma.done.wait (!%p5472_p13), %s4859_s10, 512  }
 0xe78   : > { %5859 = vsyncadd (!%p5472_p13), %s4859_s10, 4294966784  ;;  %p36_p0 = scmp.ge.s32.totalorder %s6159_s4, 4   ;;  %s8142_s2 = smov %s5866_s25 }
 0xe79   : > { %s8143_s25 = smov %s5870_s26  ;;  %s8144_s26 = smov %s6170_s1 }
 0xe7a   : > { %s8145_s27 = smov %s6159_s4  ;;  %38 = sbr.rel (!%p36_p0) target bundleno = 29 (0x1d), region = 181 }
 0xe81   :  { %4864 = vsyncpa [#allocation3], 1 }
 0xe82   :  { %4866 = vsyncpa [#allocation3 + $0x1], 1 }
 0xe83   :  { %4867 = vsyncpa [#allocation6], 1 }
 0xe84   :  { %4868 = vsyncpa [#allocation9], 1 }
 0xe85   :  { %4869 = vsyncpa [#allocation4], 1 }
 0xe86   :  { %4871 = vsyncpa [#allocation4 + $0x1], 1 }

</bundles_post_ra>
